<compile_context>
chip_gen: v7x
topology: tpu7x:2x2x1
jax: 0.10.0
libtpu: 0.0.40
codegen_flags: <defaults>
</compile_context>

<pallas_src>
import jax
import jax.numpy as jnp
from jax.experimental import pallas as pl
from jax.experimental.pallas import tpu as pltpu

HID = 128  # padded hidden width (96 / 64 padded up to 128 lanes)


def autoencoder_kernel(
    x_ref,                # (bt, d_pad)  bf16
    w1_ref, b1_ref,       # enc: d_pad -> 128   (init -> 96 real)
    w2_ref, b2_ref,       # enc: 128   -> 128   (96 -> 64 real)
    w34_ref, b34_ref,     # fused enc(64->lat) @ dec(lat->64): 128 -> 128
    w5_ref, b5_ref,       # dec: 128   -> 128   (64 -> 96 real)
    w6_ref, b6_ref,       # dec: 128   -> d_pad (96 -> init real)
    o_ref,                # (bt, d_pad)  bf16
):
    def linear(h, w_ref, b_ref):
        # bf16 operands -> native single-pass MXU; fp32 accumulate; fp32 bias add.
        return jnp.dot(h.astype(jnp.bfloat16), w_ref[...],
                       preferred_element_type=jnp.float32) + b_ref[...]

    h = jnp.maximum(linear(x_ref[...], w1_ref, b1_ref), 0.0)
    h = jnp.maximum(linear(h, w2_ref, b2_ref), 0.0)
    h = jnp.maximum(linear(h, w34_ref, b34_ref), 0.0)   # fused latent pair
    h = jnp.maximum(linear(h, w5_ref, b5_ref), 0.0)
    y = linear(h, w6_ref, b6_ref)

    # Numerically stable sigmoid: exp on the EUP, exact fp32 divide + select on VPU.
    ey = jnp.exp(-jnp.abs(y))
    sig = jnp.where(y >= 0.0, 1.0 / (1.0 + ey), ey / (1.0 + ey))
    o_ref[...] = sig.astype(o_ref.dtype)


def _round_up(n, m):
    return ((n + m - 1) // m) * m


def _pad2(a, rows, cols):
    r, c = a.shape
    return jnp.pad(a, ((0, rows - r), (0, cols - c)))


def prepare_kernel_params(params, init_size, d_pad):
    """Fuse the latent pair (fp32), zero-pad hidden dims to 128 and init_size to
    d_pad, cast weights to bf16 (biases stay fp32).  Padding is exact: padded
    weight rows/cols and bias lanes are zero, so padded activation lanes stay
    zero through ReLU."""
    w34 = params["w3"] @ params["w4"]                       # (64, 64)
    b34 = params["b3"] @ params["w4"] + params["b4"]        # (1, 64)

    kp = {}
    kp["w1"] = _pad2(params["w1"], d_pad, HID).astype(jnp.bfloat16)
    kp["b1"] = _pad2(params["b1"], 1, HID)
    kp["w2"] = _pad2(params["w2"], HID, HID).astype(jnp.bfloat16)
    kp["b2"] = _pad2(params["b2"], 1, HID)
    kp["w34"] = _pad2(w34, HID, HID).astype(jnp.bfloat16)
    kp["b34"] = _pad2(b34, 1, HID)
    kp["w5"] = _pad2(params["w5"], HID, HID).astype(jnp.bfloat16)
    kp["b5"] = _pad2(params["b5"], 1, HID)
    kp["w6"] = _pad2(params["w6"], HID, d_pad).astype(jnp.bfloat16)
    kp["b6"] = _pad2(params["b6"], 1, d_pad)
    return kp


def autoencoder_forward(x, params, *, batch_tile=1024):
    """x: (B, init_size) float32. params: raw fp32 (in,out) weights + (1,out) biases."""
    B, init_size = x.shape
    d_pad = _round_up(init_size, 128)

    # Batch tile: multiple of 8; for small B use a single grid step (v5e/v6e: 1 TC).
    bt = min(_round_up(batch_tile, 8), _round_up(B, 8))
    B_pad = _round_up(B, bt)

    x_p = x
    if B_pad != B or d_pad != init_size:
        x_p = jnp.pad(x, ((0, B_pad - B), (0, d_pad - init_size)))
    x_p = x_p.astype(jnp.bfloat16)   # halve input HBM traffic

    kp = prepare_kernel_params(params, init_size, d_pad)
    keys = ["w1", "b1", "w2", "b2", "w34", "b34", "w5", "b5", "w6", "b6"]
    args = [kp[k] for k in keys]

    grid = (B_pad // bt,)

    def full_spec(arr):
        # Constant index map: weights stay VMEM-resident across grid steps.
        return pl.BlockSpec(arr.shape, lambda i: (0,) * arr.ndim)

    in_specs = [pl.BlockSpec((bt, d_pad), lambda i: (i, 0))]
    in_specs += [full_spec(a) for a in args]
    out_spec = pl.BlockSpec((bt, d_pad), lambda i: (i, 0))

    # VMEM budget: double-buffered bf16 in/out slabs + weights + fp32 temporaries.
    weight_bytes = sum(int(a.size) * a.dtype.itemsize for a in args)
    est = 2 * 2 * (bt * d_pad * 2) + 2 * weight_bytes + 6 * bt * HID * 4
    cp_kwargs = dict(dimension_semantics=("parallel",))
    if est > 12 * 1024 * 1024:
        # Raise the scoped-VMEM limit only when needed; keep headroom under v7x's 64 MiB.
        cp_kwargs["vmem_limit_bytes"] = int(min(est + (8 << 20), 56 * 1024 * 1024))

    out = pl.pallas_call(
        autoencoder_kernel,
        out_shape=jax.ShapeDtypeStruct((B_pad, d_pad), jnp.bfloat16),
        grid_spec=pltpu.PrefetchScalarGridSpec(
            num_scalar_prefetch=0,
            grid=grid,
            in_specs=in_specs,
            out_specs=out_spec,
        ),
        compiler_params=pltpu.CompilerParams(**cp_kwargs),
    )(x_p, *args)

    out = out.astype(jnp.float32)
    return out[:B, :init_size]


def init_params(key, init_size, latent_size):
    """Deterministic init mimicking torch.nn.Linear default
    (U[-1/sqrt(fan_in), +1/sqrt(fan_in)]).  Weights stored as
    (in_features, out_features); biases as (1, out_features)."""
    dims = [
        (init_size, 96), (96, 64), (64, latent_size),    # encoder
        (latent_size, 64), (64, 96), (96, init_size),    # decoder
    ]
    params = {}
    for idx, (fan_in, fan_out) in enumerate(dims, start=1):
        key, kw, kb = jax.random.split(key, 3)
        bound = 1.0 / (fan_in ** 0.5)
        params[f"w{idx}"] = jax.random.uniform(
            kw, (fan_in, fan_out), jnp.float32, -bound, bound)
        params[f"b{idx}"] = jax.random.uniform(
            kb, (1, fan_out), jnp.float32, -bound, bound)
    return params


def reference_forward(x, params):
    """fp32 module semantics (PyTorch Autoencoder.forward equivalent)."""
    h = jnp.maximum(x @ params["w1"] + params["b1"], 0.0)
    h = jnp.maximum(h @ params["w2"] + params["b2"], 0.0)
    z = h @ params["w3"] + params["b3"]
    h = jnp.maximum(z @ params["w4"] + params["b4"], 0.0)
    h = jnp.maximum(h @ params["w5"] + params["b5"], 0.0)
    y = h @ params["w6"] + params["b6"]
    return jax.nn.sigmoid(y)


if __name__ == "__main__":
    init_size = 128
    latent_size = 32
    batch = 512

    key = jax.random.PRNGKey(0)
    key_x, key_p = jax.random.split(key)
    x = jax.random.normal(key_x, (batch, init_size), jnp.float32)
    params = init_params(key_p, init_size, latent_size)

    out = autoencoder_forward(x, params, batch_tile=512)
    out = jax.block_until_ready(out)

    ref = reference_forward(x, params)
    assert out.shape == (batch, init_size)
    assert bool(jnp.all(jnp.isfinite(out)))
    # Kernel runs bf16-operand matmuls (fp32 accumulation) + bf16 output slab;
    # tolerance covers bf16 quantization vs. the fp32 reference (observed ~5e-3 max).
    assert jnp.allclose(out, ref, atol=3e-2, rtol=0.0), "mismatch vs JAX reference"

    print("KERNEL_OK")
</pallas_src>

<mosaic_0001>
module attributes {stable_mosaic.version = 11 : i64} {
  func.func @autoencoder_kernel(%arg0: i32, %arg1: memref<512x128xbf16, #tpu.memory_space<vmem>>, %arg2: memref<128x128xbf16, #tpu.memory_space<vmem>>, %arg3: memref<1x128xf32, #tpu.memory_space<vmem>>, %arg4: memref<128x128xbf16, #tpu.memory_space<vmem>>, %arg5: memref<1x128xf32, #tpu.memory_space<vmem>>, %arg6: memref<128x128xbf16, #tpu.memory_space<vmem>>, %arg7: memref<1x128xf32, #tpu.memory_space<vmem>>, %arg8: memref<128x128xbf16, #tpu.memory_space<vmem>>, %arg9: memref<1x128xf32, #tpu.memory_space<vmem>>, %arg10: memref<128x128xbf16, #tpu.memory_space<vmem>>, %arg11: memref<1x128xf32, #tpu.memory_space<vmem>>, %arg12: memref<512x128xbf16, #tpu.memory_space<vmem>>) attributes {dimension_semantics = [#tpu.dimension_semantics<parallel>], iteration_bounds = array<i64: 1>, scalar_prefetch = 0 : i64, scratch_operands = 0 : i64, tpu.core_type = #tpu.core_type<tc>, window_params = [{transform_indices = @transform_0, window_bounds = array<i64: 512, 128>}, {pipeline_mode = #tpu.pipeline_mode<synchronous>, transform_indices = @transform_1, window_bounds = array<i64: 128, 128>}, {pipeline_mode = #tpu.pipeline_mode<synchronous>, transform_indices = @transform_2, window_bounds = array<i64: 1, 128>}, {pipeline_mode = #tpu.pipeline_mode<synchronous>, transform_indices = @transform_3, window_bounds = array<i64: 128, 128>}, {pipeline_mode = #tpu.pipeline_mode<synchronous>, transform_indices = @transform_4, window_bounds = array<i64: 1, 128>}, {pipeline_mode = #tpu.pipeline_mode<synchronous>, transform_indices = @transform_5, window_bounds = array<i64: 128, 128>}, {pipeline_mode = #tpu.pipeline_mode<synchronous>, transform_indices = @transform_6, window_bounds = array<i64: 1, 128>}, {pipeline_mode = #tpu.pipeline_mode<synchronous>, transform_indices = @transform_7, window_bounds = array<i64: 128, 128>}, {pipeline_mode = #tpu.pipeline_mode<synchronous>, transform_indices = @transform_8, window_bounds = array<i64: 1, 128>}, {pipeline_mode = #tpu.pipeline_mode<synchronous>, transform_indices = @transform_9, window_bounds = array<i64: 128, 128>}, {pipeline_mode = #tpu.pipeline_mode<synchronous>, transform_indices = @transform_10, window_bounds = array<i64: 1, 128>}, {transform_indices = @transform_11, window_bounds = array<i64: 512, 128>}]} {
    %c0 = arith.constant 0 : index
    %c0_0 = arith.constant 0 : index
    %0 = vector.load %arg1[%c0, %c0_0] : memref<512x128xbf16, #tpu.memory_space<vmem>>, vector<512x128xbf16>
    %c0_1 = arith.constant 0 : index
    %c0_2 = arith.constant 0 : index
    %1 = vector.load %arg2[%c0_1, %c0_2] : memref<128x128xbf16, #tpu.memory_space<vmem>>, vector<128x128xbf16>
    %cst = arith.constant dense<0.000000e+00> : vector<512x128xf32>
    %2 = tpu.matmul %0, %1, %cst {dimension_numbers = #tpu.dot_dimension_numbers<[1], [0], [0], [1], [0, 0, 1, 1], [], []>} : vector<512x128xbf16>, vector<128x128xbf16>, vector<512x128xf32> -> vector<512x128xf32>
    %c0_3 = arith.constant 0 : index
    %c0_4 = arith.constant 0 : index
    %3 = vector.load %arg3[%c0_3, %c0_4] : memref<1x128xf32, #tpu.memory_space<vmem>>, vector<1x128xf32>
    %4 = vector.broadcast %3 : vector<1x128xf32> to vector<512x128xf32>
    %5 = arith.addf %2, %4 : vector<512x128xf32>
    %cst_5 = arith.constant 0.000000e+00 : f32
    %6 = vector.broadcast %cst_5 : f32 to vector<512x128xf32>
    %7 = arith.maximumf %5, %6 : vector<512x128xf32>
    %8 = arith.truncf %7 : vector<512x128xf32> to vector<512x128xbf16>
    %c0_6 = arith.constant 0 : index
    %c0_7 = arith.constant 0 : index
    %9 = vector.load %arg4[%c0_6, %c0_7] : memref<128x128xbf16, #tpu.memory_space<vmem>>, vector<128x128xbf16>
    %cst_8 = arith.constant dense<0.000000e+00> : vector<512x128xf32>
    %10 = tpu.matmul %8, %9, %cst_8 {dimension_numbers = #tpu.dot_dimension_numbers<[1], [0], [0], [1], [0, 0, 1, 1], [], []>} : vector<512x128xbf16>, vector<128x128xbf16>, vector<512x128xf32> -> vector<512x128xf32>
    %c0_9 = arith.constant 0 : index
    %c0_10 = arith.constant 0 : index
    %11 = vector.load %arg5[%c0_9, %c0_10] : memref<1x128xf32, #tpu.memory_space<vmem>>, vector<1x128xf32>
    %12 = vector.broadcast %11 : vector<1x128xf32> to vector<512x128xf32>
    %13 = arith.addf %10, %12 : vector<512x128xf32>
    %cst_11 = arith.constant 0.000000e+00 : f32
    %14 = vector.broadcast %cst_11 : f32 to vector<512x128xf32>
    %15 = arith.maximumf %13, %14 : vector<512x128xf32>
    %16 = arith.truncf %15 : vector<512x128xf32> to vector<512x128xbf16>
    %c0_12 = arith.constant 0 : index
    %c0_13 = arith.constant 0 : index
    %17 = vector.load %arg6[%c0_12, %c0_13] : memref<128x128xbf16, #tpu.memory_space<vmem>>, vector<128x128xbf16>
    %cst_14 = arith.constant dense<0.000000e+00> : vector<512x128xf32>
    %18 = tpu.matmul %16, %17, %cst_14 {dimension_numbers = #tpu.dot_dimension_numbers<[1], [0], [0], [1], [0, 0, 1, 1], [], []>} : vector<512x128xbf16>, vector<128x128xbf16>, vector<512x128xf32> -> vector<512x128xf32>
    %c0_15 = arith.constant 0 : index
    %c0_16 = arith.constant 0 : index
    %19 = vector.load %arg7[%c0_15, %c0_16] : memref<1x128xf32, #tpu.memory_space<vmem>>, vector<1x128xf32>
    %20 = vector.broadcast %19 : vector<1x128xf32> to vector<512x128xf32>
    %21 = arith.addf %18, %20 : vector<512x128xf32>
    %cst_17 = arith.constant 0.000000e+00 : f32
    %22 = vector.broadcast %cst_17 : f32 to vector<512x128xf32>
    %23 = arith.maximumf %21, %22 : vector<512x128xf32>
    %24 = arith.truncf %23 : vector<512x128xf32> to vector<512x128xbf16>
    %c0_18 = arith.constant 0 : index
    %c0_19 = arith.constant 0 : index
    %25 = vector.load %arg8[%c0_18, %c0_19] : memref<128x128xbf16, #tpu.memory_space<vmem>>, vector<128x128xbf16>
    %cst_20 = arith.constant dense<0.000000e+00> : vector<512x128xf32>
    %26 = tpu.matmul %24, %25, %cst_20 {dimension_numbers = #tpu.dot_dimension_numbers<[1], [0], [0], [1], [0, 0, 1, 1], [], []>} : vector<512x128xbf16>, vector<128x128xbf16>, vector<512x128xf32> -> vector<512x128xf32>
    %c0_21 = arith.constant 0 : index
    %c0_22 = arith.constant 0 : index
    %27 = vector.load %arg9[%c0_21, %c0_22] : memref<1x128xf32, #tpu.memory_space<vmem>>, vector<1x128xf32>
    %28 = vector.broadcast %27 : vector<1x128xf32> to vector<512x128xf32>
    %29 = arith.addf %26, %28 : vector<512x128xf32>
    %cst_23 = arith.constant 0.000000e+00 : f32
    %30 = vector.broadcast %cst_23 : f32 to vector<512x128xf32>
    %31 = arith.maximumf %29, %30 : vector<512x128xf32>
    %32 = arith.truncf %31 : vector<512x128xf32> to vector<512x128xbf16>
    %c0_24 = arith.constant 0 : index
    %c0_25 = arith.constant 0 : index
    %33 = vector.load %arg10[%c0_24, %c0_25] : memref<128x128xbf16, #tpu.memory_space<vmem>>, vector<128x128xbf16>
    %cst_26 = arith.constant dense<0.000000e+00> : vector<512x128xf32>
    %34 = tpu.matmul %32, %33, %cst_26 {dimension_numbers = #tpu.dot_dimension_numbers<[1], [0], [0], [1], [0, 0, 1, 1], [], []>} : vector<512x128xbf16>, vector<128x128xbf16>, vector<512x128xf32> -> vector<512x128xf32>
    %c0_27 = arith.constant 0 : index
    %c0_28 = arith.constant 0 : index
    %35 = vector.load %arg11[%c0_27, %c0_28] : memref<1x128xf32, #tpu.memory_space<vmem>>, vector<1x128xf32>
    %36 = vector.broadcast %35 : vector<1x128xf32> to vector<512x128xf32>
    %37 = arith.addf %34, %36 : vector<512x128xf32>
    %38 = math.absf %37 : vector<512x128xf32>
    %cst_29 = arith.constant 0.000000e+00 : f32
    %39 = vector.broadcast %cst_29 : f32 to vector<512x128xf32>
    %40 = arith.subf %39, %38 : vector<512x128xf32>
    %41 = math.exp %40 : vector<512x128xf32>
    %cst_30 = arith.constant 0.000000e+00 : f32
    %42 = vector.broadcast %cst_30 : f32 to vector<512x128xf32>
    %43 = arith.cmpf oge, %37, %42 : vector<512x128xf32>
    %cst_31 = arith.constant 1.000000e+00 : f32
    %44 = vector.broadcast %cst_31 : f32 to vector<512x128xf32>
    %45 = arith.addf %44, %41 : vector<512x128xf32>
    %cst_32 = arith.constant 1.000000e+00 : f32
    %46 = vector.broadcast %cst_32 : f32 to vector<512x128xf32>
    %47 = arith.divf %46, %45 : vector<512x128xf32>
    %cst_33 = arith.constant 1.000000e+00 : f32
    %48 = vector.broadcast %cst_33 : f32 to vector<512x128xf32>
    %49 = arith.addf %48, %41 : vector<512x128xf32>
    %50 = arith.divf %41, %49 : vector<512x128xf32>
    %51 = arith.select %43, %47, %50 : vector<512x128xi1>, vector<512x128xf32>
    %52 = arith.truncf %51 : vector<512x128xf32> to vector<512x128xbf16>
    %c0_34 = arith.constant 0 : index
    %c0_35 = arith.constant 0 : index
    %53 = vector.load %arg12[%c0_34, %c0_35] : memref<512x128xbf16, #tpu.memory_space<vmem>>, vector<512x128xbf16>
    tpu.vector_store %arg12[%c0_34, %c0_35], %52 {strides = array<i32>} : memref<512x128xbf16, #tpu.memory_space<vmem>>, vector<512x128xbf16>,
    return
  }
  func.func @transform_0(%arg0: i32) -> (i32, i32) {
    %c0_i32 = arith.constant 0 : i32
    %c0_i32_0 = arith.constant 0 : i32
    return %arg0, %c0_i32 : i32, i32
  }
  func.func @transform_1(%arg0: i32) -> (i32, i32) {
    %c0_i32 = arith.constant 0 : i32
    %c0_i32_0 = arith.constant 0 : i32
    %c0_i32_1 = arith.constant 0 : i32
    return %c0_i32, %c0_i32_0 : i32, i32
  }
  func.func @transform_2(%arg0: i32) -> (i32, i32) {
    %c0_i32 = arith.constant 0 : i32
    %c0_i32_0 = arith.constant 0 : i32
    %c0_i32_1 = arith.constant 0 : i32
    return %c0_i32, %c0_i32_0 : i32, i32
  }
  func.func @transform_3(%arg0: i32) -> (i32, i32) {
    %c0_i32 = arith.constant 0 : i32
    %c0_i32_0 = arith.constant 0 : i32
    %c0_i32_1 = arith.constant 0 : i32
    return %c0_i32, %c0_i32_0 : i32, i32
  }
  func.func @transform_4(%arg0: i32) -> (i32, i32) {
    %c0_i32 = arith.constant 0 : i32
    %c0_i32_0 = arith.constant 0 : i32
    %c0_i32_1 = arith.constant 0 : i32
    return %c0_i32, %c0_i32_0 : i32, i32
  }
  func.func @transform_5(%arg0: i32) -> (i32, i32) {
    %c0_i32 = arith.constant 0 : i32
    %c0_i32_0 = arith.constant 0 : i32
    %c0_i32_1 = arith.constant 0 : i32
    return %c0_i32, %c0_i32_0 : i32, i32
  }
  func.func @transform_6(%arg0: i32) -> (i32, i32) {
    %c0_i32 = arith.constant 0 : i32
    %c0_i32_0 = arith.constant 0 : i32
    %c0_i32_1 = arith.constant 0 : i32
    return %c0_i32, %c0_i32_0 : i32, i32
  }
  func.func @transform_7(%arg0: i32) -> (i32, i32) {
    %c0_i32 = arith.constant 0 : i32
    %c0_i32_0 = arith.constant 0 : i32
    %c0_i32_1 = arith.constant 0 : i32
    return %c0_i32, %c0_i32_0 : i32, i32
  }
  func.func @transform_8(%arg0: i32) -> (i32, i32) {
    %c0_i32 = arith.constant 0 : i32
    %c0_i32_0 = arith.constant 0 : i32
    %c0_i32_1 = arith.constant 0 : i32
    return %c0_i32, %c0_i32_0 : i32, i32
  }
  func.func @transform_9(%arg0: i32) -> (i32, i32) {
    %c0_i32 = arith.constant 0 : i32
    %c0_i32_0 = arith.constant 0 : i32
    %c0_i32_1 = arith.constant 0 : i32
    return %c0_i32, %c0_i32_0 : i32, i32
  }
  func.func @transform_10(%arg0: i32) -> (i32, i32) {
    %c0_i32 = arith.constant 0 : i32
    %c0_i32_0 = arith.constant 0 : i32
    %c0_i32_1 = arith.constant 0 : i32
    return %c0_i32, %c0_i32_0 : i32, i32
  }
  func.func @transform_11(%arg0: i32) -> (i32, i32) {
    %c0_i32 = arith.constant 0 : i32
    %c0_i32_0 = arith.constant 0 : i32
    return %arg0, %c0_i32 : i32, i32
  }
}

</mosaic_0001>

<bundles_post_ra>
// kernel: tpu_custom_call.1
= control target key start
LH: loop header
LB: loop body
LE: loop exit
PB: predicated region body
PF: predicated region fallthrough
CT: control target
= control target key end

     0   :  { %16 = vsyncpa [#allocation3], 0  ;;  %s6300_s0 = inlined_call_operand.hbm [shape: bf16[512,128], index: 0, kind: input, shape index: {}]   ;;  %s6301_s1 = inlined_call_operand.hbm [shape: bf16[128,128], index: 1, kind: input, shape index: {}]   ;;  %s6302_s2 = inlined_call_operand.vmem [shape: f32[1,128], index: 2, kind: input, shape index: {}]   ;;  %s6303_s3 = inlined_call_operand.hbm [shape: bf16[128,128], index: 3, kind: input, shape index: {}]   ;;  %s6304_s4 = inlined_call_operand.vmem [shape: f32[1,128], index: 4, kind: input, shape index: {}]   ;;  %s6305_s5 = inlined_call_operand.hbm [shape: bf16[128,128], index: 5, kind: input, shape index: {}]   ;;  %s6306_s6 = inlined_call_operand.vmem [shape: f32[1,128], index: 6, kind: input, shape index: {}]   ;;  %s6307_s7 = inlined_call_operand.hbm [shape: bf16[128,128], index: 7, kind: input, shape index: {}]   ;;  %s6308_s8 = inlined_call_operand.vmem [shape: f32[1,128], index: 8, kind: input, shape index: {}]   ;;  %s6309_s9 = inlined_call_operand.hbm [shape: bf16[128,128], index: 9, kind: input, shape index: {}]   ;;  %s6310_s10 = inlined_call_operand.vmem [shape: f32[1,128], index: 10, kind: input, shape index: {}]   ;;  %s6311_s11 = inlined_call_operand.hbm [shape: bf16[512,128], index: 11, kind: output, shape index: {}]  }
   0x1   :  { %17 = vsyncpa [#allocation6], 0 }
   0x2   :  { %18 = vsyncpa [#allocation9], 0 }
   0x3   :  { %19 = vsyncpa [#allocation12], 0 }
   0x4   :  { %20 = vsyncpa [#allocation4], 0  ;;  %s5056_s17 = smov [#allocation5]   ;;  %s5057_s19 = smov [#allocation8]  }
   0x5   :  { %s38_s18 = sshll.u32 %s5056_s17, 4  ;;  %s66_s20 = sshll.u32 %s5057_s19, 4  ;;  %s39_s18 = int_to_ptr.vmem [resolvable:$true] %s38_s18  ;;  %s5125_s20 = int_to_ptr.vmem [resolvable:$true] %s66_s20 }
   0x6   :  { %s4892_s23 = scalar_lea.hbm %s6301_s1, 1024 }
   0x7   :  { %p4893_p0 = scmp.ne.s32.totalorder %s6301_s1, %s4892_s23  ;;  %p4896_p1 = scmp.lt.u32.totalorder %s4892_s23, %s6301_s1 }
   0x9   :  { %p4898_p2 = pnand %p4896_p1, %p4893_p0 }
   0xb   :  { %4901 = shalt.err (!%p4898_p2)
}
   0xc   :  { %s4902_s28 = scalar_lea.vmem %s39_s18, 1024  ;;  %p4907_p4 = scmp.lt.s32.totalorder %s39_s18, %s39_s18 }
   0xd   :  { %p4903_p3 = scmp.ne.s32.totalorder %s39_s18, %s4902_s28  ;;  %p4908_p5 = scmp.lt.s32.totalorder %s4902_s28, %s4902_s28 }
   0xf   :  { %p4909_p6 = por %p4908_p5, %p4907_p4 }
  0x11   :  { %p4910_p7 = pnand %p4909_p6, %p4903_p3 }
  0x13   :  { %4913 = shalt.err (!%p4910_p7)
}
  0x14   :  { %s5058_s29 = smov 64   ;;  %s5059_s30 = smov 4  }
  0x15   :  { %44 = dma.hbm_to_vmem [thread:$0]  %s6301_s1, 1024, %s39_s18, [#allocation6], %s5058_s29, %s5058_s29, %s5059_s30  }
  0x16   :  { %s4914_s16 = scalar_lea.hbm %s6305_s5, 1024 }
  0x17   :  { %p4915_p8 = scmp.ne.s32.totalorder %s6305_s5, %s4914_s16  ;;  %p4918_p9 = scmp.lt.u32.totalorder %s4914_s16, %s6305_s5 }
  0x19   :  { %p4920_p10 = pnand %p4918_p9, %p4915_p8 }
  0x1b   :  { %4923 = shalt.err (!%p4920_p10)
}
  0x1c   :  { %s4924_s23 = scalar_lea.vmem %s5125_s20, 1024  ;;  %p4929_p12 = scmp.lt.s32.totalorder %s5125_s20, %s5125_s20 }
  0x1d   :  { %p4925_p11 = scmp.ne.s32.totalorder %s5125_s20, %s4924_s23  ;;  %p4930_p13 = scmp.lt.s32.totalorder %s4924_s23, %s4924_s23 }
  0x1f   :  { %p4931_p0 = por %p4930_p13, %p4929_p12 }
  0x21   :  { %p4932_p1 = pnand %p4931_p0, %p4925_p11 }
  0x23   :  { %4935 = shalt.err (!%p4932_p1)
}
  0x24   :  { %72 = dma.hbm_to_vmem [thread:$0]  %s6305_s5, 1024, %s5125_s20, [#allocation9], %s5058_s29, %s5058_s29, %s5059_s30  }
  0x25   :  { %s5060_s24 = smov [#allocation2]   ;;  %s5061_s26 = smov [#allocation7]  }
  0x26   :  { %s26_s25 = sshll.u32 %s5060_s24, 4  ;;  %s52_s27 = sshll.u32 %s5061_s26, 4  ;;  %s27_s25 = int_to_ptr.vmem [resolvable:$true] %s26_s25  ;;  %s5162_s27 = int_to_ptr.vmem [resolvable:$true] %s52_s27 }
  0x27   :  { %s4936_s13 = scalar_lea.hbm %s6300_s0, 4096 }
  0x28   :  { %p4937_p2 = scmp.ne.s32.totalorder %s6300_s0, %s4936_s13  ;;  %p4940_p3 = scmp.lt.u32.totalorder %s4936_s13, %s6300_s0 }
  0x2a   :  { %p4942_p4 = pnand %p4940_p3, %p4937_p2 }
  0x2c   :  { %4945 = shalt.err (!%p4942_p4)
}
  0x2d   :  { %s4946_s5 = scalar_lea.vmem %s27_s25, 4096  ;;  %p4951_p6 = scmp.lt.s32.totalorder %s27_s25, %s27_s25 }
  0x2e   :  { %p4947_p5 = scmp.ne.s32.totalorder %s27_s25, %s4946_s5  ;;  %p4952_p7 = scmp.lt.s32.totalorder %s4946_s5, %s4946_s5 }
  0x30   :  { %p4953_p8 = por %p4952_p7, %p4951_p6 }
  0x32   :  { %p4954_p9 = pnand %p4953_p8, %p4947_p5 }
  0x34   :  { %4957 = shalt.err (!%p4954_p9)
}
  0x35   :  { %32 = dma.hbm_to_vmem [thread:$0]  %s6300_s0, 4096, %s27_s25, [#allocation3], %s5058_s29, %s5058_s29, %s5059_s30  }
  0x36   :  { %s4958_s23 = scalar_lea.hbm %s6303_s3, 1024 }
  0x37   :  { %p4959_p10 = scmp.ne.s32.totalorder %s6303_s3, %s4958_s23  ;;  %p4962_p11 = scmp.lt.u32.totalorder %s4958_s23, %s6303_s3 }
  0x39   :  { %p4964_p12 = pnand %p4962_p11, %p4959_p10 }
  0x3b   :  { %4967 = shalt.err (!%p4964_p12)
}
  0x3c   :  { %s4968_s28 = scalar_lea.vmem %s5162_s27, 1024  ;;  %p4973_p0 = scmp.lt.s32.totalorder %s5162_s27, %s5162_s27 }
  0x3d   :  { %p4969_p13 = scmp.ne.s32.totalorder %s5162_s27, %s4968_s28  ;;  %p4974_p1 = scmp.lt.s32.totalorder %s4968_s28, %s4968_s28 }
  0x3f   :  { %p4975_p2 = por %p4974_p1, %p4973_p0 }
  0x41   :  { %p4976_p3 = pnand %p4975_p2, %p4969_p13 }
  0x43   :  { %4979 = shalt.err (!%p4976_p3)
}
  0x44   :  { %58 = dma.hbm_to_vmem [thread:$0]  %s6303_s3, 1024, %s5162_s27, [#allocation6], %s5058_s29, %s5058_s29, %s5059_s30  }
  0x45   :  { %s5062_s12 = smov [#allocation10]   ;;  %s5063_s14 = smov [#allocation11]  }
  0x46   :  { %s80_s13 = sshll.u32 %s5062_s12, 4  ;;  %s94_s15 = sshll.u32 %s5063_s14, 4  ;;  %s81_s13 = int_to_ptr.vmem [resolvable:$true] %s80_s13  ;;  %s5199_s15 = int_to_ptr.vmem [resolvable:$true] %s94_s15 }
  0x47   :  { %s4980_s5 = scalar_lea.hbm %s6307_s7, 1024 }
  0x48   :  { %p4981_p4 = scmp.ne.s32.totalorder %s6307_s7, %s4980_s5  ;;  %p4984_p5 = scmp.lt.u32.totalorder %s4980_s5, %s6307_s7 }
  0x4a   :  { %p4986_p6 = pnand %p4984_p5, %p4981_p4 }
  0x4c   :  { %4989 = shalt.err (!%p4986_p6)
}
  0x4d   :  { %s4990_s3 = scalar_lea.vmem %s81_s13, 1024  ;;  %p4995_p8 = scmp.lt.s32.totalorder %s81_s13, %s81_s13 }
  0x4e   :  { %p4991_p7 = scmp.ne.s32.totalorder %s81_s13, %s4990_s3  ;;  %p4996_p9 = scmp.lt.s32.totalorder %s4990_s3, %s4990_s3 }
  0x50   :  { %p4997_p10 = por %p4996_p9, %p4995_p8 }
  0x52   :  { %p4998_p11 = pnand %p4997_p10, %p4991_p7 }
  0x54   :  { %5001 = shalt.err (!%p4998_p11)
}
  0x55   :  { %86 = dma.hbm_to_vmem [thread:$0]  %s6307_s7, 1024, %s81_s13, [#allocation9], %s5058_s29, %s5058_s29, %s5059_s30  }
  0x56   :  { %s5002_s24 = scalar_lea.hbm %s6309_s9, 1024 }
  0x57   :  { %p5003_p12 = scmp.ne.s32.totalorder %s6309_s9, %s5002_s24  ;;  %p5006_p13 = scmp.lt.u32.totalorder %s5002_s24, %s6309_s9 }
  0x59   :  { %p5008_p0 = pnand %p5006_p13, %p5003_p12 }
  0x5b   :  { %5011 = shalt.err (!%p5008_p0)
}
  0x5c   :  { %s5012_s12 = scalar_lea.vmem %s5199_s15, 1024  ;;  %p5017_p2 = scmp.lt.s32.totalorder %s5199_s15, %s5199_s15 }
  0x5d   :  { %p5013_p1 = scmp.ne.s32.totalorder %s5199_s15, %s5012_s12  ;;  %p5018_p3 = scmp.lt.s32.totalorder %s5012_s12, %s5012_s12 }
  0x5f   :  { %p5019_p4 = por %p5018_p3, %p5017_p2 }
  0x61   :  { %p5020_p5 = pnand %p5019_p4, %p5013_p1 }
  0x63   :  { %5023 = shalt.err (!%p5020_p5)
}
  0x64   :  { %100 = dma.hbm_to_vmem [thread:$0]  %s6309_s9, 1024, %s5199_s15, [#allocation12], %s5058_s29, %s5058_s29, %s5059_s30  }
  0x65   :  { %5046 = dma.done.wait [#allocation3], 4096  }
  0x66   :  { %5047 = vsyncadd [#allocation3], 4294963200 }
  0x67   :  { %5048 = dma.done.wait [#allocation6], 2048  }
  0x68   :  { %5049 = vsyncadd [#allocation6], 4294965248 }
  0x69   :  { %5050 = dma.done.wait [#allocation9], 2048  }
  0x6a   :  { %5051 = vsyncadd [#allocation9], 4294965248 }
  0x6b   :  { %5052 = dma.done.wait [#allocation12], 1024  }
  0x6c   :  { %5053 = vsyncadd [#allocation12], 4294966272  ;;  %v4563_v0 = vld [vmem:[#allocation5] sm:$0xff]   ;;  %v4564_v1 = vld [vmem:[#allocation5 + $0x8] sm:$0xff]  }
  0x6d   :  { %4138 = vmatprep.subr.bf16.mxu0 %v4563_v0  ;;  %4538 = vmatprep.subr.bf16.mxu1 %v4563_v0  ;;  %v4565_v2 = vld [vmem:[#allocation5 + $0x10] sm:$0xff]   ;;  %v4566_v3 = vld [vmem:[#allocation5 + $0x18] sm:$0xff]   ;;  %v4571_v4 = vld [vmem:[#allocation2] sm:$0xff]  }
  0x6e   :  { %4139 = vmatpush3.bf16.msra.mxu0 %v4563_v0  ;;  %4546 = vmatpush3.bf16.msra.mxu1 %v4563_v0  ;;  %v4567_v5 = vld [vmem:[#allocation5 + $0x20] sm:$0xff]   ;;  %v4568_v6 = vld [vmem:[#allocation5 + $0x28] sm:$0xff]   ;;  %v4569_v7 = vld [vmem:[#allocation5 + $0x30] sm:$0xff]  }
  0x6f   :  { %4140 = vmatprep.subr.bf16.mxu0 %v4564_v1  ;;  %4539 = vmatprep.subr.bf16.mxu1 %v4564_v1  ;;  %v4570_v8 = vld [vmem:[#allocation5 + $0x38] sm:$0xff]   ;;  %v4587_v9 = vld [vmem:[#allocation2 + $0x80] sm:$0xff]   ;;  %v4572_v10 = vld [vmem:[#allocation2 + $0x8] sm:$0xff]  }
  0x70   :  { %4154 = vmatprep.mubr.bf16.mxu0 %v4571_v4  ;;  %4186 = vmatprep.mubr.bf16.mxu1 %v4587_v9  ;;  %v4573_v11 = vld [vmem:[#allocation2 + $0x10] sm:$0xff]   ;;  %v4588_v12 = vld [vmem:[#allocation2 + $0x88] sm:$0xff]   ;;  %v4574_v14 = vld [vmem:[#allocation2 + $0x18] sm:$0xff]  }
  0x71   :  { %v4589_v13 = vld [vmem:[#allocation2 + $0x90] sm:$0xff]   ;;  %v4575_v15 = vld [vmem:[#allocation2 + $0x20] sm:$0xff]   ;;  %v4590_v16 = vld [vmem:[#allocation2 + $0x98] sm:$0xff]  }
  0x72   :  { %4141 = vmatpush3.bf16.msra.mxu0 %v4564_v1  ;;  %4547 = vmatpush3.bf16.msra.mxu1 %v4564_v1  ;;  %v4591_v17 = vld [vmem:[#allocation2 + $0xa0] sm:$0xff]   ;;  %v4604_v19 = vld [vmem:[#allocation7 + $0x8] sm:$0xff]   ;;  %v4577_v22 = vld [vmem:[#allocation2 + $0x30] sm:$0xff]  }
  0x73   :  { %4142 = vmatprep.subr.bf16.mxu0 %v4565_v2  ;;  %4540 = vmatprep.subr.bf16.mxu1 %v4565_v2  ;;  %v4603_v18 = vld [vmem:[#allocation7] sm:$0xff]   ;;  %v4576_v20 = vld [vmem:[#allocation2 + $0x28] sm:$0xff]   ;;  %v4593_v23 = vld [vmem:[#allocation2 + $0xb0] sm:$0xff]  }
  0x74   :  { %v4592_v21 = vld [vmem:[#allocation2 + $0xa8] sm:$0xff]   ;;  %v4605_v24 = vld [vmem:[#allocation7 + $0x10] sm:$0xff]   ;;  %v4606_v25 = vld [vmem:[#allocation7 + $0x18] sm:$0xff]  }
  0x75   :  { %v4578_v26 = vld [vmem:[#allocation2 + $0x38] sm:$0xff]   ;;  %v4579_v28 = vld [vmem:[#allocation2 + $0x40] sm:$0xff]   ;;  %v4608_v31 = vld [vmem:[#allocation7 + $0x28] sm:$0xff]  }
  0x76   :  { %4143 = vmatpush3.bf16.msra.mxu0 %v4565_v2  ;;  %4548 = vmatpush3.bf16.msra.mxu1 %v4565_v2  ;;  %v4594_v27 = vld [vmem:[#allocation2 + $0xb8] sm:$0xff]   ;;  %v4595_v29 = vld [vmem:[#allocation2 + $0xc0] sm:$0xff]   ;;  %v4580_v32 = vld [vmem:[#allocation2 + $0x48] sm:$0xff]  }
  0x77   :  { %4144 = vmatprep.subr.bf16.mxu0 %v4566_v3  ;;  %4541 = vmatprep.subr.bf16.mxu1 %v4566_v3  ;;  %v4607_v30 = vld [vmem:[#allocation7 + $0x20] sm:$0xff]   ;;  %v4596_v33 = vld [vmem:[#allocation2 + $0xc8] sm:$0xff]   ;;  %v4581_v34 = vld [vmem:[#allocation2 + $0x50] sm:$0xff]  }
  0x78   :  { %v4597_v35 = vld [vmem:[#allocation2 + $0xd0] sm:$0xff]   ;;  %v4582_v37 = vld [vmem:[#allocation2 + $0x58] sm:$0xff]   ;;  %v4583_v39 = vld [vmem:[#allocation2 + $0x60] sm:$0xff]  }
  0x79   :  { %v4609_v36 = vld [vmem:[#allocation7 + $0x30] sm:$0xff]   ;;  %v4598_v38 = vld [vmem:[#allocation2 + $0xd8] sm:$0xff]   ;;  %v4599_v40 = vld [vmem:[#allocation2 + $0xe0] sm:$0xff]  }
  0x7a   :  { %4145 = vmatpush3.bf16.msra.mxu0 %v4566_v3  ;;  %4549 = vmatpush3.bf16.msra.mxu1 %v4566_v3  ;;  %v4584_v41 = vld [vmem:[#allocation2 + $0x68] sm:$0xff]   ;;  %v4585_v43 = vld [vmem:[#allocation2 + $0x70] sm:$0xff]   ;;  %v4586_v45 = vld [vmem:[#allocation2 + $0x78] sm:$0xff]  }
  0x7b   :  { %4146 = vmatprep.subr.bf16.mxu0 %v4567_v5  ;;  %4542 = vmatprep.subr.bf16.mxu1 %v4567_v5  ;;  %v4600_v42 = vld [vmem:[#allocation2 + $0xe8] sm:$0xff]   ;;  %v4601_v44 = vld [vmem:[#allocation2 + $0xf0] sm:$0xff]   ;;  %v4602_v46 = vld [vmem:[#allocation2 + $0xf8] sm:$0xff]  }
  0x7c   :  { %v4610_v47 = vld [vmem:[#allocation7 + $0x38] sm:$0xff]   ;;  %v5239_v48 = vld [vmem:[%s6302_s2] ss:$0 sm:$0xff]  ;;  %v4612_v1 = vld [vmem:[#allocation8 + $0x8] sm:$0xff]  }
  0x7d   :  { %v4611_v0 = vld [vmem:[#allocation8] sm:$0xff]  }
  0x7e   :  { %4147 = vmatpush3.bf16.msra.mxu0 %v4567_v5  ;;  %4550 = vmatpush3.bf16.msra.mxu1 %v4567_v5 }
  0x7f   :  { %4148 = vmatprep.subr.bf16.mxu0 %v4568_v6  ;;  %4543 = vmatprep.subr.bf16.mxu1 %v4568_v6 }
  0x82   :  { %4149 = vmatpush3.bf16.msra.mxu0 %v4568_v6  ;;  %4551 = vmatpush3.bf16.msra.mxu1 %v4568_v6 }
  0x83   :  { %4150 = vmatprep.subr.bf16.mxu0 %v4569_v7  ;;  %4544 = vmatprep.subr.bf16.mxu1 %v4569_v7 }
  0x86   :  { %4151 = vmatpush3.bf16.msra.mxu0 %v4569_v7  ;;  %4552 = vmatpush3.bf16.msra.mxu1 %v4569_v7 }
  0x87   :  { %4152 = vmatprep.subr.bf16.mxu0 %v4570_v8  ;;  %4545 = vmatprep.subr.bf16.mxu1 %v4570_v8 }
  0x8a   :  { %4153 = vmatpush3.bf16.msra.mxu0 %v4570_v8  ;;  %4553 = vmatpush3.bf16.msra.mxu1 %v4570_v8 }
  0x8b   :  { %4218 = vmatprep.subr.bf16.mxu1 %v4603_v18  ;;  %4298 = vmatprep.subr.bf16.mxu0 %v4611_v0 }
  0x8d   :  { %4155 = vmatmul.mubr.bf16.vlgmr.msra.gmra.mrb[0].mxu0 %v4572_v10  ;;  %4187 = vmatmul.mubr.bf16.vlgmr.msra.gmra.mrb[0].mxu1 %v4588_v12 }
  0x8e   :  { %4158 = vmatprep.mubr.bf16.mxu0 %v4573_v11  ;;  %4190 = vmatprep.mubr.bf16.mxu1 %v4589_v13  ;;  %v4613_v13 = vld [vmem:[#allocation8 + $0x10] sm:$0xff]  }
  0x8f   :  { %4219 = vmatpush3.bf16.msra.mxu1 %v4603_v18  ;;  %4299 = vmatpush3.bf16.msra.mxu0 %v4611_v0 }
  0x90   :  { %4220 = vmatprep.subr.bf16.mxu1 %v4604_v19  ;;  %4300 = vmatprep.subr.bf16.mxu0 %v4612_v1 }
  0x93   :  { %4221 = vmatpush3.bf16.msra.mxu1 %v4604_v19  ;;  %4301 = vmatpush3.bf16.msra.mxu0 %v4612_v1 }
  0x94   :  { %4222 = vmatprep.subr.bf16.mxu1 %v4605_v24  ;;  %4302 = vmatprep.subr.bf16.mxu0 %v4613_v13 }
  0x95   :  { %4159 = vmatmul.mubr.bf16.gmra.mrb[4].mxu0 %v4574_v14  ;;  %4191 = vmatmul.mubr.bf16.gmra.mrb[4].mxu1 %v4590_v16 }
  0x96   :  { %4162 = vmatprep.mubr.bf16.mxu0 %v4575_v15  ;;  %4194 = vmatprep.mubr.bf16.mxu1 %v4591_v17 }
  0x97   :  { %4223 = vmatpush3.bf16.msra.mxu1 %v4605_v24  ;;  %4303 = vmatpush3.bf16.msra.mxu0 %v4613_v13 }
  0x98   :  { %4224 = vmatprep.subr.bf16.mxu1 %v4606_v25 }
  0x9b   :  { %4225 = vmatpush3.bf16.msra.mxu1 %v4606_v25 }
  0x9c   :  { %4226 = vmatprep.subr.bf16.mxu1 %v4607_v30 }
  0x9d   :  { %4163 = vmatmul.mubr.bf16.gmra.mrb[8].mxu0 %v4576_v20  ;;  %4195 = vmatmul.mubr.bf16.gmra.mrb[8].mxu1 %v4592_v21 }
  0x9e   :  { %4166 = vmatprep.mubr.bf16.mxu0 %v4577_v22  ;;  %4198 = vmatprep.mubr.bf16.mxu1 %v4593_v23 }
  0x9f   :  { %4227 = vmatpush3.bf16.msra.mxu1 %v4607_v30 }
  0xa0   :  { %4228 = vmatprep.subr.bf16.mxu1 %v4608_v31 }
  0xa3   :  { %4229 = vmatpush3.bf16.msra.mxu1 %v4608_v31  ;;  %v4614_v31 = vld [vmem:[#allocation8 + $0x18] sm:$0xff]  }
  0xa4   :  { %4230 = vmatprep.subr.bf16.mxu1 %v4609_v36  ;;  %4304 = vmatprep.subr.bf16.mxu0 %v4614_v31 }
  0xa5   :  { %4167 = vmatmul.mubr.bf16.gmra.mrb[12].mxu0 %v4578_v26  ;;  %4199 = vmatmul.mubr.bf16.gmra.mrb[12].mxu1 %v4594_v27 }
  0xa6   :  { %4170 = vmatprep.mubr.bf16.mxu0 %v4579_v28  ;;  %4202 = vmatprep.mubr.bf16.mxu1 %v4595_v29 }
  0xa7   :  { %4231 = vmatpush3.bf16.msra.mxu1 %v4609_v36  ;;  %4305 = vmatpush3.bf16.msra.mxu0 %v4614_v31 }
  0xa8   :  { %4232 = vmatprep.subr.bf16.mxu1 %v4610_v47 }
  0xab   :  { %4233 = vmatpush3.bf16.msra.mxu1 %v4610_v47 }
  0xad   :  { %4171 = vmatmul.mubr.bf16.gmra.mrb[16].mxu0 %v4580_v32  ;;  %4203 = vmatmul.mubr.bf16.gmra.mrb[16].mxu1 %v4596_v33 }
  0xae   :  { %4174 = vmatprep.mubr.bf16.mxu0 %v4581_v34  ;;  %4206 = vmatprep.mubr.bf16.mxu1 %v4597_v35 }
  0xb5   :  { %4175 = vmatmul.mubr.bf16.gmra.mrb[20].mxu0 %v4582_v37  ;;  %4207 = vmatmul.mubr.bf16.gmra.mrb[20].mxu1 %v4598_v38 }
  0xb6   :  { %4178 = vmatprep.mubr.bf16.mxu0 %v4583_v39  ;;  %4210 = vmatprep.mubr.bf16.mxu1 %v4599_v40 }
  0xbd   :  { %4179 = vmatmul.mubr.bf16.gmra.mrb[24].mxu0 %v4584_v41  ;;  %4211 = vmatmul.mubr.bf16.gmra.mrb[24].mxu1 %v4600_v42 }
  0xbe   :  { %4182 = vmatprep.mubr.bf16.mxu0 %v4585_v43  ;;  %4214 = vmatprep.mubr.bf16.mxu1 %v4601_v44  ;;  %v4615_v43 = vld [vmem:[#allocation8 + $0x20] sm:$0xff]  }
  0xbf   :  { %4306 = vmatprep.subr.bf16.mxu0 %v4615_v43 }
  0xc0   :  { %4307 = vmatpush3.bf16.msra.mxu0 %v4615_v43 }
  0xc5   :  { %4183 = vmatmul.mubr.bf16.gmra.mrb[28].mxu0 %v4586_v45  ;;  %4215 = vmatmul.mubr.bf16.gmra.mrb[28].mxu1 %v4602_v46 }
 0x160   :  { %v4156_v49 = vpop.f32.mrb[0].mxu0  ;;  %v4188_v50 = vpop.f32.mrb[0].mxu1 }
 0x161   :  { %v492_v51 = vadd.f32 %v4156_v49, %v5239_v48  ;;  %v483_v52 = vpop.f32.mrb[1].mxu0  ;;  %v620_v53 = vadd.f32 %v4188_v50, %v5239_v48  ;;  %v611_v54 = vpop.f32.mrb[1].mxu1 }
 0x162   :  { %v484_v55 = vadd.f32 %v5239_v48, %v483_v52  ;;  %v4157_v56 = vpop.f32.mrb[2].mxu0  ;;  %v612_v57 = vadd.f32 %v5239_v48, %v611_v54  ;;  %v4189_v58 = vpop.f32.mrb[2].mxu1 }
 0x163   :  { %v495_v59 = vadd.f32 %v4157_v56, %v5239_v48  ;;  %v486_v60 = vpop.f32.mrb[3].mxu0  ;;  %v772_v61 = vmax.f32 %v620_v53, 0.0  ;;  %v623_v62 = vadd.f32 %v4189_v58, %v5239_v48  ;;  %v614_v63 = vpop.f32.mrb[3].mxu1  ;;  %v740_v5 = vmax.f32 %v492_v51, 0.0 }
 0x164   :  { %v487_v2 = vadd.f32 %v5239_v48, %v486_v60  ;;  %v770_v3 = vmax.f32 %v612_v57, 0.0  ;;  %v615_v4 = vadd.f32 %v5239_v48, %v614_v63  ;;  %v738_v8 = vmax.f32 %v484_v55, 0.0 }
 0x165   :  { %v741_v6 = vmax.f32 %v495_v59, 0.0  ;;  %v773_v7 = vmax.f32 %v623_v62, 0.0  ;;  %v4616_v62 = vld [vmem:[#allocation8 + $0x28] sm:$0xff]  }
 0x166   :  { %v739_v9 = vmax.f32 %v487_v2, 0.0  ;;  %v771_v10 = vmax.f32 %v615_v4, 0.0  ;;  %4308 = vmatprep.subr.bf16.mxu0 %v4616_v62 }
 0x167   :  { %v803_v11 = vpack.c.bf16 %v741_v6, %v740_v5  ;;  %v5249_v12 = vpack.c.bf16 %v773_v7, %v772_v61  ;;  %4309 = vmatpush3.bf16.msra.mxu0 %v4616_v62 }
 0x168   :  { %v802_v14 = vpack.c.bf16 %v739_v9, %v738_v8  ;;  %v4160_v15 = vpop.f32.mrb[4].mxu0  ;;  %v5251_v16 = vpack.c.bf16 %v771_v10, %v770_v3  ;;  %v4192_v17 = vpop.f32.mrb[4].mxu1  ;;  %v4617_v10 = vld [vmem:[#allocation8 + $0x30] sm:$0xff]  }
 0x169   :  { %v508_v18 = vadd.f32 %v4160_v15, %v5239_v48  ;;  %v499_v19 = vpop.f32.mrb[5].mxu0  ;;  %v636_v20 = vadd.f32 %v4192_v17, %v5239_v48  ;;  %v627_v21 = vpop.f32.mrb[5].mxu1  ;;  %4310 = vmatprep.subr.bf16.mxu0 %v4617_v10 }
 0x16a   :  { %v500_v22 = vadd.f32 %v5239_v48, %v499_v19  ;;  %v4161_v23 = vpop.f32.mrb[6].mxu0  ;;  %4234 = vmatprep.mubr.bf16.mxu1 %v802_v14  ;;  %v628_v24 = vadd.f32 %v5239_v48, %v627_v21  ;;  %v4193_v25 = vpop.f32.mrb[6].mxu1 }
 0x16b   :  { %v511_v26 = vadd.f32 %v4161_v23, %v5239_v48  ;;  %v502_v27 = vpop.f32.mrb[7].mxu0  ;;  %4235 = vmatmul.mubr.bf16.vlgmr.msra.gmra.mrb[32].mxu1 %v803_v11  ;;  %v776_v28 = vmax.f32 %v636_v20, 0.0  ;;  %v639_v29 = vadd.f32 %v4193_v25, %v5239_v48  ;;  %v630_v30 = vpop.f32.mrb[7].mxu1  ;;  %v744_v35 = vmax.f32 %v508_v18, 0.0  ;;  %4311 = vmatpush3.bf16.msra.mxu0 %v4617_v10 }
 0x16c   :  { %v503_v32 = vadd.f32 %v5239_v48, %v502_v27  ;;  %v774_v33 = vmax.f32 %v628_v24, 0.0  ;;  %v631_v34 = vadd.f32 %v5239_v48, %v630_v30  ;;  %v742_v38 = vmax.f32 %v500_v22, 0.0 }
 0x16d   :  { %v745_v36 = vmax.f32 %v511_v26, 0.0  ;;  %v777_v37 = vmax.f32 %v639_v29, 0.0 }
 0x16e   :  { %v743_v39 = vmax.f32 %v503_v32, 0.0  ;;  %v775_v40 = vmax.f32 %v631_v34, 0.0 }
 0x16f   :  { %v805_v41 = vpack.c.bf16 %v745_v36, %v744_v35  ;;  %v5261_v42 = vpack.c.bf16 %v777_v37, %v776_v28 }
 0x170   :  { %v804_v44 = vpack.c.bf16 %v743_v39, %v742_v38  ;;  %v4164_v45 = vpop.f32.mrb[8].mxu0  ;;  %v5263_v46 = vpack.c.bf16 %v775_v40, %v774_v33  ;;  %v4196_v47 = vpop.f32.mrb[8].mxu1 }
 0x171   :  { %v524_v49 = vadd.f32 %v4164_v45, %v5239_v48  ;;  %v515_v50 = vpop.f32.mrb[9].mxu0  ;;  %v652_v51 = vadd.f32 %v4196_v47, %v5239_v48  ;;  %v643_v52 = vpop.f32.mrb[9].mxu1 }
 0x172   :  { %v516_v53 = vadd.f32 %v5239_v48, %v515_v50  ;;  %v4165_v54 = vpop.f32.mrb[10].mxu0  ;;  %4238 = vmatprep.mubr.bf16.mxu1 %v804_v44  ;;  %v644_v55 = vadd.f32 %v5239_v48, %v643_v52  ;;  %v4197_v56 = vpop.f32.mrb[10].mxu1 }
 0x173   :  { %v527_v57 = vadd.f32 %v4165_v54, %v5239_v48  ;;  %v518_v58 = vpop.f32.mrb[11].mxu0  ;;  %4239 = vmatmul.mubr.bf16.gmra.mrb[36].mxu1 %v805_v41  ;;  %v780_v59 = vmax.f32 %v652_v51, 0.0  ;;  %v655_v60 = vadd.f32 %v4197_v56, %v5239_v48  ;;  %v646_v61 = vpop.f32.mrb[11].mxu1  ;;  %v748_v2 = vmax.f32 %v524_v49, 0.0 }
 0x174   :  { %v519_v63 = vadd.f32 %v5239_v48, %v518_v58  ;;  %v778_v0 = vmax.f32 %v644_v55, 0.0  ;;  %v647_v1 = vadd.f32 %v5239_v48, %v646_v61  ;;  %v746_v5 = vmax.f32 %v516_v53, 0.0 }
 0x175   :  { %v749_v3 = vmax.f32 %v527_v57, 0.0  ;;  %v781_v4 = vmax.f32 %v655_v60, 0.0 }
 0x176   :  { %v747_v6 = vmax.f32 %v519_v63, 0.0  ;;  %v779_v7 = vmax.f32 %v647_v1, 0.0 }
 0x177   :  { %v807_v8 = vpack.c.bf16 %v749_v3, %v748_v2  ;;  %v5273_v9 = vpack.c.bf16 %v781_v4, %v780_v59 }
 0x178   :  { %v806_v11 = vpack.c.bf16 %v747_v6, %v746_v5  ;;  %v4168_v13 = vpop.f32.mrb[12].mxu0  ;;  %v5275_v14 = vpack.c.bf16 %v779_v7, %v778_v0  ;;  %v4200_v15 = vpop.f32.mrb[12].mxu1 }
 0x179   :  { %v540_v17 = vadd.f32 %v4168_v13, %v5239_v48  ;;  %v531_v18 = vpop.f32.mrb[13].mxu0  ;;  %v668_v19 = vadd.f32 %v4200_v15, %v5239_v48  ;;  %v659_v20 = vpop.f32.mrb[13].mxu1 }
 0x17a   :  { %v532_v21 = vadd.f32 %v5239_v48, %v531_v18  ;;  %v4169_v22 = vpop.f32.mrb[14].mxu0  ;;  %4242 = vmatprep.mubr.bf16.mxu1 %v806_v11  ;;  %v660_v23 = vadd.f32 %v5239_v48, %v659_v20  ;;  %v4201_v24 = vpop.f32.mrb[14].mxu1 }
 0x17b   :  { %v543_v25 = vadd.f32 %v4169_v22, %v5239_v48  ;;  %v534_v26 = vpop.f32.mrb[15].mxu0  ;;  %4243 = vmatmul.mubr.bf16.gmra.mrb[40].mxu1 %v807_v8  ;;  %v784_v27 = vmax.f32 %v668_v19, 0.0  ;;  %v671_v28 = vadd.f32 %v4201_v24, %v5239_v48  ;;  %v662_v29 = vpop.f32.mrb[15].mxu1  ;;  %v752_v33 = vmax.f32 %v540_v17, 0.0 }
 0x17c   :  { %v535_v30 = vadd.f32 %v5239_v48, %v534_v26  ;;  %v782_v31 = vmax.f32 %v660_v23, 0.0  ;;  %v663_v32 = vadd.f32 %v5239_v48, %v662_v29  ;;  %v750_v36 = vmax.f32 %v532_v21, 0.0 }
 0x17d   :  { %v753_v34 = vmax.f32 %v543_v25, 0.0  ;;  %v785_v35 = vmax.f32 %v671_v28, 0.0 }
 0x17e   :  { %v751_v37 = vmax.f32 %v535_v30, 0.0  ;;  %v783_v38 = vmax.f32 %v663_v32, 0.0 }
 0x17f   :  { %v809_v39 = vpack.c.bf16 %v753_v34, %v752_v33  ;;  %v5285_v40 = vpack.c.bf16 %v785_v35, %v784_v27 }
 0x180   :  { %v808_v41 = vpack.c.bf16 %v751_v37, %v750_v36  ;;  %v4172_v43 = vpop.f32.mrb[16].mxu0  ;;  %v5287_v44 = vpack.c.bf16 %v783_v38, %v782_v31  ;;  %v4204_v45 = vpop.f32.mrb[16].mxu1 }
 0x181   :  { %v556_v47 = vadd.f32 %v4172_v43, %v5239_v48  ;;  %v547_v49 = vpop.f32.mrb[17].mxu0  ;;  %v684_v50 = vadd.f32 %v4204_v45, %v5239_v48  ;;  %v675_v51 = vpop.f32.mrb[17].mxu1 }
 0x182   :  { %v548_v52 = vadd.f32 %v5239_v48, %v547_v49  ;;  %v4173_v53 = vpop.f32.mrb[18].mxu0  ;;  %4246 = vmatprep.mubr.bf16.mxu1 %v808_v41  ;;  %v676_v54 = vadd.f32 %v5239_v48, %v675_v51  ;;  %v4205_v55 = vpop.f32.mrb[18].mxu1 }
 0x183   :  { %v559_v56 = vadd.f32 %v4173_v53, %v5239_v48  ;;  %v550_v57 = vpop.f32.mrb[19].mxu0  ;;  %4247 = vmatmul.mubr.bf16.gmra.mrb[44].mxu1 %v809_v39  ;;  %v788_v58 = vmax.f32 %v684_v50, 0.0  ;;  %v687_v59 = vadd.f32 %v4205_v55, %v5239_v48  ;;  %v678_v60 = vpop.f32.mrb[19].mxu1  ;;  %v756_v0 = vmax.f32 %v556_v47, 0.0 }
 0x184   :  { %v551_v61 = vadd.f32 %v5239_v48, %v550_v57  ;;  %v786_v62 = vmax.f32 %v676_v54, 0.0  ;;  %v679_v63 = vadd.f32 %v5239_v48, %v678_v60  ;;  %v754_v3 = vmax.f32 %v548_v52, 0.0 }
 0x185   :  { %v757_v1 = vmax.f32 %v559_v56, 0.0  ;;  %v789_v2 = vmax.f32 %v687_v59, 0.0 }
 0x186   :  { %v755_v4 = vmax.f32 %v551_v61, 0.0  ;;  %v787_v5 = vmax.f32 %v679_v63, 0.0 }
 0x187   :  { %v811_v6 = vpack.c.bf16 %v757_v1, %v756_v0  ;;  %v5297_v7 = vpack.c.bf16 %v789_v2, %v788_v58 }
 0x188   :  { %v810_v8 = vpack.c.bf16 %v755_v4, %v754_v3  ;;  %v4176_v10 = vpop.f32.mrb[20].mxu0  ;;  %v5299_v11 = vpack.c.bf16 %v787_v5, %v786_v62  ;;  %v4208_v13 = vpop.f32.mrb[20].mxu1 }
 0x189   :  { %v572_v15 = vadd.f32 %v4176_v10, %v5239_v48  ;;  %v563_v17 = vpop.f32.mrb[21].mxu0  ;;  %v700_v18 = vadd.f32 %v4208_v13, %v5239_v48  ;;  %v691_v19 = vpop.f32.mrb[21].mxu1 }
 0x18a   :  { %v564_v20 = vadd.f32 %v5239_v48, %v563_v17  ;;  %v4177_v21 = vpop.f32.mrb[22].mxu0  ;;  %4250 = vmatprep.mubr.bf16.mxu1 %v810_v8  ;;  %v692_v22 = vadd.f32 %v5239_v48, %v691_v19  ;;  %v4209_v23 = vpop.f32.mrb[22].mxu1 }
 0x18b   :  { %v575_v24 = vadd.f32 %v4177_v21, %v5239_v48  ;;  %v566_v25 = vpop.f32.mrb[23].mxu0  ;;  %4251 = vmatmul.mubr.bf16.gmra.mrb[48].mxu1 %v811_v6  ;;  %v792_v26 = vmax.f32 %v700_v18, 0.0  ;;  %v703_v27 = vadd.f32 %v4209_v23, %v5239_v48  ;;  %v694_v28 = vpop.f32.mrb[23].mxu1  ;;  %v760_v32 = vmax.f32 %v572_v15, 0.0 }
 0x18c   :  { %v567_v29 = vadd.f32 %v5239_v48, %v566_v25  ;;  %v790_v30 = vmax.f32 %v692_v22, 0.0  ;;  %v695_v31 = vadd.f32 %v5239_v48, %v694_v28  ;;  %v758_v35 = vmax.f32 %v564_v20, 0.0 }
 0x18d   :  { %v761_v33 = vmax.f32 %v575_v24, 0.0  ;;  %v793_v34 = vmax.f32 %v703_v27, 0.0 }
 0x18e   :  { %v759_v36 = vmax.f32 %v567_v29, 0.0  ;;  %v791_v37 = vmax.f32 %v695_v31, 0.0 }
 0x18f   :  { %v813_v38 = vpack.c.bf16 %v761_v33, %v760_v32  ;;  %v5309_v39 = vpack.c.bf16 %v793_v34, %v792_v26 }
 0x190   :  { %v812_v41 = vpack.c.bf16 %v759_v36, %v758_v35  ;;  %v4180_v43 = vpop.f32.mrb[24].mxu0  ;;  %v5311_v45 = vpack.c.bf16 %v791_v37, %v790_v30  ;;  %v4212_v47 = vpop.f32.mrb[24].mxu1 }
 0x191   :  { %v588_v49 = vadd.f32 %v4180_v43, %v5239_v48  ;;  %v579_v50 = vpop.f32.mrb[25].mxu0  ;;  %v716_v51 = vadd.f32 %v4212_v47, %v5239_v48  ;;  %v707_v52 = vpop.f32.mrb[25].mxu1 }
 0x192   :  { %v580_v53 = vadd.f32 %v5239_v48, %v579_v50  ;;  %v4181_v54 = vpop.f32.mrb[26].mxu0  ;;  %4254 = vmatprep.mubr.bf16.mxu1 %v812_v41  ;;  %v708_v55 = vadd.f32 %v5239_v48, %v707_v52  ;;  %v4213_v56 = vpop.f32.mrb[26].mxu1 }
 0x193   :  { %v591_v57 = vadd.f32 %v4181_v54, %v5239_v48  ;;  %v582_v58 = vpop.f32.mrb[27].mxu0  ;;  %4255 = vmatmul.mubr.bf16.gmra.mrb[52].mxu1 %v813_v38  ;;  %v796_v59 = vmax.f32 %v716_v51, 0.0  ;;  %v719_v60 = vadd.f32 %v4213_v56, %v5239_v48  ;;  %v710_v61 = vpop.f32.mrb[27].mxu1  ;;  %v764_v1 = vmax.f32 %v588_v49, 0.0 }
 0x194   :  { %v583_v62 = vadd.f32 %v5239_v48, %v582_v58  ;;  %v794_v63 = vmax.f32 %v708_v55, 0.0  ;;  %v711_v0 = vadd.f32 %v5239_v48, %v710_v61  ;;  %v762_v4 = vmax.f32 %v580_v53, 0.0  ;;  %v4623_v58 = vld [vmem:[#allocation10 + $0x20] sm:$0xff]  }
 0x195   :  { %v765_v2 = vmax.f32 %v591_v57, 0.0  ;;  %v797_v3 = vmax.f32 %v719_v60, 0.0 }
 0x196   :  { %v763_v5 = vmax.f32 %v583_v62, 0.0  ;;  %v795_v6 = vmax.f32 %v711_v0, 0.0 }
 0x197   :  { %v815_v8 = vpack.c.bf16 %v765_v2, %v764_v1  ;;  %v831_v10 = vpack.c.bf16 %v797_v3, %v796_v59  ;;  %v4624_v3 = vld [vmem:[#allocation10 + $0x28] sm:$0xff]  }
 0x198   :  { %v814_v13 = vpack.c.bf16 %v763_v5, %v762_v4  ;;  %v4184_v15 = vpop.f32.mrb[28].mxu0  ;;  %v830_v17 = vpack.c.bf16 %v795_v6, %v794_v63  ;;  %v4216_v18 = vpop.f32.mrb[28].mxu1 }
 0x199   :  { %v604_v19 = vadd.f32 %v4184_v15, %v5239_v48  ;;  %v595_v20 = vpop.f32.mrb[29].mxu0  ;;  %v732_v21 = vadd.f32 %v4216_v18, %v5239_v48  ;;  %v723_v22 = vpop.f32.mrb[29].mxu1  ;;  %v4625_v15 = vld [vmem:[#allocation10 + $0x30] sm:$0xff]  }
 0x19a   :  { %v596_v23 = vadd.f32 %v5239_v48, %v595_v20  ;;  %v4185_v24 = vpop.f32.mrb[30].mxu0  ;;  %4258 = vmatprep.mubr.bf16.mxu1 %v814_v13  ;;  %v724_v25 = vadd.f32 %v5239_v48, %v723_v22  ;;  %v4217_v26 = vpop.f32.mrb[30].mxu1 }
 0x19b   :  { %v607_v27 = vadd.f32 %v4185_v24, %v5239_v48  ;;  %v598_v28 = vpop.f32.mrb[31].mxu0  ;;  %4259 = vmatmul.mubr.bf16.gmra.mrb[56].mxu1 %v815_v8  ;;  %v800_v29 = vmax.f32 %v732_v21, 0.0  ;;  %v735_v30 = vadd.f32 %v4217_v26, %v5239_v48  ;;  %v726_v31 = vpop.f32.mrb[31].mxu1  ;;  %v768_v35 = vmax.f32 %v604_v19, 0.0 }
 0x19c   :  { %v599_v32 = vadd.f32 %v5239_v48, %v598_v28  ;;  %v798_v33 = vmax.f32 %v724_v25, 0.0  ;;  %v727_v34 = vadd.f32 %v5239_v48, %v726_v31  ;;  %v766_v38 = vmax.f32 %v596_v23, 0.0  ;;  %v4618_v48 = vld [vmem:[#allocation8 + $0x38] sm:$0xff]  }
 0x19d   :  { %v769_v36 = vmax.f32 %v607_v27, 0.0  ;;  %v801_v37 = vmax.f32 %v735_v30, 0.0  ;;  %4312 = vmatprep.subr.bf16.mxu0 %v4618_v48  ;;  %v4626_v25 = vld [vmem:[#allocation10 + $0x38] sm:$0xff]  }
 0x19e   :  { %v767_v41 = vmax.f32 %v599_v32, 0.0  ;;  %v799_v43 = vmax.f32 %v727_v34, 0.0  ;;  %4313 = vmatpush3.bf16.msra.mxu0 %v4618_v48 }
 0x19f   :  { %v817_v47 = vpack.c.bf16 %v769_v36, %v768_v35  ;;  %v833_v49 = vpack.c.bf16 %v801_v37, %v800_v29 }
 0x1a0   :  { %v816_v50 = vpack.c.bf16 %v767_v41, %v766_v38  ;;  %v832_v51 = vpack.c.bf16 %v799_v43, %v798_v33 }
 0x1a2   :  { %4262 = vmatprep.mubr.bf16.mxu1 %v816_v50 }
 0x1a3   :  { %4263 = vmatmul.mubr.bf16.gmra.mrb[60].mxu1 %v817_v47 }
 0x1a4   :  { %4266 = vmatprep.mubr.bf16.mxu1 %v5251_v16  ;;  %v4620_v16 = vld [vmem:[#allocation10 + $0x8] sm:$0xff]  }
 0x1ab   :  { %4267 = vmatmul.mubr.bf16.gmra.mrb[64].mxu1 %v5249_v12  ;;  %v4619_v12 = vld [vmem:[#allocation10] sm:$0xff]  }
 0x1ac   :  { %4270 = vmatprep.mubr.bf16.mxu1 %v5263_v46  ;;  %4378 = vmatprep.subr.bf16.mxu1 %v4619_v12 }
 0x1ad   :  { %4379 = vmatpush3.bf16.msra.mxu1 %v4619_v12 }
 0x1ae   :  { %4380 = vmatprep.subr.bf16.mxu1 %v4620_v16 }
 0x1b1   :  { %4381 = vmatpush3.bf16.msra.mxu1 %v4620_v16 }
 0x1b3   :  { %4271 = vmatmul.mubr.bf16.gmra.mrb[68].mxu1 %v5261_v42  ;;  %v5344_v42 = vld [vmem:[%s6304_s4] ss:$0 sm:$0xff] }
 0x1b4   :  { %4274 = vmatprep.mubr.bf16.mxu1 %v5275_v14 }
 0x1bb   :  { %4275 = vmatmul.mubr.bf16.gmra.mrb[72].mxu1 %v5273_v9 }
 0x1bc   :  { %4278 = vmatprep.mubr.bf16.mxu1 %v5287_v44 }
 0x1c3   :  { %4279 = vmatmul.mubr.bf16.gmra.mrb[76].mxu1 %v5285_v40 }
 0x1c4   :  { %4282 = vmatprep.mubr.bf16.mxu1 %v5299_v11 }
 0x1cb   :  { %4283 = vmatmul.mubr.bf16.gmra.mrb[80].mxu1 %v5297_v7 }
 0x1cc   :  { %4286 = vmatprep.mubr.bf16.mxu1 %v5311_v45  ;;  %v4622_v45 = vld [vmem:[#allocation10 + $0x18] sm:$0xff]  }
 0x1d3   :  { %4287 = vmatmul.mubr.bf16.gmra.mrb[84].mxu1 %v5309_v39  ;;  %v4621_v39 = vld [vmem:[#allocation10 + $0x10] sm:$0xff]  }
 0x1d4   :  { %4290 = vmatprep.mubr.bf16.mxu1 %v830_v17  ;;  %4382 = vmatprep.subr.bf16.mxu1 %v4621_v39 }
 0x1d5   :  { %4383 = vmatpush3.bf16.msra.mxu1 %v4621_v39 }
 0x1d6   :  { %4384 = vmatprep.subr.bf16.mxu1 %v4622_v45 }
 0x1d9   :  { %4385 = vmatpush3.bf16.msra.mxu1 %v4622_v45 }
 0x1da   :  { %4386 = vmatprep.subr.bf16.mxu1 %v4623_v58 }
 0x1db   :  { %4291 = vmatmul.mubr.bf16.gmra.mrb[88].mxu1 %v831_v10 }
 0x1dc   :  { %4294 = vmatprep.mubr.bf16.mxu1 %v832_v51 }
 0x1dd   :  { %4387 = vmatpush3.bf16.msra.mxu1 %v4623_v58 }
 0x1de   :  { %4388 = vmatprep.subr.bf16.mxu1 %v4624_v3 }
 0x1e1   :  { %4389 = vmatpush3.bf16.msra.mxu1 %v4624_v3 }
 0x1e2   :  { %4390 = vmatprep.subr.bf16.mxu1 %v4625_v15 }
 0x1e3   :  { %4295 = vmatmul.mubr.bf16.gmra.mrb[92].mxu1 %v833_v49 }
 0x1e5   :  { %4391 = vmatpush3.bf16.msra.mxu1 %v4625_v15 }
 0x1e6   :  { %4392 = vmatprep.subr.bf16.mxu1 %v4626_v25 }
 0x1e9   :  { %4393 = vmatpush3.bf16.msra.mxu1 %v4626_v25 }
 0x23e   :  { %v4236_v46 = vpop.f32.mrb[32].mxu1 }
 0x23f   :  { %v948_v9 = vadd.f32 %v4236_v46, %v5344_v42  ;;  %v939_v14 = vpop.f32.mrb[33].mxu1 }
 0x240   :  { %v940_v40 = vadd.f32 %v5344_v42, %v939_v14  ;;  %v4237_v44 = vpop.f32.mrb[34].mxu1 }
 0x241   :  { %v951_v7 = vadd.f32 %v4237_v44, %v5344_v42  ;;  %v942_v11 = vpop.f32.mrb[35].mxu1  ;;  %v1196_v53 = vmax.f32 %v948_v9, 0.0 }
 0x242   :  { %v943_v52 = vadd.f32 %v5344_v42, %v942_v11  ;;  %v1194_v55 = vmax.f32 %v940_v40, 0.0 }
 0x243   :  { %v1197_v54 = vmax.f32 %v951_v7, 0.0 }
 0x244   :  { %v1195_v56 = vmax.f32 %v943_v52, 0.0 }
 0x245   :  { %v1259_v57 = vpack.c.bf16 %v1197_v54, %v1196_v53 }
 0x246   :  { %v1258_v59 = vpack.c.bf16 %v1195_v56, %v1194_v55  ;;  %v4240_v60 = vpop.f32.mrb[36].mxu1 }
 0x247   :  { %v964_v61 = vadd.f32 %v4240_v60, %v5344_v42  ;;  %v955_v62 = vpop.f32.mrb[37].mxu1 }
 0x248   :  { %v956_v63 = vadd.f32 %v5344_v42, %v955_v62  ;;  %v4241_v0 = vpop.f32.mrb[38].mxu1  ;;  %4314 = vmatprep.mubr.bf16.mxu0 %v1258_v59 }
 0x249   :  { %v967_v1 = vadd.f32 %v4241_v0, %v5344_v42  ;;  %v958_v2 = vpop.f32.mrb[39].mxu1  ;;  %4315 = vmatmul.mubr.bf16.vlgmr.msra.gmra.mrb[32].mxu0 %v1259_v57  ;;  %v1200_v5 = vmax.f32 %v964_v61, 0.0 }
 0x24a   :  { %v959_v4 = vadd.f32 %v5344_v42, %v958_v2  ;;  %v1198_v8 = vmax.f32 %v956_v63, 0.0 }
 0x24b   :  { %v1201_v6 = vmax.f32 %v967_v1, 0.0 }
 0x24c   :  { %v1199_v10 = vmax.f32 %v959_v4, 0.0 }
 0x24d   :  { %v1261_v13 = vpack.c.bf16 %v1201_v6, %v1200_v5 }
 0x24e   :  { %v1260_v17 = vpack.c.bf16 %v1199_v10, %v1198_v8  ;;  %v4244_v18 = vpop.f32.mrb[40].mxu1 }
 0x24f   :  { %v980_v19 = vadd.f32 %v4244_v18, %v5344_v42  ;;  %v971_v20 = vpop.f32.mrb[41].mxu1 }
 0x250   :  { %v972_v21 = vadd.f32 %v5344_v42, %v971_v20  ;;  %v4245_v22 = vpop.f32.mrb[42].mxu1  ;;  %4318 = vmatprep.mubr.bf16.mxu0 %v1260_v17 }
 0x251   :  { %v983_v23 = vadd.f32 %v4245_v22, %v5344_v42  ;;  %v974_v24 = vpop.f32.mrb[43].mxu1  ;;  %4319 = vmatmul.mubr.bf16.gmra.mrb[36].mxu0 %v1261_v13  ;;  %v1204_v27 = vmax.f32 %v980_v19, 0.0 }
 0x252   :  { %v975_v26 = vadd.f32 %v5344_v42, %v974_v24  ;;  %v1202_v29 = vmax.f32 %v972_v21, 0.0 }
 0x253   :  { %v1205_v28 = vmax.f32 %v983_v23, 0.0 }
 0x254   :  { %v1203_v30 = vmax.f32 %v975_v26, 0.0 }
 0x255   :  { %v1263_v31 = vpack.c.bf16 %v1205_v28, %v1204_v27 }
 0x256   :  { %v1262_v32 = vpack.c.bf16 %v1203_v30, %v1202_v29  ;;  %v4248_v33 = vpop.f32.mrb[44].mxu1 }
 0x257   :  { %v996_v34 = vadd.f32 %v4248_v33, %v5344_v42  ;;  %v987_v35 = vpop.f32.mrb[45].mxu1 }
 0x258   :  { %v988_v36 = vadd.f32 %v5344_v42, %v987_v35  ;;  %v4249_v37 = vpop.f32.mrb[46].mxu1  ;;  %4322 = vmatprep.mubr.bf16.mxu0 %v1262_v32 }
 0x259   :  { %v999_v38 = vadd.f32 %v4249_v37, %v5344_v42  ;;  %v990_v41 = vpop.f32.mrb[47].mxu1  ;;  %4323 = vmatmul.mubr.bf16.gmra.mrb[40].mxu0 %v1263_v31  ;;  %v1208_v47 = vmax.f32 %v996_v34, 0.0 }
 0x25a   :  { %v991_v43 = vadd.f32 %v5344_v42, %v990_v41  ;;  %v1206_v50 = vmax.f32 %v988_v36, 0.0 }
 0x25b   :  { %v1209_v49 = vmax.f32 %v999_v38, 0.0 }
 0x25c   :  { %v1207_v51 = vmax.f32 %v991_v43, 0.0 }
 0x25d   :  { %v1265_v48 = vpack.c.bf16 %v1209_v49, %v1208_v47 }
 0x25e   :  { %v1264_v12 = vpack.c.bf16 %v1207_v51, %v1206_v50  ;;  %v4252_v16 = vpop.f32.mrb[48].mxu1 }
 0x25f   :  { %v1012_v46 = vadd.f32 %v4252_v16, %v5344_v42  ;;  %v1003_v9 = vpop.f32.mrb[49].mxu1 }
 0x260   :  { %v1004_v14 = vadd.f32 %v5344_v42, %v1003_v9  ;;  %v4253_v40 = vpop.f32.mrb[50].mxu1  ;;  %4326 = vmatprep.mubr.bf16.mxu0 %v1264_v12 }
 0x261   :  { %v1015_v44 = vadd.f32 %v4253_v40, %v5344_v42  ;;  %v1006_v7 = vpop.f32.mrb[51].mxu1  ;;  %4327 = vmatmul.mubr.bf16.gmra.mrb[44].mxu0 %v1265_v48  ;;  %v1212_v39 = vmax.f32 %v1012_v46, 0.0 }
 0x262   :  { %v1007_v11 = vadd.f32 %v5344_v42, %v1006_v7  ;;  %v1210_v52 = vmax.f32 %v1004_v14, 0.0 }
 0x263   :  { %v1213_v45 = vmax.f32 %v1015_v44, 0.0 }
 0x264   :  { %v1211_v53 = vmax.f32 %v1007_v11, 0.0 }
 0x265   :  { %v1267_v54 = vpack.c.bf16 %v1213_v45, %v1212_v39 }
 0x266   :  { %v1266_v55 = vpack.c.bf16 %v1211_v53, %v1210_v52  ;;  %v4256_v56 = vpop.f32.mrb[52].mxu1 }
 0x267   :  { %v1028_v57 = vadd.f32 %v4256_v56, %v5344_v42  ;;  %v1019_v58 = vpop.f32.mrb[53].mxu1 }
 0x268   :  { %v1020_v59 = vadd.f32 %v5344_v42, %v1019_v58  ;;  %v4257_v60 = vpop.f32.mrb[54].mxu1  ;;  %4330 = vmatprep.mubr.bf16.mxu0 %v1266_v55 }
 0x269   :  { %v1031_v61 = vadd.f32 %v4257_v60, %v5344_v42  ;;  %v1022_v62 = vpop.f32.mrb[55].mxu1  ;;  %4331 = vmatmul.mubr.bf16.gmra.mrb[48].mxu0 %v1267_v54  ;;  %v1216_v0 = vmax.f32 %v1028_v57, 0.0 }
 0x26a   :  { %v1023_v63 = vadd.f32 %v5344_v42, %v1022_v62  ;;  %v1214_v2 = vmax.f32 %v1020_v59, 0.0 }
 0x26b   :  { %v1217_v1 = vmax.f32 %v1031_v61, 0.0 }
 0x26c   :  { %v1215_v3 = vmax.f32 %v1023_v63, 0.0 }
 0x26d   :  { %v1269_v4 = vpack.c.bf16 %v1217_v1, %v1216_v0 }
 0x26e   :  { %v1268_v5 = vpack.c.bf16 %v1215_v3, %v1214_v2  ;;  %v4260_v6 = vpop.f32.mrb[56].mxu1 }
 0x26f   :  { %v1044_v8 = vadd.f32 %v4260_v6, %v5344_v42  ;;  %v1035_v10 = vpop.f32.mrb[57].mxu1 }
 0x270   :  { %v1036_v13 = vadd.f32 %v5344_v42, %v1035_v10  ;;  %v4261_v15 = vpop.f32.mrb[58].mxu1  ;;  %4334 = vmatprep.mubr.bf16.mxu0 %v1268_v5 }
 0x271   :  { %v1047_v17 = vadd.f32 %v4261_v15, %v5344_v42  ;;  %v1038_v18 = vpop.f32.mrb[59].mxu1  ;;  %4335 = vmatmul.mubr.bf16.gmra.mrb[52].mxu0 %v1269_v4  ;;  %v1220_v20 = vmax.f32 %v1044_v8, 0.0 }
 0x272   :  { %v1039_v19 = vadd.f32 %v5344_v42, %v1038_v18  ;;  %v1218_v22 = vmax.f32 %v1036_v13, 0.0 }
 0x273   :  { %v1221_v21 = vmax.f32 %v1047_v17, 0.0 }
 0x274   :  { %v1219_v23 = vmax.f32 %v1039_v19, 0.0 }
 0x275   :  { %v1271_v24 = vpack.c.bf16 %v1221_v21, %v1220_v20 }
 0x276   :  { %v1270_v25 = vpack.c.bf16 %v1219_v23, %v1218_v22  ;;  %v4264_v26 = vpop.f32.mrb[60].mxu1 }
 0x277   :  { %v1060_v27 = vadd.f32 %v4264_v26, %v5344_v42  ;;  %v1051_v28 = vpop.f32.mrb[61].mxu1 }
 0x278   :  { %v1052_v29 = vadd.f32 %v5344_v42, %v1051_v28  ;;  %v4265_v30 = vpop.f32.mrb[62].mxu1  ;;  %4338 = vmatprep.mubr.bf16.mxu0 %v1270_v25 }
 0x279   :  { %v1063_v31 = vadd.f32 %v4265_v30, %v5344_v42  ;;  %v1054_v32 = vpop.f32.mrb[63].mxu1  ;;  %4339 = vmatmul.mubr.bf16.gmra.mrb[56].mxu0 %v1271_v24  ;;  %v1224_v34 = vmax.f32 %v1060_v27, 0.0 }
 0x27a   :  { %v1055_v33 = vadd.f32 %v5344_v42, %v1054_v32  ;;  %v1222_v36 = vmax.f32 %v1052_v29, 0.0 }
 0x27b   :  { %v1225_v35 = vmax.f32 %v1063_v31, 0.0 }
 0x27c   :  { %v1223_v37 = vmax.f32 %v1055_v33, 0.0 }
 0x27d   :  { %v1273_v38 = vpack.c.bf16 %v1225_v35, %v1224_v34 }
 0x27e   :  { %v1272_v41 = vpack.c.bf16 %v1223_v37, %v1222_v36  ;;  %v4268_v43 = vpop.f32.mrb[64].mxu1 }
 0x27f   :  { %v1076_v47 = vadd.f32 %v4268_v43, %v5344_v42  ;;  %v1067_v49 = vpop.f32.mrb[65].mxu1 }
 0x280   :  { %v1068_v50 = vadd.f32 %v5344_v42, %v1067_v49  ;;  %v4269_v51 = vpop.f32.mrb[66].mxu1  ;;  %4342 = vmatprep.mubr.bf16.mxu0 %v1272_v41 }
 0x281   :  { %v1079_v48 = vadd.f32 %v4269_v51, %v5344_v42  ;;  %v1070_v12 = vpop.f32.mrb[67].mxu1  ;;  %4343 = vmatmul.mubr.bf16.gmra.mrb[60].mxu0 %v1273_v38  ;;  %v1228_v46 = vmax.f32 %v1076_v47, 0.0 }
 0x282   :  { %v1071_v16 = vadd.f32 %v5344_v42, %v1070_v12  ;;  %v1226_v14 = vmax.f32 %v1068_v50, 0.0 }
 0x283   :  { %v1229_v9 = vmax.f32 %v1079_v48, 0.0 }
 0x284   :  { %v1227_v40 = vmax.f32 %v1071_v16, 0.0 }
 0x285   :  { %v1275_v44 = vpack.c.bf16 %v1229_v9, %v1228_v46 }
 0x286   :  { %v1274_v7 = vpack.c.bf16 %v1227_v40, %v1226_v14  ;;  %v4272_v11 = vpop.f32.mrb[68].mxu1 }
 0x287   :  { %v1092_v39 = vadd.f32 %v4272_v11, %v5344_v42  ;;  %v1083_v45 = vpop.f32.mrb[69].mxu1 }
 0x288   :  { %v1084_v52 = vadd.f32 %v5344_v42, %v1083_v45  ;;  %v4273_v53 = vpop.f32.mrb[70].mxu1  ;;  %4346 = vmatprep.mubr.bf16.mxu0 %v1274_v7 }
 0x289   :  { %v1095_v54 = vadd.f32 %v4273_v53, %v5344_v42  ;;  %v1086_v55 = vpop.f32.mrb[71].mxu1  ;;  %4347 = vmatmul.mubr.bf16.gmra.mrb[64].mxu0 %v1275_v44  ;;  %v1232_v57 = vmax.f32 %v1092_v39, 0.0 }
 0x28a   :  { %v1087_v56 = vadd.f32 %v5344_v42, %v1086_v55  ;;  %v1230_v59 = vmax.f32 %v1084_v52, 0.0 }
 0x28b   :  { %v1233_v58 = vmax.f32 %v1095_v54, 0.0 }
 0x28c   :  { %v1231_v60 = vmax.f32 %v1087_v56, 0.0 }
 0x28d   :  { %v1277_v61 = vpack.c.bf16 %v1233_v58, %v1232_v57 }
 0x28e   :  { %v1276_v62 = vpack.c.bf16 %v1231_v60, %v1230_v59  ;;  %v4276_v63 = vpop.f32.mrb[72].mxu1 }
 0x28f   :  { %v1108_v0 = vadd.f32 %v4276_v63, %v5344_v42  ;;  %v1099_v1 = vpop.f32.mrb[73].mxu1 }
 0x290   :  { %v1100_v2 = vadd.f32 %v5344_v42, %v1099_v1  ;;  %v4277_v3 = vpop.f32.mrb[74].mxu1  ;;  %4350 = vmatprep.mubr.bf16.mxu0 %v1276_v62 }
 0x291   :  { %v1111_v4 = vadd.f32 %v4277_v3, %v5344_v42  ;;  %v1102_v5 = vpop.f32.mrb[75].mxu1  ;;  %4351 = vmatmul.mubr.bf16.gmra.mrb[68].mxu0 %v1277_v61  ;;  %v1236_v8 = vmax.f32 %v1108_v0, 0.0 }
 0x292   :  { %v1103_v6 = vadd.f32 %v5344_v42, %v1102_v5  ;;  %v1234_v13 = vmax.f32 %v1100_v2, 0.0 }
 0x293   :  { %v1237_v10 = vmax.f32 %v1111_v4, 0.0 }
 0x294   :  { %v1235_v15 = vmax.f32 %v1103_v6, 0.0 }
 0x295   :  { %v1279_v17 = vpack.c.bf16 %v1237_v10, %v1236_v8 }
 0x296   :  { %v1278_v18 = vpack.c.bf16 %v1235_v15, %v1234_v13  ;;  %v4280_v19 = vpop.f32.mrb[76].mxu1 }
 0x297   :  { %v1124_v20 = vadd.f32 %v4280_v19, %v5344_v42  ;;  %v1115_v21 = vpop.f32.mrb[77].mxu1 }
 0x298   :  { %v1116_v22 = vadd.f32 %v5344_v42, %v1115_v21  ;;  %v4281_v23 = vpop.f32.mrb[78].mxu1  ;;  %4354 = vmatprep.mubr.bf16.mxu0 %v1278_v18 }
 0x299   :  { %v1127_v24 = vadd.f32 %v4281_v23, %v5344_v42  ;;  %v1118_v25 = vpop.f32.mrb[79].mxu1  ;;  %4355 = vmatmul.mubr.bf16.gmra.mrb[72].mxu0 %v1279_v17  ;;  %v1240_v27 = vmax.f32 %v1124_v20, 0.0 }
 0x29a   :  { %v1119_v26 = vadd.f32 %v5344_v42, %v1118_v25  ;;  %v1238_v29 = vmax.f32 %v1116_v22, 0.0 }
 0x29b   :  { %v1241_v28 = vmax.f32 %v1127_v24, 0.0 }
 0x29c   :  { %v1239_v30 = vmax.f32 %v1119_v26, 0.0  ;;  %v4627_v26 = vld [vmem:[#allocation11] sm:$0xff]  }
 0x29d   :  { %v1281_v31 = vpack.c.bf16 %v1241_v28, %v1240_v27  ;;  %4458 = vmatprep.subr.bf16.mxu0 %v4627_v26  ;;  %v4628_v27 = vld [vmem:[#allocation11 + $0x8] sm:$0xff]   ;;  %v5413_v28 = vld [vmem:[%s6306_s6] ss:$0 sm:$0xff] }
 0x29e   :  { %v1280_v32 = vpack.c.bf16 %v1239_v30, %v1238_v29  ;;  %v4284_v33 = vpop.f32.mrb[80].mxu1  ;;  %4459 = vmatpush3.bf16.msra.mxu0 %v4627_v26 }
 0x29f   :  { %v1140_v34 = vadd.f32 %v4284_v33, %v5344_v42  ;;  %v1131_v35 = vpop.f32.mrb[81].mxu1  ;;  %4460 = vmatprep.subr.bf16.mxu0 %v4628_v27 }
 0x2a0   :  { %v1132_v36 = vadd.f32 %v5344_v42, %v1131_v35  ;;  %v4285_v37 = vpop.f32.mrb[82].mxu1  ;;  %4358 = vmatprep.mubr.bf16.mxu0 %v1280_v32  ;;  %v4629_v35 = vld [vmem:[#allocation11 + $0x10] sm:$0xff]  }
 0x2a1   :  { %v1143_v38 = vadd.f32 %v4285_v37, %v5344_v42  ;;  %v1134_v41 = vpop.f32.mrb[83].mxu1  ;;  %4359 = vmatmul.mubr.bf16.gmra.mrb[76].mxu0 %v1281_v31  ;;  %v1244_v47 = vmax.f32 %v1140_v34, 0.0 }
 0x2a2   :  { %v1135_v43 = vadd.f32 %v5344_v42, %v1134_v41  ;;  %v1242_v50 = vmax.f32 %v1132_v36, 0.0  ;;  %4461 = vmatpush3.bf16.msra.mxu0 %v4628_v27  ;;  %v4630_v36 = vld [vmem:[#allocation11 + $0x18] sm:$0xff]  }
 0x2a3   :  { %v1245_v49 = vmax.f32 %v1143_v38, 0.0  ;;  %4462 = vmatprep.subr.bf16.mxu0 %v4629_v35 }
 0x2a4   :  { %v1243_v51 = vmax.f32 %v1135_v43, 0.0 }
 0x2a5   :  { %v1283_v48 = vpack.c.bf16 %v1245_v49, %v1244_v47 }
 0x2a6   :  { %v1282_v12 = vpack.c.bf16 %v1243_v51, %v1242_v50  ;;  %v4288_v16 = vpop.f32.mrb[84].mxu1  ;;  %4463 = vmatpush3.bf16.msra.mxu0 %v4629_v35  ;;  %v4631_v50 = vld [vmem:[#allocation11 + $0x20] sm:$0xff]  }
 0x2a7   :  { %v1156_v46 = vadd.f32 %v4288_v16, %v5344_v42  ;;  %v1147_v9 = vpop.f32.mrb[85].mxu1  ;;  %4464 = vmatprep.subr.bf16.mxu0 %v4630_v36 }
 0x2a8   :  { %v1148_v14 = vadd.f32 %v5344_v42, %v1147_v9  ;;  %v4289_v40 = vpop.f32.mrb[86].mxu1  ;;  %4362 = vmatprep.mubr.bf16.mxu0 %v1282_v12 }
 0x2a9   :  { %v1159_v44 = vadd.f32 %v4289_v40, %v5344_v42  ;;  %v1150_v7 = vpop.f32.mrb[87].mxu1  ;;  %4363 = vmatmul.mubr.bf16.gmra.mrb[80].mxu0 %v1283_v48  ;;  %v1248_v39 = vmax.f32 %v1156_v46, 0.0 }
 0x2aa   :  { %v1151_v11 = vadd.f32 %v5344_v42, %v1150_v7  ;;  %v1246_v52 = vmax.f32 %v1148_v14, 0.0  ;;  %4465 = vmatpush3.bf16.msra.mxu0 %v4630_v36 }
 0x2ab   :  { %v1249_v45 = vmax.f32 %v1159_v44, 0.0  ;;  %4466 = vmatprep.subr.bf16.mxu0 %v4631_v50  ;;  %v4632_v44 = vld [vmem:[#allocation11 + $0x28] sm:$0xff]  }
 0x2ac   :  { %v1247_v53 = vmax.f32 %v1151_v11, 0.0 }
 0x2ad   :  { %v1285_v54 = vpack.c.bf16 %v1249_v45, %v1248_v39 }
 0x2ae   :  { %v1284_v55 = vpack.c.bf16 %v1247_v53, %v1246_v52  ;;  %v4292_v56 = vpop.f32.mrb[88].mxu1  ;;  %4467 = vmatpush3.bf16.msra.mxu0 %v4631_v50 }
 0x2af   :  { %v1172_v57 = vadd.f32 %v4292_v56, %v5344_v42  ;;  %v1163_v58 = vpop.f32.mrb[89].mxu1  ;;  %4468 = vmatprep.subr.bf16.mxu0 %v4632_v44 }
 0x2b0   :  { %v1164_v59 = vadd.f32 %v5344_v42, %v1163_v58  ;;  %v4293_v60 = vpop.f32.mrb[90].mxu1  ;;  %4366 = vmatprep.mubr.bf16.mxu0 %v1284_v55 }
 0x2b1   :  { %v1175_v61 = vadd.f32 %v4293_v60, %v5344_v42  ;;  %v1166_v62 = vpop.f32.mrb[91].mxu1  ;;  %4367 = vmatmul.mubr.bf16.gmra.mrb[84].mxu0 %v1285_v54  ;;  %v1252_v0 = vmax.f32 %v1172_v57, 0.0  ;;  %v4633_v54 = vld [vmem:[#allocation11 + $0x30] sm:$0xff]  }
 0x2b2   :  { %v1167_v63 = vadd.f32 %v5344_v42, %v1166_v62  ;;  %v1250_v2 = vmax.f32 %v1164_v59, 0.0  ;;  %4469 = vmatpush3.bf16.msra.mxu0 %v4632_v44 }
 0x2b3   :  { %v1253_v1 = vmax.f32 %v1175_v61, 0.0  ;;  %4470 = vmatprep.subr.bf16.mxu0 %v4633_v54 }
 0x2b4   :  { %v1251_v3 = vmax.f32 %v1167_v63, 0.0  ;;  %v4634_v63 = vld [vmem:[#allocation11 + $0x38] sm:$0xff]  }
 0x2b5   :  { %v1287_v4 = vpack.c.bf16 %v1253_v1, %v1252_v0 }
 0x2b6   :  { %v1286_v5 = vpack.c.bf16 %v1251_v3, %v1250_v2  ;;  %v4296_v6 = vpop.f32.mrb[92].mxu1  ;;  %4471 = vmatpush3.bf16.msra.mxu0 %v4633_v54 }
 0x2b7   :  { %v1188_v8 = vadd.f32 %v4296_v6, %v5344_v42  ;;  %v1179_v10 = vpop.f32.mrb[93].mxu1  ;;  %4472 = vmatprep.subr.bf16.mxu0 %v4634_v63 }
 0x2b8   :  { %v1180_v13 = vadd.f32 %v5344_v42, %v1179_v10  ;;  %v4297_v15 = vpop.f32.mrb[94].mxu1  ;;  %4370 = vmatprep.mubr.bf16.mxu0 %v1286_v5 }
 0x2b9   :  { %v1191_v17 = vadd.f32 %v4297_v15, %v5344_v42  ;;  %v1182_v18 = vpop.f32.mrb[95].mxu1  ;;  %4371 = vmatmul.mubr.bf16.gmra.mrb[88].mxu0 %v1287_v4  ;;  %v1256_v20 = vmax.f32 %v1188_v8, 0.0 }
 0x2ba   :  { %v1183_v19 = vadd.f32 %v5344_v42, %v1182_v18  ;;  %v1254_v22 = vmax.f32 %v1180_v13, 0.0  ;;  %4473 = vmatpush3.bf16.msra.mxu0 %v4634_v63 }
 0x2bb   :  { %v1257_v21 = vmax.f32 %v1191_v17, 0.0 }
 0x2bc   :  { %v1255_v23 = vmax.f32 %v1183_v19, 0.0 }
 0x2bd   :  { %v1289_v24 = vpack.c.bf16 %v1257_v21, %v1256_v20 }
 0x2be   :  { %v1288_v25 = vpack.c.bf16 %v1255_v23, %v1254_v22 }
 0x2c0   :  { %4374 = vmatprep.mubr.bf16.mxu0 %v1288_v25 }
 0x2c1   :  { %4375 = vmatmul.mubr.bf16.gmra.mrb[92].mxu0 %v1289_v24 }
 0x31c   :  { %v4316_v42 = vpop.f32.mrb[32].mxu0 }
 0x31d   :  { %v1404_v29 = vadd.f32 %v4316_v42, %v5413_v28  ;;  %v1395_v30 = vpop.f32.mrb[33].mxu0 }
 0x31e   :  { %v1396_v31 = vadd.f32 %v5413_v28, %v1395_v30  ;;  %v4317_v32 = vpop.f32.mrb[34].mxu0 }
 0x31f   :  { %v1407_v33 = vadd.f32 %v4317_v32, %v5413_v28  ;;  %v1398_v34 = vpop.f32.mrb[35].mxu0  ;;  %v1652_v38 = vmax.f32 %v1404_v29, 0.0 }
 0x320   :  { %v1399_v37 = vadd.f32 %v5413_v28, %v1398_v34  ;;  %v1650_v43 = vmax.f32 %v1396_v31, 0.0 }
 0x321   :  { %v1653_v41 = vmax.f32 %v1407_v33, 0.0 }
 0x322   :  { %v1651_v47 = vmax.f32 %v1399_v37, 0.0 }
 0x323   :  { %v1715_v49 = vpack.c.bf16 %v1653_v41, %v1652_v38 }
 0x324   :  { %v1714_v51 = vpack.c.bf16 %v1651_v47, %v1650_v43  ;;  %v4320_v48 = vpop.f32.mrb[36].mxu0 }
 0x325   :  { %v1420_v12 = vadd.f32 %v4320_v48, %v5413_v28  ;;  %v1411_v16 = vpop.f32.mrb[37].mxu0 }
 0x326   :  { %v1412_v46 = vadd.f32 %v5413_v28, %v1411_v16  ;;  %v4321_v9 = vpop.f32.mrb[38].mxu0  ;;  %4394 = vmatprep.mubr.bf16.mxu1 %v1714_v51 }
 0x327   :  { %v1423_v14 = vadd.f32 %v4321_v9, %v5413_v28  ;;  %v1414_v40 = vpop.f32.mrb[39].mxu0  ;;  %4395 = vmatmul.mubr.bf16.vlgmr.msra.gmra.mrb[96].mxu1 %v1715_v49  ;;  %v1656_v11 = vmax.f32 %v1420_v12, 0.0 }
 0x328   :  { %v1415_v7 = vadd.f32 %v5413_v28, %v1414_v40  ;;  %v1654_v45 = vmax.f32 %v1412_v46, 0.0 }
 0x329   :  { %v1657_v39 = vmax.f32 %v1423_v14, 0.0 }
 0x32a   :  { %v1655_v52 = vmax.f32 %v1415_v7, 0.0 }
 0x32b   :  { %v1717_v53 = vpack.c.bf16 %v1657_v39, %v1656_v11 }
 0x32c   :  { %v1716_v55 = vpack.c.bf16 %v1655_v52, %v1654_v45  ;;  %v4324_v56 = vpop.f32.mrb[40].mxu0 }
 0x32d   :  { %v1436_v57 = vadd.f32 %v4324_v56, %v5413_v28  ;;  %v1427_v58 = vpop.f32.mrb[41].mxu0 }
 0x32e   :  { %v1428_v59 = vadd.f32 %v5413_v28, %v1427_v58  ;;  %v4325_v60 = vpop.f32.mrb[42].mxu0  ;;  %4398 = vmatprep.mubr.bf16.mxu1 %v1716_v55 }
 0x32f   :  { %v1439_v61 = vadd.f32 %v4325_v60, %v5413_v28  ;;  %v1430_v62 = vpop.f32.mrb[43].mxu0  ;;  %4399 = vmatmul.mubr.bf16.gmra.mrb[100].mxu1 %v1717_v53  ;;  %v1660_v1 = vmax.f32 %v1436_v57, 0.0 }
 0x330   :  { %v1431_v0 = vadd.f32 %v5413_v28, %v1430_v62  ;;  %v1658_v3 = vmax.f32 %v1428_v59, 0.0 }
 0x331   :  { %v1661_v2 = vmax.f32 %v1439_v61, 0.0 }
 0x332   :  { %v1659_v4 = vmax.f32 %v1431_v0, 0.0 }
 0x333   :  { %v1719_v5 = vpack.c.bf16 %v1661_v2, %v1660_v1 }
 0x334   :  { %v1718_v6 = vpack.c.bf16 %v1659_v4, %v1658_v3  ;;  %v4328_v8 = vpop.f32.mrb[44].mxu0 }
 0x335   :  { %v1452_v10 = vadd.f32 %v4328_v8, %v5413_v28  ;;  %v1443_v13 = vpop.f32.mrb[45].mxu0 }
 0x336   :  { %v1444_v15 = vadd.f32 %v5413_v28, %v1443_v13  ;;  %v4329_v17 = vpop.f32.mrb[46].mxu0  ;;  %4402 = vmatprep.mubr.bf16.mxu1 %v1718_v6 }
 0x337   :  { %v1455_v18 = vadd.f32 %v4329_v17, %v5413_v28  ;;  %v1446_v19 = vpop.f32.mrb[47].mxu0  ;;  %4403 = vmatmul.mubr.bf16.gmra.mrb[104].mxu1 %v1719_v5  ;;  %v1664_v21 = vmax.f32 %v1452_v10, 0.0 }
 0x338   :  { %v1447_v20 = vadd.f32 %v5413_v28, %v1446_v19  ;;  %v1662_v23 = vmax.f32 %v1444_v15, 0.0 }
 0x339   :  { %v1665_v22 = vmax.f32 %v1455_v18, 0.0 }
 0x33a   :  { %v1663_v24 = vmax.f32 %v1447_v20, 0.0 }
 0x33b   :  { %v1721_v25 = vpack.c.bf16 %v1665_v22, %v1664_v21 }
 0x33c   :  { %v1720_v26 = vpack.c.bf16 %v1663_v24, %v1662_v23  ;;  %v4332_v27 = vpop.f32.mrb[48].mxu0 }
 0x33d   :  { %v1468_v42 = vadd.f32 %v4332_v27, %v5413_v28  ;;  %v1459_v29 = vpop.f32.mrb[49].mxu0 }
 0x33e   :  { %v1460_v30 = vadd.f32 %v5413_v28, %v1459_v29  ;;  %v4333_v31 = vpop.f32.mrb[50].mxu0  ;;  %4406 = vmatprep.mubr.bf16.mxu1 %v1720_v26 }
 0x33f   :  { %v1471_v32 = vadd.f32 %v4333_v31, %v5413_v28  ;;  %v1462_v33 = vpop.f32.mrb[51].mxu0  ;;  %4407 = vmatmul.mubr.bf16.gmra.mrb[108].mxu1 %v1721_v25  ;;  %v1668_v35 = vmax.f32 %v1468_v42, 0.0 }
 0x340   :  { %v1463_v34 = vadd.f32 %v5413_v28, %v1462_v33  ;;  %v1666_v37 = vmax.f32 %v1460_v30, 0.0 }
 0x341   :  { %v1669_v36 = vmax.f32 %v1471_v32, 0.0 }
 0x342   :  { %v1667_v38 = vmax.f32 %v1463_v34, 0.0 }
 0x343   :  { %v1723_v41 = vpack.c.bf16 %v1669_v36, %v1668_v35 }
 0x344   :  { %v1722_v43 = vpack.c.bf16 %v1667_v38, %v1666_v37  ;;  %v4336_v47 = vpop.f32.mrb[52].mxu0 }
 0x345   :  { %v1484_v49 = vadd.f32 %v4336_v47, %v5413_v28  ;;  %v1475_v50 = vpop.f32.mrb[53].mxu0 }
 0x346   :  { %v1476_v51 = vadd.f32 %v5413_v28, %v1475_v50  ;;  %v4337_v48 = vpop.f32.mrb[54].mxu0  ;;  %4410 = vmatprep.mubr.bf16.mxu1 %v1722_v43 }
 0x347   :  { %v1487_v12 = vadd.f32 %v4337_v48, %v5413_v28  ;;  %v1478_v16 = vpop.f32.mrb[55].mxu0  ;;  %4411 = vmatmul.mubr.bf16.gmra.mrb[112].mxu1 %v1723_v41  ;;  %v1672_v9 = vmax.f32 %v1484_v49, 0.0 }
 0x348   :  { %v1479_v46 = vadd.f32 %v5413_v28, %v1478_v16  ;;  %v1670_v40 = vmax.f32 %v1476_v51, 0.0 }
 0x349   :  { %v1673_v14 = vmax.f32 %v1487_v12, 0.0 }
 0x34a   :  { %v1671_v44 = vmax.f32 %v1479_v46, 0.0 }
 0x34b   :  { %v1725_v7 = vpack.c.bf16 %v1673_v14, %v1672_v9 }
 0x34c   :  { %v1724_v11 = vpack.c.bf16 %v1671_v44, %v1670_v40  ;;  %v4340_v39 = vpop.f32.mrb[56].mxu0 }
 0x34d   :  { %v1500_v45 = vadd.f32 %v4340_v39, %v5413_v28  ;;  %v1491_v52 = vpop.f32.mrb[57].mxu0 }
 0x34e   :  { %v1492_v53 = vadd.f32 %v5413_v28, %v1491_v52  ;;  %v4341_v54 = vpop.f32.mrb[58].mxu0  ;;  %4414 = vmatprep.mubr.bf16.mxu1 %v1724_v11 }
 0x34f   :  { %v1503_v55 = vadd.f32 %v4341_v54, %v5413_v28  ;;  %v1494_v56 = vpop.f32.mrb[59].mxu0  ;;  %4415 = vmatmul.mubr.bf16.gmra.mrb[116].mxu1 %v1725_v7  ;;  %v1676_v58 = vmax.f32 %v1500_v45, 0.0 }
 0x350   :  { %v1495_v57 = vadd.f32 %v5413_v28, %v1494_v56  ;;  %v1674_v60 = vmax.f32 %v1492_v53, 0.0 }
 0x351   :  { %v1677_v59 = vmax.f32 %v1503_v55, 0.0 }
 0x352   :  { %v1675_v61 = vmax.f32 %v1495_v57, 0.0 }
 0x353   :  { %v1727_v62 = vpack.c.bf16 %v1677_v59, %v1676_v58 }
 0x354   :  { %v1726_v63 = vpack.c.bf16 %v1675_v61, %v1674_v60  ;;  %v4344_v0 = vpop.f32.mrb[60].mxu0 }
 0x355   :  { %v1516_v1 = vadd.f32 %v4344_v0, %v5413_v28  ;;  %v1507_v2 = vpop.f32.mrb[61].mxu0 }
 0x356   :  { %v1508_v3 = vadd.f32 %v5413_v28, %v1507_v2  ;;  %v4345_v4 = vpop.f32.mrb[62].mxu0  ;;  %4418 = vmatprep.mubr.bf16.mxu1 %v1726_v63 }
 0x357   :  { %v1519_v5 = vadd.f32 %v4345_v4, %v5413_v28  ;;  %v1510_v6 = vpop.f32.mrb[63].mxu0  ;;  %4419 = vmatmul.mubr.bf16.gmra.mrb[120].mxu1 %v1727_v62  ;;  %v1680_v10 = vmax.f32 %v1516_v1, 0.0 }
 0x358   :  { %v1511_v8 = vadd.f32 %v5413_v28, %v1510_v6  ;;  %v1678_v15 = vmax.f32 %v1508_v3, 0.0 }
 0x359   :  { %v1681_v13 = vmax.f32 %v1519_v5, 0.0 }
 0x35a   :  { %v1679_v17 = vmax.f32 %v1511_v8, 0.0 }
 0x35b   :  { %v1729_v18 = vpack.c.bf16 %v1681_v13, %v1680_v10 }
 0x35c   :  { %v1728_v19 = vpack.c.bf16 %v1679_v17, %v1678_v15  ;;  %v4348_v20 = vpop.f32.mrb[64].mxu0 }
 0x35d   :  { %v1532_v21 = vadd.f32 %v4348_v20, %v5413_v28  ;;  %v1523_v22 = vpop.f32.mrb[65].mxu0 }
 0x35e   :  { %v1524_v23 = vadd.f32 %v5413_v28, %v1523_v22  ;;  %v4349_v24 = vpop.f32.mrb[66].mxu0  ;;  %4422 = vmatprep.mubr.bf16.mxu1 %v1728_v19 }
 0x35f   :  { %v1535_v25 = vadd.f32 %v4349_v24, %v5413_v28  ;;  %v1526_v26 = vpop.f32.mrb[67].mxu0  ;;  %4423 = vmatmul.mubr.bf16.gmra.mrb[124].mxu1 %v1729_v18  ;;  %v1684_v42 = vmax.f32 %v1532_v21, 0.0 }
 0x360   :  { %v1527_v27 = vadd.f32 %v5413_v28, %v1526_v26  ;;  %v1682_v30 = vmax.f32 %v1524_v23, 0.0 }
 0x361   :  { %v1685_v29 = vmax.f32 %v1535_v25, 0.0 }
 0x362   :  { %v1683_v31 = vmax.f32 %v1527_v27, 0.0 }
 0x363   :  { %v1731_v32 = vpack.c.bf16 %v1685_v29, %v1684_v42 }
 0x364   :  { %v1730_v33 = vpack.c.bf16 %v1683_v31, %v1682_v30  ;;  %v4352_v34 = vpop.f32.mrb[68].mxu0 }
 0x365   :  { %v1548_v35 = vadd.f32 %v4352_v34, %v5413_v28  ;;  %v1539_v36 = vpop.f32.mrb[69].mxu0 }
 0x366   :  { %v1540_v37 = vadd.f32 %v5413_v28, %v1539_v36  ;;  %v4353_v38 = vpop.f32.mrb[70].mxu0  ;;  %4426 = vmatprep.mubr.bf16.mxu1 %v1730_v33 }
 0x367   :  { %v1551_v41 = vadd.f32 %v4353_v38, %v5413_v28  ;;  %v1542_v43 = vpop.f32.mrb[71].mxu0  ;;  %4427 = vmatmul.mubr.bf16.gmra.mrb[128].mxu1 %v1731_v32  ;;  %v1688_v49 = vmax.f32 %v1548_v35, 0.0 }
 0x368   :  { %v1543_v47 = vadd.f32 %v5413_v28, %v1542_v43  ;;  %v1686_v51 = vmax.f32 %v1540_v37, 0.0 }
 0x369   :  { %v1689_v50 = vmax.f32 %v1551_v41, 0.0 }
 0x36a   :  { %v1687_v48 = vmax.f32 %v1543_v47, 0.0 }
 0x36b   :  { %v1733_v12 = vpack.c.bf16 %v1689_v50, %v1688_v49 }
 0x36c   :  { %v1732_v16 = vpack.c.bf16 %v1687_v48, %v1686_v51  ;;  %v4356_v46 = vpop.f32.mrb[72].mxu0 }
 0x36d   :  { %v1564_v9 = vadd.f32 %v4356_v46, %v5413_v28  ;;  %v1555_v14 = vpop.f32.mrb[73].mxu0 }
 0x36e   :  { %v1556_v40 = vadd.f32 %v5413_v28, %v1555_v14  ;;  %v4357_v44 = vpop.f32.mrb[74].mxu0  ;;  %4430 = vmatprep.mubr.bf16.mxu1 %v1732_v16 }
 0x36f   :  { %v1567_v7 = vadd.f32 %v4357_v44, %v5413_v28  ;;  %v1558_v11 = vpop.f32.mrb[75].mxu0  ;;  %4431 = vmatmul.mubr.bf16.gmra.mrb[132].mxu1 %v1733_v12  ;;  %v1692_v45 = vmax.f32 %v1564_v9, 0.0 }
 0x370   :  { %v1559_v39 = vadd.f32 %v5413_v28, %v1558_v11  ;;  %v1690_v53 = vmax.f32 %v1556_v40, 0.0 }
 0x371   :  { %v1693_v52 = vmax.f32 %v1567_v7, 0.0 }
 0x372   :  { %v1691_v54 = vmax.f32 %v1559_v39, 0.0 }
 0x373   :  { %v1735_v55 = vpack.c.bf16 %v1693_v52, %v1692_v45 }
 0x374   :  { %v1734_v56 = vpack.c.bf16 %v1691_v54, %v1690_v53  ;;  %v4360_v57 = vpop.f32.mrb[76].mxu0 }
 0x375   :  { %v1580_v58 = vadd.f32 %v4360_v57, %v5413_v28  ;;  %v1571_v59 = vpop.f32.mrb[77].mxu0 }
 0x376   :  { %v1572_v60 = vadd.f32 %v5413_v28, %v1571_v59  ;;  %v4361_v61 = vpop.f32.mrb[78].mxu0  ;;  %4434 = vmatprep.mubr.bf16.mxu1 %v1734_v56 }
 0x377   :  { %v1583_v62 = vadd.f32 %v4361_v61, %v5413_v28  ;;  %v1574_v63 = vpop.f32.mrb[79].mxu0  ;;  %4435 = vmatmul.mubr.bf16.gmra.mrb[136].mxu1 %v1735_v55  ;;  %v1696_v1 = vmax.f32 %v1580_v58, 0.0 }
 0x378   :  { %v1575_v0 = vadd.f32 %v5413_v28, %v1574_v63  ;;  %v1694_v3 = vmax.f32 %v1572_v60, 0.0 }
 0x379   :  { %v1697_v2 = vmax.f32 %v1583_v62, 0.0 }
 0x37a   :  { %v1695_v4 = vmax.f32 %v1575_v0, 0.0  ;;  %v5482_v0 = vld [vmem:[%s6308_s8] ss:$0 sm:$0xff] }
 0x37b   :  { %v1737_v5 = vpack.c.bf16 %v1697_v2, %v1696_v1 }
 0x37c   :  { %v1736_v6 = vpack.c.bf16 %v1695_v4, %v1694_v3  ;;  %v4364_v8 = vpop.f32.mrb[80].mxu0 }
 0x37d   :  { %v1596_v10 = vadd.f32 %v4364_v8, %v5413_v28  ;;  %v1587_v13 = vpop.f32.mrb[81].mxu0 }
 0x37e   :  { %v1588_v15 = vadd.f32 %v5413_v28, %v1587_v13  ;;  %v4365_v17 = vpop.f32.mrb[82].mxu0  ;;  %4438 = vmatprep.mubr.bf16.mxu1 %v1736_v6 }
 0x37f   :  { %v1599_v18 = vadd.f32 %v4365_v17, %v5413_v28  ;;  %v1590_v19 = vpop.f32.mrb[83].mxu0  ;;  %4439 = vmatmul.mubr.bf16.gmra.mrb[140].mxu1 %v1737_v5  ;;  %v1700_v21 = vmax.f32 %v1596_v10, 0.0 }
 0x380   :  { %v1591_v20 = vadd.f32 %v5413_v28, %v1590_v19  ;;  %v1698_v23 = vmax.f32 %v1588_v15, 0.0 }
 0x381   :  { %v1701_v22 = vmax.f32 %v1599_v18, 0.0 }
 0x382   :  { %v1699_v24 = vmax.f32 %v1591_v20, 0.0 }
 0x383   :  { %v1739_v25 = vpack.c.bf16 %v1701_v22, %v1700_v21 }
 0x384   :  { %v1738_v26 = vpack.c.bf16 %v1699_v24, %v1698_v23  ;;  %v4368_v27 = vpop.f32.mrb[84].mxu0 }
 0x385   :  { %v1612_v42 = vadd.f32 %v4368_v27, %v5413_v28  ;;  %v1603_v29 = vpop.f32.mrb[85].mxu0 }
 0x386   :  { %v1604_v30 = vadd.f32 %v5413_v28, %v1603_v29  ;;  %v4369_v31 = vpop.f32.mrb[86].mxu0  ;;  %4442 = vmatprep.mubr.bf16.mxu1 %v1738_v26 }
 0x387   :  { %v1615_v32 = vadd.f32 %v4369_v31, %v5413_v28  ;;  %v1606_v33 = vpop.f32.mrb[87].mxu0  ;;  %4443 = vmatmul.mubr.bf16.gmra.mrb[144].mxu1 %v1739_v25  ;;  %v1704_v35 = vmax.f32 %v1612_v42, 0.0 }
 0x388   :  { %v1607_v34 = vadd.f32 %v5413_v28, %v1606_v33  ;;  %v1702_v37 = vmax.f32 %v1604_v30, 0.0 }
 0x389   :  { %v1705_v36 = vmax.f32 %v1615_v32, 0.0 }
 0x38a   :  { %v1703_v38 = vmax.f32 %v1607_v34, 0.0 }
 0x38b   :  { %v1741_v41 = vpack.c.bf16 %v1705_v36, %v1704_v35 }
 0x38c   :  { %v1740_v43 = vpack.c.bf16 %v1703_v38, %v1702_v37  ;;  %v4372_v47 = vpop.f32.mrb[88].mxu0 }
 0x38d   :  { %v1628_v49 = vadd.f32 %v4372_v47, %v5413_v28  ;;  %v1619_v50 = vpop.f32.mrb[89].mxu0 }
 0x38e   :  { %v1620_v51 = vadd.f32 %v5413_v28, %v1619_v50  ;;  %v4373_v48 = vpop.f32.mrb[90].mxu0  ;;  %4446 = vmatprep.mubr.bf16.mxu1 %v1740_v43 }
 0x38f   :  { %v1631_v12 = vadd.f32 %v4373_v48, %v5413_v28  ;;  %v1622_v16 = vpop.f32.mrb[91].mxu0  ;;  %4447 = vmatmul.mubr.bf16.gmra.mrb[148].mxu1 %v1741_v41  ;;  %v1708_v9 = vmax.f32 %v1628_v49, 0.0 }
 0x390   :  { %v1623_v46 = vadd.f32 %v5413_v28, %v1622_v16  ;;  %v1706_v40 = vmax.f32 %v1620_v51, 0.0 }
 0x391   :  { %v1709_v14 = vmax.f32 %v1631_v12, 0.0 }
 0x392   :  { %v1707_v44 = vmax.f32 %v1623_v46, 0.0 }
 0x393   :  { %v1743_v7 = vpack.c.bf16 %v1709_v14, %v1708_v9 }
 0x394   :  { %v1742_v11 = vpack.c.bf16 %v1707_v44, %v1706_v40  ;;  %v4376_v39 = vpop.f32.mrb[92].mxu0 }
 0x395   :  { %v1644_v45 = vadd.f32 %v4376_v39, %v5413_v28  ;;  %v1635_v52 = vpop.f32.mrb[93].mxu0 }
 0x396   :  { %v1636_v53 = vadd.f32 %v5413_v28, %v1635_v52  ;;  %v4377_v54 = vpop.f32.mrb[94].mxu0  ;;  %4450 = vmatprep.mubr.bf16.mxu1 %v1742_v11 }
 0x397   :  { %v1647_v55 = vadd.f32 %v4377_v54, %v5413_v28  ;;  %v1638_v56 = vpop.f32.mrb[95].mxu0  ;;  %4451 = vmatmul.mubr.bf16.gmra.mrb[152].mxu1 %v1743_v7  ;;  %v1712_v58 = vmax.f32 %v1644_v45, 0.0 }
 0x398   :  { %v1639_v57 = vadd.f32 %v5413_v28, %v1638_v56  ;;  %v1710_v60 = vmax.f32 %v1636_v53, 0.0 }
 0x399   :  { %v1713_v59 = vmax.f32 %v1647_v55, 0.0 }
 0x39a   :  { %v1711_v61 = vmax.f32 %v1639_v57, 0.0 }
 0x39b   :  { %v1745_v62 = vpack.c.bf16 %v1713_v59, %v1712_v58 }
 0x39c   :  { %v1744_v63 = vpack.c.bf16 %v1711_v61, %v1710_v60 }
 0x39e   :  { %4454 = vmatprep.mubr.bf16.mxu1 %v1744_v63 }
 0x39f   :  { %4455 = vmatmul.mubr.bf16.gmra.mrb[156].mxu1 %v1745_v62 }
 0x3fa   :  { %v4396_v1 = vpop.f32.mrb[96].mxu1 }
 0x3fb   :  { %v1860_v2 = vadd.f32 %v4396_v1, %v5482_v0  ;;  %v1851_v3 = vpop.f32.mrb[97].mxu1 }
 0x3fc   :  { %v1852_v4 = vadd.f32 %v5482_v0, %v1851_v3  ;;  %v4397_v28 = vpop.f32.mrb[98].mxu1 }
 0x3fd   :  { %v1863_v5 = vadd.f32 %v4397_v28, %v5482_v0  ;;  %v1854_v6 = vpop.f32.mrb[99].mxu1  ;;  %v2108_v10 = vmax.f32 %v1860_v2, 0.0 }
 0x3fe   :  { %v1855_v8 = vadd.f32 %v5482_v0, %v1854_v6  ;;  %v2106_v15 = vmax.f32 %v1852_v4, 0.0 }
 0x3ff   :  { %v2109_v13 = vmax.f32 %v1863_v5, 0.0 }
 0x400   :  { %v2107_v17 = vmax.f32 %v1855_v8, 0.0 }
 0x401   :  { %v2171_v18 = vpack.c.bf16 %v2109_v13, %v2108_v10 }
 0x402   :  { %v2170_v19 = vpack.c.bf16 %v2107_v17, %v2106_v15  ;;  %v4400_v20 = vpop.f32.mrb[100].mxu1 }
 0x403   :  { %v1876_v21 = vadd.f32 %v4400_v20, %v5482_v0  ;;  %v1867_v22 = vpop.f32.mrb[101].mxu1 }
 0x404   :  { %v1868_v23 = vadd.f32 %v5482_v0, %v1867_v22  ;;  %v4401_v24 = vpop.f32.mrb[102].mxu1  ;;  %4474 = vmatprep.mubr.bf16.mxu0 %v2170_v19 }
 0x405   :  { %v1879_v25 = vadd.f32 %v4401_v24, %v5482_v0  ;;  %v1870_v26 = vpop.f32.mrb[103].mxu1  ;;  %4475 = vmatmul.mubr.bf16.vlgmr.msra.gmra.mrb[96].mxu0 %v2171_v18  ;;  %v2112_v42 = vmax.f32 %v1876_v21, 0.0 }
 0x406   :  { %v1871_v27 = vadd.f32 %v5482_v0, %v1870_v26  ;;  %v2110_v30 = vmax.f32 %v1868_v23, 0.0 }
 0x407   :  { %v2113_v29 = vmax.f32 %v1879_v25, 0.0 }
 0x408   :  { %v2111_v31 = vmax.f32 %v1871_v27, 0.0 }
 0x409   :  { %v2173_v32 = vpack.c.bf16 %v2113_v29, %v2112_v42 }
 0x40a   :  { %v2172_v33 = vpack.c.bf16 %v2111_v31, %v2110_v30  ;;  %v4404_v34 = vpop.f32.mrb[104].mxu1 }
 0x40b   :  { %v1892_v35 = vadd.f32 %v4404_v34, %v5482_v0  ;;  %v1883_v36 = vpop.f32.mrb[105].mxu1 }
 0x40c   :  { %v1884_v37 = vadd.f32 %v5482_v0, %v1883_v36  ;;  %v4405_v38 = vpop.f32.mrb[106].mxu1  ;;  %4478 = vmatprep.mubr.bf16.mxu0 %v2172_v33 }
 0x40d   :  { %v1895_v41 = vadd.f32 %v4405_v38, %v5482_v0  ;;  %v1886_v43 = vpop.f32.mrb[107].mxu1  ;;  %4479 = vmatmul.mubr.bf16.gmra.mrb[100].mxu0 %v2173_v32  ;;  %v2116_v49 = vmax.f32 %v1892_v35, 0.0 }
 0x40e   :  { %v1887_v47 = vadd.f32 %v5482_v0, %v1886_v43  ;;  %v2114_v51 = vmax.f32 %v1884_v37, 0.0 }
 0x40f   :  { %v2117_v50 = vmax.f32 %v1895_v41, 0.0 }
 0x410   :  { %v2115_v48 = vmax.f32 %v1887_v47, 0.0 }
 0x411   :  { %v2175_v12 = vpack.c.bf16 %v2117_v50, %v2116_v49 }
 0x412   :  { %v2174_v16 = vpack.c.bf16 %v2115_v48, %v2114_v51  ;;  %v4408_v46 = vpop.f32.mrb[108].mxu1 }
 0x413   :  { %v1908_v9 = vadd.f32 %v4408_v46, %v5482_v0  ;;  %v1899_v14 = vpop.f32.mrb[109].mxu1 }
 0x414   :  { %v1900_v40 = vadd.f32 %v5482_v0, %v1899_v14  ;;  %v4409_v44 = vpop.f32.mrb[110].mxu1  ;;  %4482 = vmatprep.mubr.bf16.mxu0 %v2174_v16 }
 0x415   :  { %v1911_v7 = vadd.f32 %v4409_v44, %v5482_v0  ;;  %v1902_v11 = vpop.f32.mrb[111].mxu1  ;;  %4483 = vmatmul.mubr.bf16.gmra.mrb[104].mxu0 %v2175_v12  ;;  %v2120_v45 = vmax.f32 %v1908_v9, 0.0 }
 0x416   :  { %v1903_v39 = vadd.f32 %v5482_v0, %v1902_v11  ;;  %v2118_v53 = vmax.f32 %v1900_v40, 0.0 }
 0x417   :  { %v2121_v52 = vmax.f32 %v1911_v7, 0.0 }
 0x418   :  { %v2119_v54 = vmax.f32 %v1903_v39, 0.0 }
 0x419   :  { %v2177_v55 = vpack.c.bf16 %v2121_v52, %v2120_v45 }
 0x41a   :  { %v2176_v56 = vpack.c.bf16 %v2119_v54, %v2118_v53  ;;  %v4412_v57 = vpop.f32.mrb[112].mxu1 }
 0x41b   :  { %v1924_v58 = vadd.f32 %v4412_v57, %v5482_v0  ;;  %v1915_v59 = vpop.f32.mrb[113].mxu1 }
 0x41c   :  { %v1916_v60 = vadd.f32 %v5482_v0, %v1915_v59  ;;  %v4413_v61 = vpop.f32.mrb[114].mxu1  ;;  %4486 = vmatprep.mubr.bf16.mxu0 %v2176_v56 }
 0x41d   :  { %v1927_v62 = vadd.f32 %v4413_v61, %v5482_v0  ;;  %v1918_v63 = vpop.f32.mrb[115].mxu1  ;;  %4487 = vmatmul.mubr.bf16.gmra.mrb[108].mxu0 %v2177_v55  ;;  %v2124_v2 = vmax.f32 %v1924_v58, 0.0 }
 0x41e   :  { %v1919_v1 = vadd.f32 %v5482_v0, %v1918_v63  ;;  %v2122_v4 = vmax.f32 %v1916_v60, 0.0 }
 0x41f   :  { %v2125_v3 = vmax.f32 %v1927_v62, 0.0 }
 0x420   :  { %v2123_v28 = vmax.f32 %v1919_v1, 0.0 }
 0x421   :  { %v2179_v5 = vpack.c.bf16 %v2125_v3, %v2124_v2 }
 0x422   :  { %v2178_v6 = vpack.c.bf16 %v2123_v28, %v2122_v4  ;;  %v4416_v8 = vpop.f32.mrb[116].mxu1 }
 0x423   :  { %v1940_v10 = vadd.f32 %v4416_v8, %v5482_v0  ;;  %v1931_v13 = vpop.f32.mrb[117].mxu1 }
 0x424   :  { %v1932_v15 = vadd.f32 %v5482_v0, %v1931_v13  ;;  %v4417_v17 = vpop.f32.mrb[118].mxu1  ;;  %4490 = vmatprep.mubr.bf16.mxu0 %v2178_v6 }
 0x425   :  { %v1943_v18 = vadd.f32 %v4417_v17, %v5482_v0  ;;  %v1934_v19 = vpop.f32.mrb[119].mxu1  ;;  %4491 = vmatmul.mubr.bf16.gmra.mrb[112].mxu0 %v2179_v5  ;;  %v2128_v21 = vmax.f32 %v1940_v10, 0.0 }
 0x426   :  { %v1935_v20 = vadd.f32 %v5482_v0, %v1934_v19  ;;  %v2126_v23 = vmax.f32 %v1932_v15, 0.0 }
 0x427   :  { %v2129_v22 = vmax.f32 %v1943_v18, 0.0 }
 0x428   :  { %v2127_v24 = vmax.f32 %v1935_v20, 0.0 }
 0x429   :  { %v2181_v25 = vpack.c.bf16 %v2129_v22, %v2128_v21 }
 0x42a   :  { %v2180_v26 = vpack.c.bf16 %v2127_v24, %v2126_v23  ;;  %v4420_v27 = vpop.f32.mrb[120].mxu1 }
 0x42b   :  { %v1956_v42 = vadd.f32 %v4420_v27, %v5482_v0  ;;  %v1947_v29 = vpop.f32.mrb[121].mxu1 }
 0x42c   :  { %v1948_v30 = vadd.f32 %v5482_v0, %v1947_v29  ;;  %v4421_v31 = vpop.f32.mrb[122].mxu1  ;;  %4494 = vmatprep.mubr.bf16.mxu0 %v2180_v26 }
 0x42d   :  { %v1959_v32 = vadd.f32 %v4421_v31, %v5482_v0  ;;  %v1950_v33 = vpop.f32.mrb[123].mxu1  ;;  %4495 = vmatmul.mubr.bf16.gmra.mrb[116].mxu0 %v2181_v25  ;;  %v2132_v35 = vmax.f32 %v1956_v42, 0.0 }
 0x42e   :  { %v1951_v34 = vadd.f32 %v5482_v0, %v1950_v33  ;;  %v2130_v37 = vmax.f32 %v1948_v30, 0.0 }
 0x42f   :  { %v2133_v36 = vmax.f32 %v1959_v32, 0.0 }
 0x430   :  { %v2131_v38 = vmax.f32 %v1951_v34, 0.0 }
 0x431   :  { %v2183_v41 = vpack.c.bf16 %v2133_v36, %v2132_v35 }
 0x432   :  { %v2182_v43 = vpack.c.bf16 %v2131_v38, %v2130_v37  ;;  %v4424_v47 = vpop.f32.mrb[124].mxu1 }
 0x433   :  { %v1972_v49 = vadd.f32 %v4424_v47, %v5482_v0  ;;  %v1963_v50 = vpop.f32.mrb[125].mxu1 }
 0x434   :  { %v1964_v51 = vadd.f32 %v5482_v0, %v1963_v50  ;;  %v4425_v48 = vpop.f32.mrb[126].mxu1  ;;  %4498 = vmatprep.mubr.bf16.mxu0 %v2182_v43 }
 0x435   :  { %v1975_v12 = vadd.f32 %v4425_v48, %v5482_v0  ;;  %v1966_v16 = vpop.f32.mrb[127].mxu1  ;;  %4499 = vmatmul.mubr.bf16.gmra.mrb[120].mxu0 %v2183_v41  ;;  %v2136_v9 = vmax.f32 %v1972_v49, 0.0 }
 0x436   :  { %v1967_v46 = vadd.f32 %v5482_v0, %v1966_v16  ;;  %v2134_v40 = vmax.f32 %v1964_v51, 0.0 }
 0x437   :  { %v2137_v14 = vmax.f32 %v1975_v12, 0.0 }
 0x438   :  { %v2135_v44 = vmax.f32 %v1967_v46, 0.0 }
 0x439   :  { %v2185_v7 = vpack.c.bf16 %v2137_v14, %v2136_v9 }
 0x43a   :  { %v2184_v11 = vpack.c.bf16 %v2135_v44, %v2134_v40  ;;  %v4428_v39 = vpop.f32.mrb[128].mxu1 }
 0x43b   :  { %v1988_v45 = vadd.f32 %v4428_v39, %v5482_v0  ;;  %v1979_v52 = vpop.f32.mrb[129].mxu1 }
 0x43c   :  { %v1980_v53 = vadd.f32 %v5482_v0, %v1979_v52  ;;  %v4429_v54 = vpop.f32.mrb[130].mxu1  ;;  %4502 = vmatprep.mubr.bf16.mxu0 %v2184_v11 }
 0x43d   :  { %v1991_v55 = vadd.f32 %v4429_v54, %v5482_v0  ;;  %v1982_v56 = vpop.f32.mrb[131].mxu1  ;;  %4503 = vmatmul.mubr.bf16.gmra.mrb[124].mxu0 %v2185_v7  ;;  %v2140_v58 = vmax.f32 %v1988_v45, 0.0 }
 0x43e   :  { %v1983_v57 = vadd.f32 %v5482_v0, %v1982_v56  ;;  %v2138_v60 = vmax.f32 %v1980_v53, 0.0 }
 0x43f   :  { %v2141_v59 = vmax.f32 %v1991_v55, 0.0 }
 0x440   :  { %v2139_v61 = vmax.f32 %v1983_v57, 0.0 }
 0x441   :  { %v2187_v62 = vpack.c.bf16 %v2141_v59, %v2140_v58 }
 0x442   :  { %v2186_v63 = vpack.c.bf16 %v2139_v61, %v2138_v60  ;;  %v4432_v1 = vpop.f32.mrb[132].mxu1 }
 0x443   :  { %v2004_v2 = vadd.f32 %v4432_v1, %v5482_v0  ;;  %v1995_v3 = vpop.f32.mrb[133].mxu1 }
 0x444   :  { %v1996_v4 = vadd.f32 %v5482_v0, %v1995_v3  ;;  %v4433_v28 = vpop.f32.mrb[134].mxu1  ;;  %4506 = vmatprep.mubr.bf16.mxu0 %v2186_v63 }
 0x445   :  { %v2007_v5 = vadd.f32 %v4433_v28, %v5482_v0  ;;  %v1998_v6 = vpop.f32.mrb[135].mxu1  ;;  %4507 = vmatmul.mubr.bf16.gmra.mrb[128].mxu0 %v2187_v62  ;;  %v2144_v10 = vmax.f32 %v2004_v2, 0.0 }
 0x446   :  { %v1999_v8 = vadd.f32 %v5482_v0, %v1998_v6  ;;  %v2142_v15 = vmax.f32 %v1996_v4, 0.0 }
 0x447   :  { %v2145_v13 = vmax.f32 %v2007_v5, 0.0 }
 0x448   :  { %v2143_v17 = vmax.f32 %v1999_v8, 0.0 }
 0x449   :  { %v2189_v18 = vpack.c.bf16 %v2145_v13, %v2144_v10 }
 0x44a   :  { %v2188_v19 = vpack.c.bf16 %v2143_v17, %v2142_v15  ;;  %v4436_v20 = vpop.f32.mrb[136].mxu1 }
 0x44b   :  { %v2020_v21 = vadd.f32 %v4436_v20, %v5482_v0  ;;  %v2011_v22 = vpop.f32.mrb[137].mxu1 }
 0x44c   :  { %v2012_v23 = vadd.f32 %v5482_v0, %v2011_v22  ;;  %v4437_v24 = vpop.f32.mrb[138].mxu1  ;;  %4510 = vmatprep.mubr.bf16.mxu0 %v2188_v19 }
 0x44d   :  { %v2023_v25 = vadd.f32 %v4437_v24, %v5482_v0  ;;  %v2014_v26 = vpop.f32.mrb[139].mxu1  ;;  %4511 = vmatmul.mubr.bf16.gmra.mrb[132].mxu0 %v2189_v18  ;;  %v2148_v42 = vmax.f32 %v2020_v21, 0.0 }
 0x44e   :  { %v2015_v27 = vadd.f32 %v5482_v0, %v2014_v26  ;;  %v2146_v30 = vmax.f32 %v2012_v23, 0.0 }
 0x44f   :  { %v2149_v29 = vmax.f32 %v2023_v25, 0.0 }
 0x450   :  { %v2147_v31 = vmax.f32 %v2015_v27, 0.0 }
 0x451   :  { %v2191_v32 = vpack.c.bf16 %v2149_v29, %v2148_v42 }
 0x452   :  { %v2190_v33 = vpack.c.bf16 %v2147_v31, %v2146_v30  ;;  %v4440_v34 = vpop.f32.mrb[140].mxu1 }
 0x453   :  { %v2036_v35 = vadd.f32 %v4440_v34, %v5482_v0  ;;  %v2027_v36 = vpop.f32.mrb[141].mxu1 }
 0x454   :  { %v2028_v37 = vadd.f32 %v5482_v0, %v2027_v36  ;;  %v4441_v38 = vpop.f32.mrb[142].mxu1  ;;  %4514 = vmatprep.mubr.bf16.mxu0 %v2190_v33 }
 0x455   :  { %v2039_v41 = vadd.f32 %v4441_v38, %v5482_v0  ;;  %v2030_v43 = vpop.f32.mrb[143].mxu1  ;;  %4515 = vmatmul.mubr.bf16.gmra.mrb[136].mxu0 %v2191_v32  ;;  %v2152_v49 = vmax.f32 %v2036_v35, 0.0 }
 0x456   :  { %v2031_v47 = vadd.f32 %v5482_v0, %v2030_v43  ;;  %v2150_v51 = vmax.f32 %v2028_v37, 0.0 }
 0x457   :  { %v2153_v50 = vmax.f32 %v2039_v41, 0.0 }
 0x458   :  { %v2151_v48 = vmax.f32 %v2031_v47, 0.0  ;;  %v5551_v47 = vld [vmem:[%s6310_s10] ss:$0 sm:$0xff] }
 0x459   :  { %v2193_v12 = vpack.c.bf16 %v2153_v50, %v2152_v49 }
 0x45a   :  { %v2192_v16 = vpack.c.bf16 %v2151_v48, %v2150_v51  ;;  %v4444_v46 = vpop.f32.mrb[144].mxu1 }
 0x45b   :  { %v2052_v9 = vadd.f32 %v4444_v46, %v5482_v0  ;;  %v2043_v14 = vpop.f32.mrb[145].mxu1 }
 0x45c   :  { %v2044_v40 = vadd.f32 %v5482_v0, %v2043_v14  ;;  %v4445_v44 = vpop.f32.mrb[146].mxu1  ;;  %4518 = vmatprep.mubr.bf16.mxu0 %v2192_v16 }
 0x45d   :  { %v2055_v7 = vadd.f32 %v4445_v44, %v5482_v0  ;;  %v2046_v11 = vpop.f32.mrb[147].mxu1  ;;  %4519 = vmatmul.mubr.bf16.gmra.mrb[140].mxu0 %v2193_v12  ;;  %v2156_v45 = vmax.f32 %v2052_v9, 0.0 }
 0x45e   :  { %v2047_v39 = vadd.f32 %v5482_v0, %v2046_v11  ;;  %v2154_v53 = vmax.f32 %v2044_v40, 0.0 }
 0x45f   :  { %v2157_v52 = vmax.f32 %v2055_v7, 0.0 }
 0x460   :  { %v2155_v54 = vmax.f32 %v2047_v39, 0.0 }
 0x461   :  { %v2195_v55 = vpack.c.bf16 %v2157_v52, %v2156_v45 }
 0x462   :  { %v2194_v56 = vpack.c.bf16 %v2155_v54, %v2154_v53  ;;  %v4448_v57 = vpop.f32.mrb[148].mxu1 }
 0x463   :  { %v2068_v58 = vadd.f32 %v4448_v57, %v5482_v0  ;;  %v2059_v59 = vpop.f32.mrb[149].mxu1 }
 0x464   :  { %v2060_v60 = vadd.f32 %v5482_v0, %v2059_v59  ;;  %v4449_v61 = vpop.f32.mrb[150].mxu1  ;;  %4522 = vmatprep.mubr.bf16.mxu0 %v2194_v56 }
 0x465   :  { %v2071_v62 = vadd.f32 %v4449_v61, %v5482_v0  ;;  %v2062_v63 = vpop.f32.mrb[151].mxu1  ;;  %4523 = vmatmul.mubr.bf16.gmra.mrb[144].mxu0 %v2195_v55  ;;  %v2160_v2 = vmax.f32 %v2068_v58, 0.0 }
 0x466   :  { %v2063_v1 = vadd.f32 %v5482_v0, %v2062_v63  ;;  %v2158_v4 = vmax.f32 %v2060_v60, 0.0 }
 0x467   :  { %v2161_v3 = vmax.f32 %v2071_v62, 0.0 }
 0x468   :  { %v2159_v28 = vmax.f32 %v2063_v1, 0.0 }
 0x469   :  { %v2197_v5 = vpack.c.bf16 %v2161_v3, %v2160_v2 }
 0x46a   :  { %v2196_v6 = vpack.c.bf16 %v2159_v28, %v2158_v4  ;;  %v4452_v8 = vpop.f32.mrb[152].mxu1 }
 0x46b   :  { %v2084_v10 = vadd.f32 %v4452_v8, %v5482_v0  ;;  %v2075_v13 = vpop.f32.mrb[153].mxu1 }
 0x46c   :  { %v2076_v15 = vadd.f32 %v5482_v0, %v2075_v13  ;;  %v4453_v17 = vpop.f32.mrb[154].mxu1  ;;  %4526 = vmatprep.mubr.bf16.mxu0 %v2196_v6 }
 0x46d   :  { %v2087_v18 = vadd.f32 %v4453_v17, %v5482_v0  ;;  %v2078_v19 = vpop.f32.mrb[155].mxu1  ;;  %4527 = vmatmul.mubr.bf16.gmra.mrb[148].mxu0 %v2197_v5  ;;  %v2164_v21 = vmax.f32 %v2084_v10, 0.0 }
 0x46e   :  { %v2079_v20 = vadd.f32 %v5482_v0, %v2078_v19  ;;  %v2162_v23 = vmax.f32 %v2076_v15, 0.0 }
 0x46f   :  { %v2165_v22 = vmax.f32 %v2087_v18, 0.0 }
 0x470   :  { %v2163_v24 = vmax.f32 %v2079_v20, 0.0 }
 0x471   :  { %v2199_v25 = vpack.c.bf16 %v2165_v22, %v2164_v21 }
 0x472   :  { %v2198_v26 = vpack.c.bf16 %v2163_v24, %v2162_v23  ;;  %v4456_v27 = vpop.f32.mrb[156].mxu1 }
 0x473   :  { %v2100_v42 = vadd.f32 %v4456_v27, %v5482_v0  ;;  %v2091_v29 = vpop.f32.mrb[157].mxu1 }
 0x474   :  { %v2092_v30 = vadd.f32 %v5482_v0, %v2091_v29  ;;  %v4457_v31 = vpop.f32.mrb[158].mxu1  ;;  %4530 = vmatprep.mubr.bf16.mxu0 %v2198_v26 }
 0x475   :  { %v2103_v32 = vadd.f32 %v4457_v31, %v5482_v0  ;;  %v2094_v33 = vpop.f32.mrb[159].mxu1  ;;  %4531 = vmatmul.mubr.bf16.gmra.mrb[152].mxu0 %v2199_v25  ;;  %v2168_v35 = vmax.f32 %v2100_v42, 0.0 }
 0x476   :  { %v2095_v34 = vadd.f32 %v5482_v0, %v2094_v33  ;;  %v2166_v37 = vmax.f32 %v2092_v30, 0.0 }
 0x477   :  { %v2169_v36 = vmax.f32 %v2103_v32, 0.0 }
 0x478   :  { %v2167_v38 = vmax.f32 %v2095_v34, 0.0 }
 0x479   :  { %v2201_v41 = vpack.c.bf16 %v2169_v36, %v2168_v35 }
 0x47a   :  { %v2200_v43 = vpack.c.bf16 %v2167_v38, %v2166_v37 }
 0x47c   :  { %4534 = vmatprep.mubr.bf16.mxu0 %v2200_v43 }
 0x47d   :  { %4535 = vmatmul.mubr.bf16.gmra.mrb[156].mxu0 %v2201_v41 }
 0x4d8   :  { %v4476_v49 = vpop.f32.mrb[96].mxu0 }
 0x4d9   :  { %v5554_v50 = vadd.f32 %v4476_v49, %v5551_v47  ;;  %v2307_v51 = vpop.f32.mrb[97].mxu0 }
 0x4da   :  { %v5557_v0 = vadd.f32 %v5551_v47, %v2307_v51  ;;  %v4477_v48 = vpop.f32.mrb[98].mxu0 }
 0x4db   :  { %v2564_v12 = vand.u32 2147483647, %v5554_v50  ;;  %v5561_v16 = vadd.f32 %v4477_v48, %v5551_v47  ;;  %v2310_v46 = vpop.f32.mrb[99].mxu0  ;;  %vm2820_vm0 = vcmp.ge.f32.partialorder %v5554_v50, 0.0 }
 0x4dc   :  { %v2562_v9 = vand.u32 2147483647, %v5557_v0  ;;  %v5565_v14 = vadd.f32 %v5551_v47, %v2310_v46  ;;  %vm2818_vm1 = vcmp.ge.f32.partialorder %v5557_v0, 0.0 }
 0x4dd   :  { %v2628_v40 = vsub.f32 0.0, %v2564_v12  ;;  %v2565_v44 = vand.u32 2147483647, %v5561_v16  ;;  %vm2821_vm2 = vcmp.ge.f32.partialorder %v5561_v16, 0.0 }
 0x4de   :  { %v2626_v7 = vsub.f32 0.0, %v2562_v9  ;;  %v2563_v11 = vand.u32 2147483647, %v5565_v14  ;;  %vm2819_vm3 = vcmp.ge.f32.partialorder %v5565_v14, 0.0 }
 0x4df   :  { %v2694_v39 = vmul.f32 1.442695, %v2628_v40  ;;  %v2629_v45 = vsub.f32 0.0, %v2565_v44 }
 0x4e0   :  { %v2690_v52 = vmul.f32 1.442695, %v2626_v7  ;;  %v2627_v53 = vsub.f32 0.0, %v2563_v11  ;;  %v4480_v54 = vpop.f32.mrb[100].mxu0 }
 0x4e1   :  { %4635 = vpow2.f32 %v2694_v39  ;;  %v2696_v55 = vmul.f32 1.442695, %v2629_v45  ;;  %v5570_v56 = vadd.f32 %v4480_v54, %v5551_v47  ;;  %v2323_v57 = vpop.f32.mrb[101].mxu0 }
 0x4e2   :  { %4637 = vpow2.f32 %v2690_v52  ;;  %v2692_v58 = vmul.f32 1.442695, %v2627_v53  ;;  %v5573_v59 = vadd.f32 %v5551_v47, %v2323_v57  ;;  %v4481_v60 = vpop.f32.mrb[102].mxu0 }
 0x4e3   :  { %4639 = vpow2.f32 %v2696_v55  ;;  %v2568_v61 = vand.u32 2147483647, %v5570_v56  ;;  %v5577_v62 = vadd.f32 %v4481_v60, %v5551_v47  ;;  %v2326_v63 = vpop.f32.mrb[103].mxu0  ;;  %vm2824_vm4 = vcmp.ge.f32.partialorder %v5570_v56, 0.0 }
 0x4e4   :  { %4641 = vpow2.f32 %v2692_v58  ;;  %v2566_v1 = vand.u32 2147483647, %v5573_v59  ;;  %v5581_v2 = vadd.f32 %v5551_v47, %v2326_v63  ;;  %vm2822_vm5 = vcmp.ge.f32.partialorder %v5573_v59, 0.0 }
 0x4e5   :  { %v2632_v3 = vsub.f32 0.0, %v2568_v61  ;;  %v2569_v4 = vand.u32 2147483647, %v5577_v62  ;;  %vm2825_vm6 = vcmp.ge.f32.partialorder %v5577_v62, 0.0 }
 0x4e6   :  { %v2630_v28 = vsub.f32 0.0, %v2566_v1  ;;  %v2567_v5 = vand.u32 2147483647, %v5581_v2  ;;  %vm2823_vm7 = vcmp.ge.f32.partialorder %v5581_v2, 0.0 }
 0x4e7   :  { %v2702_v6 = vmul.f32 1.442695, %v2632_v3  ;;  %v2633_v8 = vsub.f32 0.0, %v2569_v4 }
 0x4e8   :  { %v2698_v10 = vmul.f32 1.442695, %v2630_v28  ;;  %v2631_v13 = vsub.f32 0.0, %v2567_v5  ;;  %v4484_v15 = vpop.f32.mrb[104].mxu0 }
 0x4e9   :  { %4643 = vpow2.f32 %v2702_v6  ;;  %v2704_v17 = vmul.f32 1.442695, %v2633_v8  ;;  %v5586_v18 = vadd.f32 %v4484_v15, %v5551_v47  ;;  %v2339_v19 = vpop.f32.mrb[105].mxu0 }
 0x4ea   :  { %4645 = vpow2.f32 %v2698_v10  ;;  %v2700_v20 = vmul.f32 1.442695, %v2631_v13  ;;  %v5589_v21 = vadd.f32 %v5551_v47, %v2339_v19  ;;  %v4485_v22 = vpop.f32.mrb[106].mxu0 }
 0x4eb   :  { %v5591_v23 = vpop.eup %4635  ;;  %4647 = vpow2.f32 %v2704_v17  ;;  %v2572_v24 = vand.u32 2147483647, %v5586_v18  ;;  %v5595_v25 = vadd.f32 %v4485_v22, %v5551_v47  ;;  %v2342_v26 = vpop.f32.mrb[107].mxu0  ;;  %vm2828_vm8 = vcmp.ge.f32.partialorder %v5586_v18, 0.0 }
 0x4ec   :  { %v5597_v27 = vpop.eup %4637  ;;  %v2884_v42 = vadd.f32 1.0, %v5591_v23  ;;  %4649 = vpow2.f32 %v2700_v20  ;;  %v2570_v29 = vand.u32 2147483647, %v5589_v21  ;;  %v5609_v37 = vadd.f32 %v5551_v47, %v2342_v26 }
 0x4ed   :  { %v5601_v30 = vpop.eup %4639  ;;  %v2882_v31 = vadd.f32 1.0, %v5597_v27  ;;  %v2636_v32 = vsub.f32 0.0, %v2572_v24  ;;  %v2573_v33 = vand.u32 2147483647, %v5595_v25  ;;  %vm2826_vm9 = vcmp.ge.f32.partialorder %v5589_v21, 0.0 }
 0x4ee   :  { %v5605_v34 = vpop.eup %4641  ;;  %4651 = vrcp.f32 %v2884_v42  ;;  %v2885_v35 = vadd.f32 1.0, %v5601_v30  ;;  %v2634_v36 = vsub.f32 0.0, %v2570_v29  ;;  %v2571_v51 = vand.u32 2147483647, %v5609_v37 }
 0x4ef   :  { %4653 = vrcp.f32 %v2882_v31  ;;  %v2883_v38 = vadd.f32 1.0, %v5605_v34  ;;  %v2710_v41 = vmul.f32 1.442695, %v2636_v32  ;;  %v2637_v43 = vsub.f32 0.0, %v2573_v33 }
 0x4f0   :  { %4655 = vrcp.f32 %v2885_v35  ;;  %v2706_v49 = vmul.f32 1.442695, %v2634_v36  ;;  %v4488_v48 = vpop.f32.mrb[108].mxu0  ;;  %v2635_v40 = vsub.f32 0.0, %v2571_v51  ;;  %vm2829_vm10 = vcmp.ge.f32.partialorder %v5595_v25, 0.0 }
 0x4f1   :  { %4657 = vrcp.f32 %v2883_v38  ;;  %v2712_v12 = vmul.f32 1.442695, %v2637_v43  ;;  %v5614_v46 = vadd.f32 %v4488_v48, %v5551_v47  ;;  %v2355_v9 = vpop.f32.mrb[109].mxu0  ;;  %vm2827_vm11 = vcmp.ge.f32.partialorder %v5609_v37, 0.0 }
 0x4f2   :  { %4659 = vpow2.f32 %v2710_v41  ;;  %v5617_v44 = vadd.f32 %v5551_v47, %v2355_v9  ;;  %v4489_v7 = vpop.f32.mrb[110].mxu0  ;;  %v2708_v3 = vmul.f32 1.442695, %v2635_v40 }
 0x4f3   :  { %v5619_v11 = vpop.eup %4643  ;;  %4661 = vpow2.f32 %v2706_v49  ;;  %v2576_v39 = vand.u32 2147483647, %v5614_v46  ;;  %v5623_v45 = vadd.f32 %v4489_v7, %v5551_v47  ;;  %v2358_v52 = vpop.f32.mrb[111].mxu0  ;;  %vm2832_vm12 = vcmp.ge.f32.partialorder %v5614_v46, 0.0 }
 0x4f4   :  { %v5625_v53 = vpop.eup %4645  ;;  %v2888_v54 = vadd.f32 1.0, %v5619_v11  ;;  %4663 = vpow2.f32 %v2712_v12  ;;  %v2574_v55 = vand.u32 2147483647, %v5617_v44  ;;  %v5641_v13 = vadd.f32 %v5551_v47, %v2358_v52 }
 0x4f5   :  { %v5630_v57 = vpop.eup %4647  ;;  %v2886_v58 = vadd.f32 1.0, %v5625_v53  ;;  %v2640_v60 = vsub.f32 0.0, %v2576_v39  ;;  %v2577_v61 = vand.u32 2147483647, %v5623_v45  ;;  %vm2833_vm13 = vcmp.ge.f32.partialorder %v5623_v45, 0.0 }
 0x4f6   :  { %v5635_v63 = vpop.eup %4649  ;;  %4665 = vrcp.f32 %v2888_v54  ;;  %v2889_v1 = vadd.f32 1.0, %v5630_v57  ;;  %v2638_v4 = vsub.f32 0.0, %v2574_v55  ;;  %v2575_v29 = vand.u32 2147483647, %v5641_v13 }
 0x4f7   :  { %4667 = vrcp.f32 %v2886_v58  ;;  %v2887_v28 = vadd.f32 1.0, %v5635_v63  ;;  %v2718_v5 = vmul.f32 1.442695, %v2640_v60  ;;  %v2641_v6 = vsub.f32 0.0, %v2577_v61 }
 0x4f8   :  { %v4652_v8 = vpop.eup %4651  ;;  %4669 = vrcp.f32 %v2889_v1  ;;  %v2714_v10 = vmul.f32 1.442695, %v2638_v4  ;;  %v4492_v15 = vpop.f32.mrb[112].mxu0  ;;  %v2639_v43 = vsub.f32 0.0, %v2575_v29  ;;  %vm2830_vm14 = vcmp.ge.f32.partialorder %v5617_v44, 0.0 }
 0x4f9   :  { %v4654_v17 = vpop.eup %4653  ;;  %v3076_v19 = vmul.f32 %v4652_v8, %v5591_v23  ;;  %4671 = vrcp.f32 %v2887_v28  ;;  %v2720_v20 = vmul.f32 1.442695, %v2641_v6  ;;  %v5645_v22 = vadd.f32 %v4492_v15, %v5551_v47  ;;  %v2371_v24 = vpop.f32.mrb[113].mxu0 }
 0x4fa   :  { %v4656_v26 = vpop.eup %4655  ;;  %v3074_v42 = vmul.f32 %v4654_v17, %v5597_v27  ;;  %4673 = vpow2.f32 %v2708_v3  ;;  %v4493_v31 = vpop.f32.mrb[114].mxu0  ;;  %v5672_v52 = vadd.f32 %v5551_v47, %v2371_v24  ;;  %vm2831_vm15 = vcmp.ge.f32.partialorder %v5641_v13, 0.0 }
 0x4fb   :  { %v4658_v32 = vpop.eup %4657  ;;  %v3140_v33 = vsel %vm2820_vm0, %v4652_v8, %v3076_v19  ;;  %v3077_v23 = vmul.f32 %v4656_v26, %v5601_v30  ;;  %4675 = vpow2.f32 %v2718_v5  ;;  %v2580_v35 = vand.u32 2147483647, %v5645_v22  ;;  %v2374_v36 = vpop.f32.mrb[115].mxu0 }
 0x4fc   :  { %v5654_v38 = vpop.eup %4659  ;;  %v3138_v27 = vsel %vm2818_vm1, %v4654_v17, %v3074_v42  ;;  %v3075_v41 = vmul.f32 %v4658_v32, %v5605_v34  ;;  %4677 = vpow2.f32 %v2714_v10  ;;  %v2716_v34 = vmul.f32 1.442695, %v2639_v43 }
 0x4fd   :  { %v5659_v49 = vpop.eup %4661  ;;  %v3141_v50 = vsel %vm2821_vm2, %v4656_v26, %v3077_v23  ;;  %v2892_v30 = vadd.f32 1.0, %v5654_v38  ;;  %4679 = vpow2.f32 %v2720_v20  ;;  %v2644_v51 = vsub.f32 0.0, %v2580_v35 }
 0x4fe   :  { %v5664_v48 = vpop.eup %4663  ;;  %v3755_v12 = vpack.c.bf16 %v3141_v50, %v3140_v33  ;;  %v3139_v0 = vsel %vm2819_vm3, %v4658_v32, %v3075_v41  ;;  %v2890_v9 = vadd.f32 1.0, %v5659_v49  ;;  %v5675_v54 = vadd.f32 %v4493_v31, %v5551_v47 }
 0x4ff   :  { %v3750_v40 = vpack.c.bf16 %v3139_v0, %v3138_v27  ;;  %4681 = vrcp.f32 %v2892_v30  ;;  %v2893_v7 = vadd.f32 1.0, %v5664_v48  ;;  %v2726_v39 = vmul.f32 1.442695, %v2644_v51 }
 0x500   :  { %v4666_v16 = vpop.eup %4665  ;;  %3907 = vst [vmem:[#allocation13 + $0x8] sm:$0xff] %v3755_v12   ;;  %4683 = vrcp.f32 %v2890_v9  ;;  %v4496_v14 = vpop.f32.mrb[116].mxu0  ;;  %v5680_v60 = vadd.f32 %v5551_v47, %v2374_v36  ;;  %v2578_v4 = vand.u32 2147483647, %v5672_v52  ;;  %vm2836_vm0 = vcmp.ge.f32.partialorder %v5645_v22, 0.0 }
 0x501   :  { %v4668_v55 = vpop.eup %4667  ;;  %3751 = vst [vmem:[#allocation13] sm:$0xff] %v3750_v40   ;;  %v3080_v58 = vmul.f32 %v4666_v16, %v5619_v11  ;;  %4685 = vrcp.f32 %v2893_v7  ;;  %v2387_v61 = vpop.f32.mrb[117].mxu0  ;;  %v2581_v11 = vand.u32 2147483647, %v5675_v54  ;;  %v5694_v19 = vadd.f32 %v4496_v14, %v5551_v47 }
 0x502   :  { %v4670_v1 = vpop.eup %4669  ;;  %v3078_v3 = vmul.f32 %v4668_v55, %v5625_v53  ;;  %4687 = vpow2.f32 %v2716_v34  ;;  %v4497_v28 = vpop.f32.mrb[118].mxu0  ;;  %v2642_v17 = vsub.f32 0.0, %v2578_v4  ;;  %v2579_v42 = vand.u32 2147483647, %v5680_v60 }
 0x503   :  { %v4672_v5 = vpop.eup %4671  ;;  %v3081_v6 = vmul.f32 %v4670_v1, %v5630_v57  ;;  %4689 = vpow2.f32 %v2726_v39  ;;  %v2390_v8 = vpop.f32.mrb[119].mxu0  ;;  %v3144_v53 = vsel %vm2824_vm4, %v4666_v16, %v3080_v58  ;;  %v2645_v26 = vsub.f32 0.0, %v2581_v11 }
 0x504   :  { %v5688_v10 = vpop.eup %4673  ;;  %v3079_v15 = vmul.f32 %v4672_v5, %v5635_v63  ;;  %v3142_v56 = vsel %vm2822_vm5, %v4668_v55, %v3078_v3  ;;  %v2722_v35 = vmul.f32 1.442695, %v2642_v17  ;;  %v2643_v59 = vsub.f32 0.0, %v2579_v42 }
 0x505   :  { %v5696_v20 = vpop.eup %4675  ;;  %v3145_v57 = vsel %vm2825_vm6, %v4670_v1, %v3081_v6  ;;  %v2891_v24 = vadd.f32 1.0, %v5688_v10  ;;  %v2728_v27 = vmul.f32 1.442695, %v2645_v26  ;;  %v2584_v2 = vand.u32 2147483647, %v5694_v19 }
 0x506   :  { %v5702_v29 = vpop.eup %4677  ;;  %v3765_v63 = vpack.c.bf16 %v3145_v57, %v3144_v53  ;;  %v3143_v31 = vsel %vm2823_vm7, %v4672_v5, %v3079_v15  ;;  %v2896_v32 = vadd.f32 1.0, %v5696_v20  ;;  %v5715_v50 = vadd.f32 %v5551_v47, %v2387_v61 }
 0x507   :  { %v5709_v33 = vpop.eup %4679  ;;  %v3760_v62 = vpack.c.bf16 %v3143_v31, %v3142_v56  ;;  %4691 = vrcp.f32 %v2891_v24  ;;  %v2894_v23 = vadd.f32 1.0, %v5702_v29  ;;  %v2724_v0 = vmul.f32 1.442695, %v2643_v59 }
 0x508   :  { %3909 = vst [vmem:[#allocation13 + $0x18] sm:$0xff] %v3765_v63   ;;  %4693 = vrcp.f32 %v2896_v32  ;;  %v2897_v36 = vadd.f32 1.0, %v5709_v33  ;;  %v4500_v41 = vpop.f32.mrb[120].mxu0  ;;  %v5719_v9 = vadd.f32 %v4497_v28, %v5551_v47  ;;  %v2648_v7 = vsub.f32 0.0, %v2584_v2 }
 0x509   :  { %v4682_v43 = vpop.eup %4681  ;;  %3908 = vst [vmem:[#allocation13 + $0x10] sm:$0xff] %v3760_v62   ;;  %4695 = vrcp.f32 %v2894_v23  ;;  %v2403_v30 = vpop.f32.mrb[121].mxu0  ;;  %v2582_v39 = vand.u32 2147483647, %v5715_v50  ;;  %v5743_v53 = vadd.f32 %v4500_v41, %v5551_v47  ;;  %vm2834_vm1 = vcmp.ge.f32.partialorder %v5672_v52, 0.0 }
 0x50a   :  { %v4684_v51 = vpop.eup %4683  ;;  %v3084_v12 = vmul.f32 %v4682_v43, %v5654_v38  ;;  %4697 = vrcp.f32 %v2897_v36  ;;  %v5721_v34 = vpop.f32.mrb[122].mxu0  ;;  %v2734_v58 = vmul.f32 1.442695, %v2648_v7  ;;  %v2585_v4 = vand.u32 2147483647, %v5719_v9 }
 0x50b   :  { %v4686_v40 = vpop.eup %4685  ;;  %4699 = vpow2.f32 %v2722_v35  ;;  %v5725_v16 = vpop.f32.mrb[123].mxu0  ;;  %v2646_v3 = vsub.f32 0.0, %v2582_v39  ;;  %v3082_v5 = vmul.f32 %v4684_v51, %v5659_v49  ;;  %v5748_v24 = vadd.f32 %v5551_v47, %v2403_v30 }
 0x50c   :  { %v5727_v14 = vpop.eup %4687  ;;  %v3085_v38 = vmul.f32 %v4686_v40, %v5664_v48  ;;  %4701 = vpow2.f32 %v2728_v27  ;;  %v3148_v61 = vsel %vm2828_vm8, %v4682_v43, %v3084_v12  ;;  %v5739_v48 = vadd.f32 %v5551_v47, %v2390_v8 }
 0x50d   :  { %v5732_v55 = vpop.eup %4689  ;;  %v2895_v18 = vadd.f32 1.0, %v5727_v14  ;;  %4703 = vpow2.f32 %v2724_v0  ;;  %v2730_v6 = vmul.f32 1.442695, %v2646_v3  ;;  %v2649_v11 = vsub.f32 0.0, %v2585_v4 }
 0x50e   :  { %v3149_v1 = vsel %vm2829_vm10, %v4686_v40, %v3085_v38  ;;  %v2900_v25 = vadd.f32 1.0, %v5732_v55  ;;  %v2583_v57 = vand.u32 2147483647, %v5739_v48  ;;  %v2588_v56 = vand.u32 2147483647, %v5743_v53 }
 0x50f   :  { %v3775_v28 = vpack.c.bf16 %v3149_v1, %v3148_v61  ;;  %4705 = vrcp.f32 %v2895_v18  ;;  %v2736_v42 = vmul.f32 1.442695, %v2649_v11  ;;  %v2586_v23 = vand.u32 2147483647, %v5748_v24 }
 0x510   :  { %v4504_v15 = vpop.f32.mrb[124].mxu0  ;;  %4707 = vpow2.f32 %v2734_v58  ;;  %v2647_v62 = vsub.f32 0.0, %v2583_v57  ;;  %v3146_v27 = vsel %vm2826_vm9, %v4684_v51, %v3082_v5  ;;  %v2652_v59 = vsub.f32 0.0, %v2588_v56 }
 0x511   :  { %v4692_v17 = vpop.eup %4691  ;;  %3911 = vst [vmem:[#allocation13 + $0x28] sm:$0xff] %v3775_v28   ;;  %v2419_v8 = vpop.f32.mrb[125].mxu0  ;;  %4709 = vpow2.f32 %v2730_v6  ;;  %v2650_v51 = vsub.f32 0.0, %v2586_v23  ;;  %v5783_v58 = vadd.f32 %v5551_v47, %v5725_v16  ;;  %v5790_v3 = vadd.f32 %v4504_v15, %v5551_v47 }
 0x512   :  { %v4694_v26 = vpop.eup %4693  ;;  %v3083_v49 = vmul.f32 %v4692_v17, %v5688_v10  ;;  %v4505_v63 = vpop.f32.mrb[126].mxu0  ;;  %4711 = vrcp.f32 %v2900_v25  ;;  %v2732_v2 = vmul.f32 1.442695, %v2647_v62  ;;  %v2742_v45 = vmul.f32 1.442695, %v2652_v59 }
 0x513   :  { %v4696_v31 = vpop.eup %4695  ;;  %v3088_v32 = vmul.f32 %v4694_v26, %v5696_v20  ;;  %v5754_v35 = vpop.f32.mrb[127].mxu0  ;;  %4713 = vpow2.f32 %v2736_v42  ;;  %v2738_v38 = vmul.f32 1.442695, %v2650_v51  ;;  %v5799_v28 = vadd.f32 %v5551_v47, %v2419_v8 }
 0x514   :  { %v4698_v36 = vpop.eup %4697  ;;  %v3147_v10 = vsel %vm2827_vm11, %v4692_v17, %v3083_v49  ;;  %v3086_v21 = vmul.f32 %v4696_v31, %v5702_v29  ;;  %4715 = vpow2.f32 %v2732_v2  ;;  %v5779_v29 = vadd.f32 %v5721_v34, %v5551_v47 }
 0x515   :  { %v5760_v41 = vpop.eup %4699  ;;  %v3770_v43 = vpack.c.bf16 %v3147_v10, %v3146_v27  ;;  %v3089_v20 = vmul.f32 %v4698_v36, %v5709_v33  ;;  %v3152_v12 = vsel %vm2832_vm12, %v4694_v26, %v3088_v32  ;;  %v2587_v6 = vand.u32 2147483647, %v5783_v58 }
 0x516   :  { %v5764_v30 = vpop.eup %4701  ;;  %v2898_v37 = vadd.f32 1.0, %v5760_v41  ;;  %v3150_v34 = vsel %vm2830_vm14, %v4696_v31, %v3086_v21  ;;  %v2589_v16 = vand.u32 2147483647, %v5779_v29  ;;  %v5809_v26 = vadd.f32 %v4505_v63, %v5551_v47 }
 0x517   :  { %v5770_v0 = vpop.eup %4703  ;;  %3910 = vst [vmem:[#allocation13 + $0x20] sm:$0xff] %v3770_v43   ;;  %v3153_v40 = vsel %vm2833_vm13, %v4698_v36, %v3089_v20  ;;  %v2901_v7 = vadd.f32 1.0, %v5764_v30  ;;  %v2651_v49 = vsub.f32 0.0, %v2587_v6  ;;  %v2592_v42 = vand.u32 2147483647, %v5790_v3 }
 0x518   :  { %v3785_v33 = vpack.c.bf16 %v3153_v40, %v3152_v12  ;;  %4717 = vrcp.f32 %v2898_v37  ;;  %v2899_v39 = vadd.f32 1.0, %v5770_v0  ;;  %v5774_v46 = vpop.f32.mrb[128].mxu0  ;;  %v2653_v57 = vsub.f32 0.0, %v2589_v16 }
 0x519   :  { %v4706_v18 = vpop.eup %4705  ;;  %4719 = vrcp.f32 %v2901_v7  ;;  %v5785_v61 = vpop.f32.mrb[129].mxu0  ;;  %vm2837_vm2 = vcmp.ge.f32.partialorder %v5675_v54, 0.0  ;;  %v2740_v62 = vmul.f32 1.442695, %v2651_v49  ;;  %v2656_v63 = vsub.f32 0.0, %v2592_v42 }
 0x51a   :  { %3913 = vst [vmem:[#allocation13 + $0x38] sm:$0xff] %v3785_v33   ;;  %v3087_v1 = vmul.f32 %v4706_v18, %v5727_v14  ;;  %4721 = vrcp.f32 %v2899_v39  ;;  %v5792_v44 = vpop.f32.mrb[130].mxu0  ;;  %v5794_v4 = vpop.eup %4707  ;;  %v2744_v31 = vmul.f32 1.442695, %v2653_v57  ;;  %v2590_v23 = vand.u32 2147483647, %v5799_v28 }
 0x51b   :  { %4723 = vpow2.f32 %v2742_v45  ;;  %v5801_v13 = vpop.f32.mrb[131].mxu0  ;;  %v5803_v14 = vpop.eup %4709  ;;  %v2904_v5 = vadd.f32 1.0, %v5794_v4  ;;  %vm2835_vm3 = vcmp.ge.f32.partialorder %v5680_v60, 0.0  ;;  %v2593_v27 = vand.u32 2147483647, %v5809_v26 }
 0x51c   :  { %v3151_v25 = vsel %vm2831_vm15, %v4706_v18, %v3087_v1  ;;  %4725 = vpow2.f32 %v2738_v38  ;;  %v4712_v11 = vpop.eup %4711  ;;  %v2902_v17 = vadd.f32 1.0, %v5803_v14  ;;  %v5825_v10 = vadd.f32 %v5551_v47, %v5754_v35 }
 0x51d   :  { %v3780_v15 = vpack.c.bf16 %v3151_v25, %v3150_v34  ;;  %v5811_v8 = vpop.eup %4713  ;;  %4727 = vrcp.f32 %v2904_v5  ;;  %v3092_v32 = vmul.f32 %v4712_v11, %v5732_v55  ;;  %v2750_v20 = vmul.f32 1.442695, %v2656_v63 }
 0x51e   :  { %4729 = vrcp.f32 %v2902_v17  ;;  %v2905_v56 = vadd.f32 1.0, %v5811_v8  ;;  %v5819_v36 = vpop.eup %4715  ;;  %v2654_v2 = vsub.f32 0.0, %v2590_v23  ;;  %vm2840_vm4 = vcmp.ge.f32.partialorder %v5694_v19, 0.0 }
 0x51f   :  { %3912 = vst [vmem:[#allocation13 + $0x30] sm:$0xff] %v3780_v15   ;;  %v2903_v55 = vadd.f32 1.0, %v5819_v36  ;;  %v2657_v51 = vsub.f32 0.0, %v2593_v27  ;;  %v2591_v35 = vand.u32 2147483647, %v5825_v10  ;;  %v3156_v45 = vsel %vm2836_vm0, %v4712_v11, %v3092_v32 }
 0x520   :  { %4731 = vrcp.f32 %v2905_v56  ;;  %v5827_v59 = vpop.f32.mrb[132].mxu0  ;;  %v2746_v39 = vmul.f32 1.442695, %v2654_v2  ;;  %v5857_v17 = vadd.f32 %v5774_v46, %v5551_v47  ;;  %v5864_v60 = vadd.f32 %v5551_v47, %v5785_v61 }
 0x521   :  { %4733 = vpow2.f32 %v2744_v31  ;;  %v5830_v12 = vpop.f32.mrb[133].mxu0  ;;  %v2752_v34 = vmul.f32 1.442695, %v2657_v51  ;;  %v2655_v25 = vsub.f32 0.0, %v2591_v35  ;;  %v5868_v42 = vadd.f32 %v5792_v44, %v5551_v47 }
 0x522   :  { %v4718_v43 = vpop.eup %4717  ;;  %4735 = vpow2.f32 %v2740_v62  ;;  %v5835_v40 = vpop.f32.mrb[134].mxu0  ;;  %vm2838_vm5 = vcmp.ge.f32.partialorder %v5715_v50, 0.0  ;;  %v2596_v31 = vand.u32 2147483647, %v5857_v17  ;;  %vm2841_vm6 = vcmp.ge.f32.partialorder %v5719_v9, 0.0 }
 0x523   :  { %v4720_v21 = vpop.eup %4719  ;;  %v3090_v37 = vmul.f32 %v4718_v43, %v5760_v41  ;;  %4737 = vrcp.f32 %v2903_v55  ;;  %v5840_v38 = vpop.f32.mrb[135].mxu0  ;;  %v2748_v15 = vmul.f32 1.442695, %v2655_v25  ;;  %v2594_v61 = vand.u32 2147483647, %v5864_v60 }
 0x524   :  { %v4722_v7 = vpop.eup %4721  ;;  %v3093_v33 = vmul.f32 %v4720_v21, %v5764_v30  ;;  %4739 = vpow2.f32 %v2750_v20  ;;  %v2597_v44 = vand.u32 2147483647, %v5868_v42  ;;  %vm2839_vm7 = vcmp.ge.f32.partialorder %v5739_v48, 0.0 }
 0x525   :  { %v5842_v18 = vpop.eup %4723  ;;  %v3154_v41 = vsel %vm2834_vm1, %v4718_v43, %v3090_v37  ;;  %v3091_v1 = vmul.f32 %v4722_v7, %v5770_v0  ;;  %4741 = vpow2.f32 %v2746_v39  ;;  %v2660_v27 = vsub.f32 0.0, %v2596_v31 }
 0x526   :  { %v5847_v16 = vpop.eup %4725  ;;  %v3157_v22 = vsel %vm2837_vm2, %v4720_v21, %v3093_v33  ;;  %v2908_v30 = vadd.f32 1.0, %v5842_v18  ;;  %4743 = vpow2.f32 %v2752_v34  ;;  %v2658_v20 = vsub.f32 0.0, %v2594_v61 }
 0x527   :  { %v3795_v5 = vpack.c.bf16 %v3157_v22, %v3156_v45  ;;  %v3155_v6 = vsel %vm2835_vm3, %v4722_v7, %v3091_v1  ;;  %v2906_v52 = vadd.f32 1.0, %v5847_v16  ;;  %v4728_v11 = vpop.eup %4727  ;;  %v2661_v2 = vsub.f32 0.0, %v2597_v44 }
 0x528   :  { %v3790_v0 = vpack.c.bf16 %v3155_v6, %v3154_v41  ;;  %4745 = vrcp.f32 %v2908_v30  ;;  %v5859_v54 = vpop.f32.mrb[136].mxu0  ;;  %v4730_v57 = vpop.eup %4729  ;;  %v3096_v49 = vmul.f32 %v4728_v11, %v5794_v4  ;;  %v5893_v21 = vadd.f32 %v5551_v47, %v5801_v13 }
 0x529   :  { %3915 = vst [vmem:[#allocation13 + $0x48] sm:$0xff] %v3795_v5   ;;  %4747 = vrcp.f32 %v2906_v52  ;;  %v5870_v56 = vpop.f32.mrb[137].mxu0  ;;  %v3094_v46 = vmul.f32 %v4730_v57, %v5803_v14  ;;  %v2758_v35 = vmul.f32 1.442695, %v2660_v27  ;;  %v5905_v13 = vadd.f32 %v5827_v59, %v5551_v47 }
 0x52a   :  { %3914 = vst [vmem:[#allocation13 + $0x40] sm:$0xff] %v3790_v0   ;;  %4749 = vpow2.f32 %v2748_v15  ;;  %v5875_v4 = vpop.f32.mrb[138].mxu0  ;;  %v4732_v32 = vpop.eup %4731  ;;  %v3160_v23 = vsel %vm2840_vm4, %v4728_v11, %v3096_v49  ;;  %v2754_v9 = vmul.f32 1.442695, %v2658_v20  ;;  %v2595_v41 = vand.u32 2147483647, %v5893_v21 }
 0x52b   :  { %v5880_v62 = vpop.f32.mrb[139].mxu0  ;;  %v5882_v63 = vpop.eup %4733  ;;  %v3097_v14 = vmul.f32 %v4732_v32, %v5811_v8  ;;  %v3158_v19 = vsel %vm2838_vm5, %v4730_v57, %v3094_v46  ;;  %v2760_v59 = vmul.f32 1.442695, %v2661_v2  ;;  %vm2844_vm8 = vcmp.ge.f32.partialorder %v5743_v53, 0.0 }
 0x52c   :  { %v5888_v43 = vpop.eup %4735  ;;  %v2909_v55 = vadd.f32 1.0, %v5882_v63  ;;  %v2659_v52 = vsub.f32 0.0, %v2595_v41  ;;  %vm2842_vm9 = vcmp.ge.f32.partialorder %v5748_v24, 0.0  ;;  %v2600_v48 = vand.u32 2147483647, %v5905_v13 }
 0x52d   :  { %v4738_v37 = vpop.eup %4737  ;;  %v3161_v8 = vsel %vm2841_vm6, %v4732_v32, %v3097_v14  ;;  %v2907_v51 = vadd.f32 1.0, %v5888_v43  ;;  %vm2845_vm10 = vcmp.ge.f32.partialorder %v5779_v29, 0.0  ;;  %v5933_v46 = vadd.f32 %v5551_v47, %v5830_v12 }
 0x52e   :  { %v5900_v7 = vpop.eup %4739  ;;  %v3805_v45 = vpack.c.bf16 %v3161_v8, %v3160_v23  ;;  %v3095_v33 = vmul.f32 %v4738_v37, %v5819_v36  ;;  %4751 = vrcp.f32 %v2909_v55  ;;  %v2756_v49 = vmul.f32 1.442695, %v2659_v52 }
 0x52f   :  { %v5907_v39 = vpop.eup %4741  ;;  %4753 = vrcp.f32 %v2907_v51  ;;  %v2912_v50 = vadd.f32 1.0, %v5900_v7  ;;  %v2664_v61 = vsub.f32 0.0, %v2600_v48  ;;  %vm2843_vm11 = vcmp.ge.f32.partialorder %v5783_v58, 0.0 }
 0x530   :  { %v5911_v1 = vpop.f32.mrb[140].mxu0  ;;  %v5913_v34 = vpop.eup %4743  ;;  %3917 = vst [vmem:[#allocation13 + $0x58] sm:$0xff] %v3805_v45   ;;  %v3159_v36 = vsel %vm2839_vm7, %v4738_v37, %v3095_v33  ;;  %v2910_v22 = vadd.f32 1.0, %v5907_v39  ;;  %4755 = vpow2.f32 %v2758_v35  ;;  %v2598_v23 = vand.u32 2147483647, %v5933_v46 }
 0x531   :  { %v5918_v30 = vpop.f32.mrb[141].mxu0  ;;  %v3800_v5 = vpack.c.bf16 %v3159_v36, %v3158_v19  ;;  %4757 = vrcp.f32 %v2912_v50  ;;  %v2913_v6 = vadd.f32 1.0, %v5913_v34  ;;  %vm2848_vm12 = vcmp.ge.f32.partialorder %v5790_v3, 0.0 }
 0x532   :  { %v4746_v25 = vpop.eup %4745  ;;  %v5921_v11 = vpop.f32.mrb[142].mxu0  ;;  %4759 = vrcp.f32 %v2910_v22  ;;  %v2766_v14 = vmul.f32 1.442695, %v2664_v61  ;;  %v5943_v12 = vadd.f32 %v5835_v40, %v5551_v47  ;;  %vm2846_vm13 = vcmp.ge.f32.partialorder %v5799_v28, 0.0 }
 0x533   :  { %v4748_v0 = vpop.eup %4747  ;;  %v5926_v15 = vpop.f32.mrb[143].mxu0  ;;  %3916 = vst [vmem:[#allocation13 + $0x50] sm:$0xff] %v3800_v5   ;;  %4761 = vrcp.f32 %v2913_v6  ;;  %v3100_v31 = vmul.f32 %v4746_v25, %v5842_v18  ;;  %v5947_v18 = vadd.f32 %v5551_v47, %v5840_v38  ;;  %vm2849_vm14 = vcmp.ge.f32.partialorder %v5809_v26, 0.0  ;;  %v6015_v26 = vld [vmem:[%s6310_s10] ss:$0 sm:$0xff]  ;;  %s5064_s10 = smov [#allocation13]  }
 0x534   :  { %v5928_v57 = vpop.eup %4749  ;;  %4763 = vpow2.f32 %v2754_v9  ;;  %v3098_v44 = vmul.f32 %v4748_v0, %v5847_v16  ;;  %v2662_v16 = vsub.f32 0.0, %v2598_v23  ;;  %v5953_v27 = vadd.f32 %v5859_v54, %v5551_v47  ;;  %s3527_s21 = sshll.u32 %s5064_s10, 4  ;;  %s3528_s21 = int_to_ptr.vmem [resolvable:$true] %s3527_s21 }
 0x535   :  { %v2911_v32 = vadd.f32 1.0, %v5928_v57  ;;  %4765 = vpow2.f32 %v2760_v59  ;;  %v3164_v40 = vsel %vm2844_vm8, %v4746_v25, %v3100_v31  ;;  %v2601_v38 = vand.u32 2147483647, %v5943_v12  ;;  %s5024_s22 = scalar_lea.vmem %s3528_s21, 4096  ;;  %p5029_p7 = scmp.lt.s32.totalorder %s3528_s21, %s3528_s21 }
 0x536   :  { %v2599_v2 = vand.u32 2147483647, %v5947_v18  ;;  %v3162_v8 = vsel %vm2842_vm9, %v4748_v0, %v3098_v44  ;;  %v2762_v51 = vmul.f32 1.442695, %v2662_v16  ;;  %v2604_v35 = vand.u32 2147483647, %v5953_v27  ;;  %p5025_p6 = scmp.ne.s32.totalorder %s3528_s21, %s5024_s22  ;;  %p5030_p8 = scmp.lt.s32.totalorder %s5024_s22, %s5024_s22 }
 0x537   :  { %4767 = vrcp.f32 %v2911_v32  ;;  %v2665_v50 = vsub.f32 0.0, %v2601_v38  ;;  %v5974_v41 = vadd.f32 %v5551_v47, %v5870_v56  ;;  %vm2847_vm15 = vcmp.ge.f32.partialorder %v5825_v10, 0.0 }
 0x538   :  { %4769 = vpow2.f32 %v2756_v49  ;;  %v5955_v55 = vpop.f32.mrb[144].mxu0  ;;  %v4752_v20 = vpop.eup %4751  ;;  %v2663_v9 = vsub.f32 0.0, %v2599_v2  ;;  %v2668_v59 = vsub.f32 0.0, %v2604_v35  ;;  %vm2852_vm0 = vcmp.ge.f32.partialorder %v5857_v17, 0.0  ;;  %p5031_p9 = por %p5030_p8, %p5029_p7 }
 0x539   :  { %4771 = vpow2.f32 %v2766_v14  ;;  %v5961_v37 = vpop.f32.mrb[145].mxu0  ;;  %v4754_v19 = vpop.eup %4753  ;;  %v3101_v54 = vmul.f32 %v4752_v20, %v5882_v63  ;;  %v2768_v52 = vmul.f32 1.442695, %v2665_v50  ;;  %v6032_v50 = vadd.f32 %v6015_v26, %v5911_v1 }
 0x53a   :  { %v5967_v45 = vpop.f32.mrb[146].mxu0  ;;  %v5969_v53 = vpop.eup %4755  ;;  %v3099_v33 = vmul.f32 %v4754_v19, %v5888_v43  ;;  %4773 = vpow2.f32 %v2762_v51  ;;  %v2764_v48 = vmul.f32 1.442695, %v2663_v9  ;;  %v2774_v31 = vmul.f32 1.442695, %v2668_v59  ;;  %p5032_p10 = pnand %p5031_p9, %p5025_p6 }
 0x53b   :  { %v5976_v36 = vpop.f32.mrb[147].mxu0  ;;  %v4758_v24 = vpop.eup %4757  ;;  %v3165_v63 = vsel %vm2845_vm10, %v4752_v20, %v3101_v54  ;;  %v2916_v22 = vadd.f32 1.0, %v5969_v53  ;;  %vm2850_vm1 = vcmp.ge.f32.partialorder %v5864_v60, 0.0  ;;  %vm2853_vm2 = vcmp.ge.f32.partialorder %v5868_v42, 0.0 }
 0x53c   :  { %v4760_v25 = vpop.eup %4759  ;;  %v3815_v5 = vpack.c.bf16 %v3165_v63, %v3164_v40  ;;  %v3163_v43 = vsel %vm2843_vm11, %v4754_v19, %v3099_v33  ;;  %v3104_v6 = vmul.f32 %v4758_v24, %v5900_v7  ;;  %v2608_v63 = vand.u32 2147483647, %v6032_v50 }
 0x53d   :  { %v4762_v47 = vpop.eup %4761  ;;  %v3810_v56 = vpack.c.bf16 %v3163_v43, %v3162_v8  ;;  %v3102_v0 = vmul.f32 %v4760_v25, %v5907_v39  ;;  %4775 = vrcp.f32 %v2916_v22  ;;  %v2602_v39 = vand.u32 2147483647, %v5974_v41 }
 0x53e   :  { %v5985_v29 = vpop.eup %4763  ;;  %3919 = vst [vmem:[#allocation13 + $0x68] sm:$0xff] %v3815_v5   ;;  %v3105_v49 = vmul.f32 %v4762_v47, %v5913_v34  ;;  %4777 = vpow2.f32 %v2768_v52  ;;  %v3168_v7 = vsel %vm2848_vm12, %v4758_v24, %v3104_v6  ;;  %v6019_v8 = vadd.f32 %v6015_v26, %v5875_v4 }
 0x53f   :  { %v5989_v58 = vpop.eup %4765  ;;  %3918 = vst [vmem:[#allocation13 + $0x60] sm:$0xff] %v3810_v56   ;;  %v2914_v32 = vadd.f32 1.0, %v5985_v29  ;;  %4779 = vpow2.f32 %v2764_v48  ;;  %v3166_v34 = vsel %vm2846_vm13, %v4760_v25, %v3102_v0  ;;  %v2666_v38 = vsub.f32 0.0, %v2602_v39 }
 0x540   :  { %v5995_v61 = vpop.f32.mrb[148].mxu0  ;;  %v3169_v23 = vsel %vm2849_vm14, %v4762_v47, %v3105_v49  ;;  %v2917_v14 = vadd.f32 1.0, %v5989_v58  ;;  %4781 = vpow2.f32 %v2774_v31  ;;  %v2605_v4 = vand.u32 2147483647, %v6019_v8 }
 0x541   :  { %v4768_v44 = vpop.eup %4767  ;;  %v6002_v16 = vpop.f32.mrb[149].mxu0  ;;  %v3825_v20 = vpack.c.bf16 %v3169_v23, %v3168_v7  ;;  %4783 = vrcp.f32 %v2914_v32  ;;  %v2770_v33 = vmul.f32 1.442695, %v2666_v38  ;;  %v2672_v25 = vsub.f32 0.0, %v2608_v63 }
 0x542   :  { %v6004_v3 = vpop.eup %4769  ;;  %v3103_v40 = vmul.f32 %v4768_v44, %v5928_v57  ;;  %v6007_v2 = vpop.f32.mrb[150].mxu0  ;;  %4785 = vrcp.f32 %v2917_v14  ;;  %v6023_v57 = vadd.f32 %v6015_v26, %v5880_v62  ;;  %v2669_v22 = vsub.f32 0.0, %v2605_v4 }
 0x543   :  { %v6009_v19 = vpop.eup %4771  ;;  %v2915_v28 = vadd.f32 1.0, %v6004_v3  ;;  %v6025_v54 = vpop.f32.mrb[151].mxu0  ;;  %3921 = vst [vmem:[#allocation13 + $0x78] sm:$0xff] %v3825_v20   ;;  %v6043_v5 = vadd.f32 %v6015_v26, %v5918_v30  ;;  %v6047_v43 = vadd.f32 %v6015_v26, %v5921_v11  ;;  %v6056_v56 = vadd.f32 %v6015_v26, %v5926_v15 }
 0x544   :  { %v3167_v51 = vsel %vm2847_vm15, %v4768_v44, %v3103_v40  ;;  %v2920_v35 = vadd.f32 1.0, %v6009_v19  ;;  %v6035_v24 = vpop.eup %4773  ;;  %v2603_v62 = vand.u32 2147483647, %v6023_v57  ;;  %v2776_v47 = vmul.f32 1.442695, %v2669_v22 }
 0x545   :  { %v3820_v9 = vpack.c.bf16 %v3167_v51, %v3166_v34  ;;  %4787 = vrcp.f32 %v2915_v28  ;;  %v2918_v10 = vadd.f32 1.0, %v6035_v24  ;;  %vm2851_vm3 = vcmp.ge.f32.partialorder %v5893_v21, 0.0 }
 0x546   :  { %4789 = vrcp.f32 %v2920_v35  ;;  %v2667_v59 = vsub.f32 0.0, %v2603_v62  ;;  %v2606_v15 = vand.u32 2147483647, %v6043_v5  ;;  %v2782_v44 = vmul.f32 1.442695, %v2672_v25 }
 0x547   :  { %3920 = vst [vmem:[#allocation13 + $0x70] sm:$0xff] %v3820_v9   ;;  %4791 = vpow2.f32 %v2770_v33  ;;  %v4776_v1 = vpop.eup %4775  ;;  %v2609_v34 = vand.u32 2147483647, %v6047_v43  ;;  %v2607_v38 = vand.u32 2147483647, %v6056_v56  ;;  %vm2856_vm4 = vcmp.ge.f32.partialorder %v5905_v13, 0.0 }
 0x548   :  { %v6049_v6 = vpop.f32.mrb[152].mxu0  ;;  %v6051_v52 = vpop.eup %4777  ;;  %4793 = vrcp.f32 %v2918_v10  ;;  %v3108_v48 = vmul.f32 %v4776_v1, %v5969_v53  ;;  %v2772_v7 = vmul.f32 1.442695, %v2667_v59  ;;  %v2670_v40 = vsub.f32 0.0, %v2606_v15 }
 0x549   :  { %v6058_v0 = vpop.f32.mrb[153].mxu0  ;;  %v6060_v30 = vpop.eup %4779  ;;  %v2921_v11 = vadd.f32 1.0, %v6051_v52  ;;  %4795 = vpow2.f32 %v2776_v47  ;;  %v2673_v35 = vsub.f32 0.0, %v2609_v34  ;;  %v2671_v62 = vsub.f32 0.0, %v2607_v38 }
 0x54a   :  { %v6066_v49 = vpop.eup %4781  ;;  %v2919_v31 = vadd.f32 1.0, %v6060_v30  ;;  %v6070_v32 = vpop.f32.mrb[154].mxu0  ;;  %v3172_v28 = vsel %vm2852_vm0, %v4776_v1, %v3108_v48  ;;  %v2778_v4 = vmul.f32 1.442695, %v2670_v40  ;;  %vm2854_vm5 = vcmp.ge.f32.partialorder %v5933_v46, 0.0 }
 0x54b   :  { %v4784_v39 = vpop.eup %4783  ;;  %4797 = vrcp.f32 %v2921_v11  ;;  %v2924_v53 = vadd.f32 1.0, %v6066_v49  ;;  %v6074_v23 = vpop.f32.mrb[155].mxu0  ;;  %v2784_v17 = vmul.f32 1.442695, %v2673_v35  ;;  %v2780_v60 = vmul.f32 1.442695, %v2671_v62 }
 0x54c   :  { %v4786_v14 = vpop.eup %4785  ;;  %v3106_v20 = vmul.f32 %v4784_v39, %v5985_v29  ;;  %4799 = vrcp.f32 %v2919_v31  ;;  %vm2857_vm6 = vcmp.ge.f32.partialorder %v5943_v12, 0.0  ;;  %vm2855_vm7 = vcmp.ge.f32.partialorder %v5947_v18, 0.0 }
 0x54d   :  { %v3109_v51 = vmul.f32 %v4786_v14, %v5989_v58  ;;  %4801 = vrcp.f32 %v2924_v53  ;;  %vm2860_vm8 = vcmp.ge.f32.partialorder %v5953_v27, 0.0  ;;  %vm2858_vm9 = vcmp.ge.f32.partialorder %v5974_v41, 0.0 }
 0x54e   :  { %v3170_v9 = vsel %vm2850_vm1, %v4784_v39, %v3106_v20  ;;  %4803 = vpow2.f32 %v2772_v7  ;;  %v6123_v39 = vadd.f32 %v6015_v26, %v5976_v36  ;;  %vm2861_vm10 = vcmp.ge.f32.partialorder %v6019_v8, 0.0 }
 0x54f   :  { %v4788_v33 = vpop.eup %4787  ;;  %v3173_v29 = vsel %vm2853_vm2, %v4786_v14, %v3109_v51  ;;  %4805 = vpow2.f32 %v2782_v44  ;;  %vm2859_vm11 = vcmp.ge.f32.partialorder %v6023_v57, 0.0  ;;  %vm2864_vm12 = vcmp.ge.f32.partialorder %v6032_v50, 0.0 }
 0x550   :  { %v4790_v63 = vpop.eup %4789  ;;  %v3107_v10 = vmul.f32 %v4788_v33, %v6004_v3  ;;  %v6086_v22 = vpop.f32.mrb[156].mxu0  ;;  %v3835_v1 = vpack.c.bf16 %v3173_v29, %v3172_v28  ;;  %4807 = vpow2.f32 %v2778_v4  ;;  %v6098_v3 = vadd.f32 %v6015_v26, %v5955_v55 }
 0x551   :  { %v6088_v58 = vpop.eup %4791  ;;  %v3112_v59 = vmul.f32 %v4790_v63, %v6009_v19  ;;  %v6091_v25 = vpop.f32.mrb[157].mxu0  ;;  %4809 = vpow2.f32 %v2784_v17  ;;  %v6105_v19 = vadd.f32 %v6015_v26, %v5961_v37  ;;  %v6119_v37 = vadd.f32 %v6015_v26, %v5967_v45 }
 0x552   :  { %v3171_v47 = vsel %vm2851_vm3, %v4788_v33, %v3107_v10  ;;  %v2922_v42 = vadd.f32 1.0, %v6088_v58  ;;  %v6100_v48 = vpop.f32.mrb[158].mxu0  ;;  %v4794_v11 = vpop.eup %4793  ;;  %3923 = vst [vmem:[#allocation13 + $0x88] sm:$0xff] %v3835_v1   ;;  %4811 = vpow2.f32 %v2780_v60  ;;  %v2612_v55 = vand.u32 2147483647, %v6098_v3 }
 0x553   :  { %v3830_v31 = vpack.c.bf16 %v3171_v47, %v3170_v9  ;;  %v6107_v21 = vpop.f32.mrb[159].mxu0  ;;  %v3110_v7 = vmul.f32 %v4794_v11, %v6035_v24  ;;  %v6113_v15 = vpop.eup %4795  ;;  %v2610_v13 = vand.u32 2147483647, %v6105_v19  ;;  %v3176_v53 = vsel %vm2856_vm4, %v4790_v63, %v3112_v59 }
 0x554   :  { %4813 = vrcp.f32 %v2922_v42  ;;  %v2925_v44 = vadd.f32 1.0, %v6113_v15  ;;  %v2676_v34 = vsub.f32 0.0, %v2612_v55  ;;  %v2613_v45 = vand.u32 2147483647, %v6119_v37 }
 0x555   :  { %3922 = vst [vmem:[#allocation13 + $0x80] sm:$0xff] %v3830_v31   ;;  %v4798_v24 = vpop.eup %4797  ;;  %v3174_v20 = vsel %vm2854_vm5, %v4794_v11, %v3110_v7  ;;  %v2674_v38 = vsub.f32 0.0, %v2610_v13  ;;  %v2611_v35 = vand.u32 2147483647, %v6123_v39  ;;  %v6160_v13 = vadd.f32 %v6015_v26, %v6002_v16 }
 0x556   :  { %v4800_v14 = vpop.eup %4799  ;;  %v3113_v40 = vmul.f32 %v4798_v24, %v6051_v52  ;;  %4815 = vrcp.f32 %v2925_v44  ;;  %v2790_v36 = vmul.f32 1.442695, %v2676_v34  ;;  %v2677_v46 = vsub.f32 0.0, %v2613_v45 }
 0x557   :  { %v4802_v28 = vpop.eup %4801  ;;  %v3111_v51 = vmul.f32 %v4800_v14, %v6060_v30  ;;  %v2786_v4 = vmul.f32 1.442695, %v2674_v38  ;;  %v6138_v52 = vadd.f32 %v6015_v26, %v5995_v61  ;;  %v2675_v59 = vsub.f32 0.0, %v2611_v35 }
 0x558   :  { %v6132_v33 = vpop.eup %4803  ;;  %v3177_v9 = vsel %vm2857_vm6, %v4798_v24, %v3113_v40  ;;  %4817 = vpow2.f32 %v2790_v36  ;;  %v2792_v47 = vmul.f32 1.442695, %v2677_v46  ;;  %v3116_v7 = vmul.f32 %v4802_v28, %v6066_v49 }
 0x559   :  { %v6140_v62 = vpop.eup %4805  ;;  %v3845_v63 = vpack.c.bf16 %v3177_v9, %v3176_v53  ;;  %v3175_v30 = vsel %vm2855_vm7, %v4800_v14, %v3111_v51  ;;  %v2923_v29 = vadd.f32 1.0, %v6132_v33  ;;  %4819 = vpow2.f32 %v2786_v4 }
 0x55a   :  { %v6145_v10 = vpop.eup %4807  ;;  %v3840_v17 = vpack.c.bf16 %v3175_v30, %v3174_v20  ;;  %v2928_v12 = vadd.f32 1.0, %v6140_v62  ;;  %v2616_v42 = vand.u32 2147483647, %v6138_v52  ;;  %v2788_v31 = vmul.f32 1.442695, %v2675_v59 }
 0x55b   :  { %v6148_v1 = vpop.eup %4809  ;;  %3925 = vst [vmem:[#allocation13 + $0x98] sm:$0xff] %v3845_v63   ;;  %4821 = vrcp.f32 %v2923_v29  ;;  %v2926_v61 = vadd.f32 1.0, %v6145_v10  ;;  %v6164_v53 = vadd.f32 %v6015_v26, %v6007_v2  ;;  %v6168_v44 = vadd.f32 %v6015_v26, %v6025_v54 }
 0x55c   :  { %v6151_v60 = vpop.eup %4811  ;;  %3924 = vst [vmem:[#allocation13 + $0x90] sm:$0xff] %v3840_v17   ;;  %4823 = vrcp.f32 %v2928_v12  ;;  %v2929_v18 = vadd.f32 1.0, %v6148_v1  ;;  %v2680_v55 = vsub.f32 0.0, %v2616_v42  ;;  %v6172_v34 = vadd.f32 %v6015_v26, %v6049_v6 }
 0x55d   :  { %4825 = vrcp.f32 %v2926_v61  ;;  %v2927_v11 = vadd.f32 1.0, %v6151_v60  ;;  %v2614_v16 = vand.u32 2147483647, %v6160_v13  ;;  %v2617_v2 = vand.u32 2147483647, %v6164_v53 }
 0x55e   :  { %4827 = vrcp.f32 %v2929_v18  ;;  %v4814_v24 = vpop.eup %4813  ;;  %v2798_v49 = vmul.f32 1.442695, %v2680_v55  ;;  %vm2865_vm13 = vcmp.ge.f32.partialorder %v6047_v43, 0.0  ;;  %v2615_v20 = vand.u32 2147483647, %v6168_v44 }
 0x55f   :  { %4829 = vrcp.f32 %v2927_v11  ;;  %v2678_v6 = vsub.f32 0.0, %v2614_v16  ;;  %v3180_v38 = vsel %vm2860_vm8, %v4802_v28, %v3116_v7  ;;  %v3114_v45 = vmul.f32 %v4814_v24, %v6088_v58 }
 0x560   :  { %4831 = vpow2.f32 %v2792_v47  ;;  %v4816_v14 = vpop.eup %4815  ;;  %vm2862_vm14 = vcmp.ge.f32.partialorder %v6043_v5, 0.0  ;;  %v2681_v51 = vsub.f32 0.0, %v2617_v2  ;;  %v2679_v46 = vsub.f32 0.0, %v2615_v20 }
 0x561   :  { %4833 = vpow2.f32 %v2788_v31  ;;  %v3117_v54 = vmul.f32 %v4816_v14, %v6113_v15  ;;  %v2620_v15 = vand.u32 2147483647, %v6172_v34  ;;  %v2794_v4 = vmul.f32 1.442695, %v2678_v6 }
 0x562   :  { %4835 = vpow2.f32 %v2798_v49  ;;  %v6183_v40 = vpop.eup %4817  ;;  %v2800_v28 = vmul.f32 1.442695, %v2681_v51  ;;  %v2796_v12 = vmul.f32 1.442695, %v2679_v46  ;;  %v6199_v61 = vadd.f32 %v6015_v26, %v6058_v0 }
 0x563   :  { %v6190_v36 = vpop.eup %4819  ;;  %v3181_v35 = vsel %vm2861_vm10, %v4816_v14, %v3117_v54  ;;  %v2932_v9 = vadd.f32 1.0, %v6183_v40  ;;  %v2684_v58 = vsub.f32 0.0, %v2620_v15  ;;  %v3178_v59 = vsel %vm2858_vm9, %v4814_v24, %v3114_v45 }
 0x564   :  { %v3855_v30 = vpack.c.bf16 %v3181_v35, %v3180_v38  ;;  %v2930_v27 = vadd.f32 1.0, %v6190_v36  ;;  %v2618_v31 = vand.u32 2147483647, %v6199_v61  ;;  %v6211_v41 = vadd.f32 %v6015_v26, %v6070_v32 }
 0x565   :  { %v4822_v63 = vpop.eup %4821  ;;  %4837 = vrcp.f32 %v2932_v9  ;;  %v2806_v47 = vmul.f32 1.442695, %v2684_v58  ;;  %vm2863_vm15 = vcmp.ge.f32.partialorder %v6056_v56, 0.0  ;;  %v6233_v20 = vadd.f32 %v6015_v26, %v6074_v23 }
 0x566   :  { %v4824_v29 = vpop.eup %4823  ;;  %v3115_v17 = vmul.f32 %v4822_v63, %v6132_v33  ;;  %3927 = vst [vmem:[#allocation13 + $0xa8] sm:$0xff] %v3855_v30   ;;  %4839 = vrcp.f32 %v2930_v27  ;;  %v2621_v50 = vand.u32 2147483647, %v6211_v41  ;;  %v6237_v5 = vadd.f32 %v6015_v26, %v6086_v22 }
 0x567   :  { %v4826_v8 = vpop.eup %4825  ;;  %v3120_v18 = vmul.f32 %v4824_v29, %v6140_v62  ;;  %4841 = vpow2.f32 %v2794_v4  ;;  %v6241_v45 = vadd.f32 %v6015_v26, %v6091_v25  ;;  %v2619_v15 = vand.u32 2147483647, %v6233_v20 }
 0x568   :  { %v4828_v42 = vpop.eup %4827  ;;  %v3179_v11 = vsel %vm2859_vm11, %v4822_v63, %v3115_v17  ;;  %v3118_v33 = vmul.f32 %v4826_v8, %v6145_v10  ;;  %4843 = vpow2.f32 %v2800_v28  ;;  %v2682_v10 = vsub.f32 0.0, %v2618_v31 }
 0x569   :  { %v4830_v0 = vpop.eup %4829  ;;  %v3850_v7 = vpack.c.bf16 %v3179_v11, %v3178_v59  ;;  %v3121_v55 = vmul.f32 %v4828_v42, %v6148_v1  ;;  %4845 = vpow2.f32 %v2796_v12  ;;  %v3184_v49 = vsel %vm2864_vm12, %v4824_v29, %v3120_v18 }
 0x56a   :  { %v6213_v62 = vpop.eup %4831  ;;  %v3119_v57 = vmul.f32 %v4830_v0, %v6151_v60  ;;  %4847 = vpow2.f32 %v2806_v47  ;;  %v3182_v56 = vsel %vm2862_vm14, %v4826_v8, %v3118_v33  ;;  %v2802_v6 = vmul.f32 1.442695, %v2682_v10 }
 0x56b   :  { %v6217_v24 = vpop.eup %4833  ;;  %3926 = vst [vmem:[#allocation13 + $0xa0] sm:$0xff] %v3850_v7   ;;  %v3185_v1 = vsel %vm2865_vm13, %v4828_v42, %v3121_v55  ;;  %v2933_v32 = vadd.f32 1.0, %v6213_v62  ;;  %v2685_v38 = vsub.f32 0.0, %v2621_v50  ;;  %v2624_v35 = vand.u32 2147483647, %v6237_v5 }
 0x56c   :  { %v6224_v16 = vpop.eup %4835  ;;  %v3865_v60 = vpack.c.bf16 %v3185_v1, %v3184_v49  ;;  %v3183_v14 = vsel %vm2863_vm15, %v4830_v0, %v3119_v57  ;;  %v2931_v2 = vadd.f32 1.0, %v6217_v24  ;;  %v2622_v23 = vand.u32 2147483647, %v6241_v45 }
 0x56d   :  { %v3860_v54 = vpack.c.bf16 %v3183_v14, %v3182_v56  ;;  %4849 = vrcp.f32 %v2933_v32  ;;  %v2936_v43 = vadd.f32 1.0, %v6224_v16  ;;  %v2808_v4 = vmul.f32 1.442695, %v2685_v38 }
 0x56e   :  { %3929 = vst [vmem:[#allocation13 + $0xb8] sm:$0xff] %v3865_v60   ;;  %4851 = vrcp.f32 %v2931_v2  ;;  %v6248_v22 = vadd.f32 %v6015_v26, %v6100_v48  ;;  %v2683_v63 = vsub.f32 0.0, %v2619_v15  ;;  %v2688_v30 = vsub.f32 0.0, %v2624_v35 }
 0x56f   :  { %3928 = vst [vmem:[#allocation13 + $0xb0] sm:$0xff] %v3860_v54   ;;  %v4838_v51 = vpop.eup %4837  ;;  %4853 = vpow2.f32 %v2802_v6  ;;  %v2686_v28 = vsub.f32 0.0, %v2622_v23  ;;  %vm2868_vm0 = vcmp.ge.f32.partialorder %v6098_v3, 0.0  ;;  %vm2866_vm1 = vcmp.ge.f32.partialorder %v6105_v19, 0.0 }
 0x570   :  { %v4840_v9 = vpop.eup %4839  ;;  %4855 = vrcp.f32 %v2936_v43  ;;  %v3124_v29 = vmul.f32 %v4838_v51, %v6183_v40  ;;  %v2804_v8 = vmul.f32 1.442695, %v2683_v63  ;;  %v2625_v59 = vand.u32 2147483647, %v6248_v22 }
 0x571   :  { %v4842_v46 = vpop.eup %4841  ;;  %4857 = vpow2.f32 %v2808_v4  ;;  %v2814_v47 = vmul.f32 1.442695, %v2688_v30  ;;  %v6259_v42 = vadd.f32 %v6015_v26, %v6107_v21  ;;  %v3122_v40 = vmul.f32 %v4840_v9, %v6190_v36 }
 0x572   :  { %v4844_v25 = vpop.eup %4843  ;;  %v2934_v27 = vadd.f32 1.0, %v4842_v46  ;;  %v2810_v33 = vmul.f32 1.442695, %v2686_v28  ;;  %v2689_v31 = vsub.f32 0.0, %v2625_v59  ;;  %vm2869_vm2 = vcmp.ge.f32.partialorder %v6119_v37, 0.0 }
 0x573   :  { %v4846_v58 = vpop.eup %4845  ;;  %v2937_v17 = vadd.f32 1.0, %v4844_v25  ;;  %v2623_v55 = vand.u32 2147483647, %v6259_v42  ;;  %vm2867_vm3 = vcmp.ge.f32.partialorder %v6123_v39, 0.0  ;;  %v3188_v21 = vsel %vm2868_vm0, %v4838_v51, %v3124_v29 }
 0x574   :  { %v6253_v12 = vpop.eup %4847  ;;  %4859 = vrcp.f32 %v2934_v27  ;;  %v2935_v48 = vadd.f32 1.0, %v4846_v58  ;;  %v2816_v26 = vmul.f32 1.442695, %v2689_v31  ;;  %v3186_v37 = vsel %vm2866_vm1, %v4840_v9, %v3122_v40 }
 0x575   :  { %4861 = vrcp.f32 %v2937_v17  ;;  %v2940_v18 = vadd.f32 1.0, %v6253_v12  ;;  %v2687_v10 = vsub.f32 0.0, %v2623_v55  ;;  %vm2872_vm4 = vcmp.ge.f32.partialorder %v6138_v52, 0.0 }
 0x576   :  { %4863 = vrcp.f32 %v2935_v48  ;;  %vm2873_vm5 = vcmp.ge.f32.partialorder %v6164_v53, 0.0  ;;  %vm2870_vm6 = vcmp.ge.f32.partialorder %v6160_v13, 0.0  ;;  %vm2871_vm7 = vcmp.ge.f32.partialorder %v6168_v44, 0.0 }
 0x577   :  { %v4850_v11 = vpop.eup %4849  ;;  %4865 = vrcp.f32 %v2940_v18  ;;  %v2812_v39 = vmul.f32 1.442695, %v2687_v10  ;;  %vm2876_vm8 = vcmp.ge.f32.partialorder %v6172_v34, 0.0  ;;  %vm2877_vm9 = vcmp.ge.f32.partialorder %v6211_v41, 0.0 }
 0x578   :  { %v4852_v0 = vpop.eup %4851  ;;  %v3125_v7 = vmul.f32 %v4850_v11, %v6213_v62  ;;  %4867 = vpow2.f32 %v2804_v8  ;;  %vm2874_vm10 = vcmp.ge.f32.partialorder %v6199_v61, 0.0  ;;  %vm2875_vm11 = vcmp.ge.f32.partialorder %v6233_v20, 0.0 }
 0x579   :  { %v3123_v57 = vmul.f32 %v4852_v0, %v6217_v24  ;;  %4869 = vpow2.f32 %v2814_v47  ;;  %v4854_v49 = vpop.eup %4853  ;;  %vm2880_vm12 = vcmp.ge.f32.partialorder %v6237_v5, 0.0  ;;  %vm2881_vm13 = vcmp.ge.f32.partialorder %v6248_v22, 0.0 }
 0x57a   :  { %v3189_v36 = vsel %vm2869_vm2, %v4850_v11, %v3125_v7  ;;  %4871 = vpow2.f32 %v2810_v33  ;;  %v4856_v32 = vpop.eup %4855  ;;  %v2938_v60 = vadd.f32 1.0, %v4854_v49  ;;  %vm2878_vm14 = vcmp.ge.f32.partialorder %v6241_v45, 0.0 }
 0x57b   :  { %v3875_v62 = vpack.c.bf16 %v3189_v36, %v3188_v21  ;;  %v3187_v1 = vsel %vm2867_vm3, %v4852_v0, %v3123_v57  ;;  %4873 = vpow2.f32 %v2816_v26  ;;  %v4858_v24 = vpop.eup %4857  ;;  %v3128_v2 = vmul.f32 %v4856_v32, %v6224_v16 }
 0x57c   :  { %v3870_v56 = vpack.c.bf16 %v3187_v1, %v3186_v37  ;;  %v2941_v3 = vadd.f32 1.0, %v4858_v24  ;;  %4875 = vpow2.f32 %v2812_v39  ;;  %vm2879_vm15 = vcmp.ge.f32.partialorder %v6259_v42, 0.0 }
 0x57d   :  { %3931 = vst [vmem:[#allocation13 + $0xc8] sm:$0xff] %v3875_v62   ;;  %v3192_v15 = vsel %vm2872_vm4, %v4856_v32, %v3128_v2 }
 0x57e   :  { %3930 = vst [vmem:[#allocation13 + $0xc0] sm:$0xff] %v3870_v56   ;;  %v4860_v14 = vpop.eup %4859  ;;  %4877 = vrcp.f32 %v2941_v3 }
 0x57f   :  { %v4862_v54 = vpop.eup %4861  ;;  %v3126_v6 = vmul.f32 %v4860_v14, %v4842_v46  ;;  %4879 = vrcp.f32 %v2938_v60 }
 0x580   :  { %v4864_v19 = vpop.eup %4863  ;;  %v3129_v50 = vmul.f32 %v4862_v54, %v4844_v25 }
 0x581   :  { %v4866_v43 = vpop.eup %4865  ;;  %v3127_v38 = vmul.f32 %v4864_v19, %v4846_v58  ;;  %v3190_v9 = vsel %vm2870_vm6, %v4860_v14, %v3126_v6 }
 0x582   :  { %v4868_v51 = vpop.eup %4867  ;;  %v3193_v35 = vsel %vm2873_vm5, %v4862_v54, %v3129_v50  ;;  %v3132_v13 = vmul.f32 %v4866_v43, %v6253_v12 }
 0x583   :  { %v4870_v16 = vpop.eup %4869  ;;  %v3885_v4 = vpack.c.bf16 %v3193_v35, %v3192_v15  ;;  %v3191_v23 = vsel %vm2871_vm7, %v4864_v19, %v3127_v38  ;;  %v2939_v46 = vadd.f32 1.0, %v4868_v51 }
 0x584   :  { %v4872_v63 = vpop.eup %4871  ;;  %v3880_v30 = vpack.c.bf16 %v3191_v23, %v3190_v9  ;;  %v2944_v25 = vadd.f32 1.0, %v4870_v16  ;;  %v3196_v48 = vsel %vm2876_vm8, %v4866_v43, %v3132_v13 }
 0x585   :  { %v4874_v52 = vpop.eup %4873  ;;  %3933 = vst [vmem:[#allocation13 + $0xd8] sm:$0xff] %v3885_v4   ;;  %4881 = vrcp.f32 %v2939_v46  ;;  %v2942_v53 = vadd.f32 1.0, %v4872_v63 }
 0x586   :  { %3932 = vst [vmem:[#allocation13 + $0xd0] sm:$0xff] %v3880_v30   ;;  %4883 = vrcp.f32 %v2944_v25  ;;  %v2945_v27 = vadd.f32 1.0, %v4874_v52  ;;  %v4876_v28 = vpop.eup %4875 }
 0x587   :  { %4885 = vrcp.f32 %v2942_v53  ;;  %v2943_v44 = vadd.f32 1.0, %v4876_v28 }
 0x588   :  { %4887 = vrcp.f32 %v2945_v27  ;;  %v4878_v58 = vpop.eup %4877 }
 0x589   :  { %v3133_v29 = vmul.f32 %v4878_v58, %v4858_v24  ;;  %4889 = vrcp.f32 %v2943_v44  ;;  %v4880_v17 = vpop.eup %4879 }
 0x58a   :  { %v3130_v18 = vmul.f32 %v4880_v17, %v4854_v49 }
 0x58b   :  { %v3197_v8 = vsel %vm2877_vm9, %v4878_v58, %v3133_v29 }
 0x58c   :  { %v3895_v59 = vpack.c.bf16 %v3197_v8, %v3196_v48  ;;  %v3194_v0 = vsel %vm2874_vm10, %v4880_v17, %v3130_v18 }
 0x58e   :  { %3935 = vst [vmem:[#allocation13 + $0xe8] sm:$0xff] %v3895_v59  }
 0x58f   :  { %v4882_v47 = vpop.eup %4881 }
 0x590   :  { %v4884_v11 = vpop.eup %4883  ;;  %v3131_v40 = vmul.f32 %v4882_v47, %v4868_v51 }
 0x591   :  { %v4886_v33 = vpop.eup %4885  ;;  %v3136_v12 = vmul.f32 %v4884_v11, %v4870_v16 }
 0x592   :  { %v4888_v31 = vpop.eup %4887  ;;  %v3195_v7 = vsel %vm2875_vm11, %v4882_v47, %v3131_v40  ;;  %v3134_v55 = vmul.f32 %v4886_v33, %v4872_v63 }
 0x593   :  { %v3890_v34 = vpack.c.bf16 %v3195_v7, %v3194_v0  ;;  %v3137_v41 = vmul.f32 %v4888_v31, %v4874_v52  ;;  %v4890_v57 = vpop.eup %4889  ;;  %v3200_v26 = vsel %vm2880_vm12, %v4884_v11, %v3136_v12 }
 0x594   :  { %v3135_v36 = vmul.f32 %v4890_v57, %v4876_v28  ;;  %v3198_v20 = vsel %vm2878_vm14, %v4886_v33, %v3134_v55 }
 0x595   :  { %3934 = vst [vmem:[#allocation13 + $0xe0] sm:$0xff] %v3890_v34   ;;  %v3201_v21 = vsel %vm2881_vm13, %v4888_v31, %v3137_v41 }
 0x596   :  { %v3905_v61 = vpack.c.bf16 %v3201_v21, %v3200_v26  ;;  %v3199_v10 = vsel %vm2879_vm15, %v4890_v57, %v3135_v36 }
 0x597   :  { %v3900_v49 = vpack.c.bf16 %v3199_v10, %v3198_v20 }
 0x598   :  { %3937 = vst [vmem:[#allocation13 + $0xf8] sm:$0xff] %v3905_v61  }
 0x599   :  { %3936 = vst [vmem:[#allocation13 + $0xf0] sm:$0xff] %v3900_v49  }
 0x59a   :  { %5035 = shalt.err (!%p5032_p10)
}
 0x59b   :  { %s5036_s23 = scalar_lea.hbm %s6311_s11, 4096 }
 0x59c   :  { %p5037_p11 = scmp.ne.s32.totalorder %s6311_s11, %s5036_s23  ;;  %p5040_p12 = scmp.lt.u32.totalorder %s5036_s23, %s6311_s11 }
 0x59e   :  { %p5042_p13 = pnand %p5040_p12, %p5037_p11 }
 0x5a0   :  { %5045 = shalt.err (!%p5042_p13)
}
 0x5a1   :  { %3533 = dma.vmem_to_hbm [thread:$0]  %s3528_s21, 4096, %s6311_s11, [#allocation4], %s5058_s29, %s5058_s29, %s5059_s30  }
 0x5a2   :  { %5054 = dma.done.wait [#allocation4], 4096  }
 0x5a3   :  { %5055 = vsyncadd [#allocation4], 4294963200 }
 0x5a4   :  { %3537 = vsyncpa [#allocation3], 1 }
 0x5a5   :  { %3538 = vsyncpa [#allocation6], 1 }
 0x5a6   :  { %3539 = vsyncpa [#allocation9], 1 }
 0x5a7   :  { %3540 = vsyncpa [#allocation12], 1 }
 0x5a8   :  { %3541 = vsyncpa [#allocation4], 1 }

</bundles_post_ra>
